<compile_context>
chip_gen: v6e
topology: v6e:2x2x1
jax: 0.10.0
libtpu: 0.0.40
codegen_flags: <defaults>
</compile_context>

<pallas_src>
import jax
import jax.numpy as jnp
import numpy as np
from jax import lax
from jax.experimental import pallas as pl
from jax.experimental.pallas import tpu as pltpu

CH = 66                 # feature channels
H = 16
W = 16
B = 2
HP = H + 2              # zero-padded height
WP = W + 2              # zero-padded width (= flat row stride)
SP_RAW = HP * WP        # 324 flat padded-spatial positions
SP = 384                # padded up to a lane-tile multiple (3 x 128)
NHEADS = 3              # rgb / dep / rgbd prediction heads
W_ROWS = 32             # 9 taps * 3 heads = 27, padded to 32 LHS rows
EPS = 1e-5

# Lane-roll safety: every tap read for a *valid* output anchor must land in
# the same batch's valid (un-padded) lane region, so cross-batch / wrap-around
# lanes only ever feed anchors that are sliced away in the wrapper.
_MAX_ANCHOR = (H - 1) * WP + (W - 1)      # 285
_MAX_OFF = 2 * WP + 2                     # 38
assert SP % 128 == 0, "lane width must stay a multiple of 128"
assert _MAX_ANCHOR + _MAX_OFF < SP_RAW <= SP, (
    "lane-roll conv trick requires valid-anchor tap reads to stay inside the "
    "valid flattened-spatial region")


def _wrgbd_heads_kernel(w_ref, feat_ref, bias_ref, o_ref):
    """All three BN+3x3-conv prediction heads in one shot.

    w_ref:    (32, 2*CH)      stacked conv weights; row r = tap_k*NHEADS + head
                              (rows 27..31 zero); cols [0:CH] act on rgb,
                              [CH:2CH] on dep.  BN scale and the rgb/dep
                              selection coefficient are folded in.
    feat_ref: (2*CH, B*SP)    rgb ++ dep features, channel-major; zero-padded
                              spatial grid flattened into the lane axis (row
                              stride WP), batch folded into lanes.
    bias_ref: (NHEADS, B*SP)  per-head per-anchor bias (conv bias + BN shift).
    o_ref:    (NHEADS, B*SP)  conv output at anchor j = h*WP + w.
    """
    n = feat_ref.shape[1]

    # Single MXU matmul: 132-channel reduction for every head, tap and batch,
    # with rgb + dep fusion folded into K.
    taps = jnp.dot(w_ref[...], feat_ref[...],
                   preferred_element_type=jnp.float32,
                   precision=lax.Precision.HIGHEST)            # (32, B*SP)

    # Combine the nine 3x3 taps with lane rolls (XLU).  Each tap group holds
    # the 3 heads, so every roll/add works on a (NHEADS, B*SP) block.
    blocks = [bias_ref[...]]
    for dh in range(3):
        for dw in range(3):
            k = dh * 3 + dw
            off = dh * WP + dw
            blk = taps[k * NHEADS:(k + 1) * NHEADS, :]         # (NHEADS, B*SP)
            if off:
                # out[j] needs taps[., j + off]: rotate lanes left by off.
                blk = pltpu.roll(blk, n - off, axis=1)
            blocks.append(blk)

    # Pairwise tree-sum (depth ~4 instead of a 10-deep serial add chain).
    while len(blocks) > 1:
        nxt = [blocks[i] + blocks[i + 1] for i in range(0, len(blocks) - 1, 2)]
        if len(blocks) % 2:
            nxt.append(blocks[-1])
        blocks = nxt

    o_ref[...] = blocks[0]                                     # (NHEADS, B*SP)


def _heads_pallas(w_all, feat, bias):
    nheads, bsp = bias.shape
    # Single invocation, no grid: everything (<0.5 MB) lives in VMEM.
    return pl.pallas_call(
        _wrgbd_heads_kernel,
        out_shape=jax.ShapeDtypeStruct((nheads, bsp), jnp.float32),
        in_specs=[pl.BlockSpec(memory_space=pltpu.MemorySpace.VMEM)] * 3,
        out_specs=pl.BlockSpec(memory_space=pltpu.MemorySpace.VMEM),
    )(w_all, feat, bias)


def _prep_features(x_nchw):
    """(B, CH, H, W) -> (CH, B*SP): zero-pad spatial by 1, flatten into lanes."""
    b = x_nchw.shape[0]
    xp = jnp.pad(x_nchw.astype(jnp.float32), ((0, 0), (0, 0), (1, 1), (1, 1)))
    xf = xp.reshape(b, CH, SP_RAW)
    xf = jnp.pad(xf, ((0, 0), (0, 0), (0, SP - SP_RAW)))       # (B, CH, SP)
    return jnp.transpose(xf, (1, 0, 2)).reshape(CH, b * SP)    # lane = b*SP + j


def _prep_head_params(params, sel_rgb, sel_dep):
    """Fold BN + rgb/dep selection into the conv: scaled weights + bias map."""
    gamma, beta, mean, var, wconv, bconv = params
    scale = gamma / jnp.sqrt(var + EPS)                 # (CH,)
    shift = beta - mean * scale                         # (CH,)

    # (1, CH, 3, 3) -> (3, 3, CH) -> (9, CH), tap k = dh*3 + dw.
    wk = jnp.transpose(wconv[0], (1, 2, 0)).reshape(9, CH)
    w_scaled = wk * scale[None, :]                      # BN scale folded in
    w_rgbdep = jnp.concatenate(
        [sel_rgb * w_scaled, sel_dep * w_scaled], axis=1)       # (9, 2*CH)

    # Bias map: conv bias + BN-shift contribution over the *valid* taps
    # (spatial zero-padding means border pixels see fewer shifted taps).
    s_taps = wk @ shift                                 # (9,)
    m = jnp.zeros((HP, WP), jnp.float32).at[1:H + 1, 1:W + 1].set(1.0)
    m = jnp.pad(m.reshape(SP_RAW), (0, SP - SP_RAW))    # (SP,) interior mask
    bmap = bconv[0] * jnp.ones((SP,), jnp.float32)
    for dh in range(3):
        for dw in range(3):
            k = dh * 3 + dw
            bmap = bmap + s_taps[k] * jnp.roll(m, -(dh * WP + dw))
    return w_rgbdep, bmap


@jax.jit
def wrgbd_forward(rgb_fea, dep_fea, rgb_params, dep_params, rgbd_params):
    """WRGBD.forward starting from the branch feature maps (B, 66, H, W)."""
    b = rgb_fea.shape[0]

    # rgb ++ dep along channels -> (2*CH, B*SP); batch folded into lanes.
    feat = jnp.concatenate(
        [_prep_features(rgb_fea), _prep_features(dep_fea)], axis=0)

    # Head 0: rgb_pred(rgb_fea); head 1: dep_pred(dep_fea);
    # head 2: rgbd_pred(rgb_fea + dep_fea)  (DS_Fusion approximated by sum).
    sels = ((1.0, 0.0), (0.0, 1.0), (1.0, 1.0))
    pp = [_prep_head_params(p, sr, sd)
          for p, (sr, sd) in zip((rgb_params, dep_params, rgbd_params), sels)]

    # Stack heads tap-major / head-minor: row r = tap_k*NHEADS + head, so the
    # kernel's per-tap slice holds all three heads.  Pad LHS rows 27 -> 32.
    w_heads = jnp.stack([p[0] for p in pp], axis=1)             # (9, 3, 2*CH)
    w_all = w_heads.reshape(9 * NHEADS, 2 * CH)
    w_all = jnp.pad(w_all, ((0, W_ROWS - 9 * NHEADS), (0, 0)))  # (32, 2*CH)

    bias = jnp.tile(jnp.stack([p[1] for p in pp], axis=0), (1, b))  # (3, B*SP)

    out = _heads_pallas(w_all, feat, bias)                      # (3, B*SP)
    out = out.reshape(NHEADS, b, SP)[:, :, :SP_RAW]
    out = out.reshape(NHEADS, b, HP, WP)[:, :, :H, :W]
    return out[0][:, None], out[1][:, None], out[2][:, None]


def pred_head_reference(fea_nchw, params):
    """Pure-JAX reference for nn.Sequential(BatchNorm2d(66), Conv2d(66,1,3,1,1))."""
    gamma, beta, mean, var, wconv, bconv = params
    y = (fea_nchw - mean[None, :, None, None]) / jnp.sqrt(
        var[None, :, None, None] + EPS)
    y = y * gamma[None, :, None, None] + beta[None, :, None, None]
    out = lax.conv_general_dilated(
        y, wconv, window_strides=(1, 1), padding="SAME",
        dimension_numbers=("NCHW", "OIHW", "NCHW"),
        precision=lax.Precision.HIGHEST)
    return out + bconv[None, :, None, None]


def init_head_params(key):
    k1, k2, k3, k4, k5, k6 = jax.random.split(key, 6)
    gamma = 1.0 + 0.1 * jax.random.normal(k1, (CH,), jnp.float32)
    beta = 0.1 * jax.random.normal(k2, (CH,), jnp.float32)
    mean = 0.1 * jax.random.normal(k3, (CH,), jnp.float32)
    var = 1.0 + 0.1 * jax.random.uniform(k4, (CH,), jnp.float32)
    wconv = 0.1 * jax.random.normal(k5, (1, CH, 3, 3), jnp.float32)
    bconv = 0.1 * jax.random.normal(k6, (1,), jnp.float32)
    return (gamma, beta, mean, var, wconv, bconv)


if __name__ == "__main__":
    key = jax.random.PRNGKey(0)
    k_rgb, k_dep, kp1, kp2, kp3 = jax.random.split(key, 5)

    rgb_fea = jax.random.normal(k_rgb, (B, CH, H, W), jnp.float32)
    dep_fea = jax.random.normal(k_dep, (B, CH, H, W), jnp.float32)

    rgb_params = init_head_params(kp1)
    dep_params = init_head_params(kp2)
    rgbd_params = init_head_params(kp3)

    rgb_sal, dep_sal, rgbd_sal = wrgbd_forward(
        rgb_fea, dep_fea, rgb_params, dep_params, rgbd_params)
    jax.block_until_ready((rgb_sal, dep_sal, rgbd_sal))

    # Pure-JAX reference check.
    rgbd_fea = rgb_fea + dep_fea
    ref_rgb = pred_head_reference(rgb_fea, rgb_params)
    ref_dep = pred_head_reference(dep_fea, dep_params)
    ref_rgbd = pred_head_reference(rgbd_fea, rgbd_params)

    np.testing.assert_allclose(np.asarray(rgb_sal), np.asarray(ref_rgb),
                               rtol=1e-3, atol=1e-3)
    np.testing.assert_allclose(np.asarray(dep_sal), np.asarray(ref_dep),
                               rtol=1e-3, atol=1e-3)
    np.testing.assert_allclose(np.asarray(rgbd_sal), np.asarray(ref_rgbd),
                               rtol=1e-3, atol=1e-3)

    print("KERNEL_OK")
</pallas_src>

<mosaic_0001>
module attributes {stable_mosaic.version = 11 : i64} {
  func.func @_wrgbd_heads_kernel(%arg0: memref<32x132xf32, #tpu.memory_space<vmem>>, %arg1: memref<132x768xf32, #tpu.memory_space<vmem>>, %arg2: memref<3x768xf32, #tpu.memory_space<vmem>>, %arg3: memref<3x768xf32, #tpu.memory_space<vmem>>) attributes {dimension_semantics = [], scalar_prefetch = 0 : i64, scratch_operands = 0 : i64, tpu.core_type = #tpu.core_type<tc>} {
    %c0 = arith.constant 0 : index
    %c0_0 = arith.constant 0 : index
    %0 = vector.load %arg0[%c0, %c0_0] : memref<32x132xf32, #tpu.memory_space<vmem>>, vector<32x132xf32>
    %c0_1 = arith.constant 0 : index
    %c0_2 = arith.constant 0 : index
    %1 = vector.load %arg1[%c0_1, %c0_2] : memref<132x768xf32, #tpu.memory_space<vmem>>, vector<132x768xf32>
    %cst = arith.constant dense<0.000000e+00> : vector<32x768xf32>
    %2 = tpu.matmul %0, %1, %cst {dimension_numbers = #tpu.dot_dimension_numbers<[1], [0], [0], [1], [0, 0, 1, 1], [], []>, precision = #tpu.contract_precision<fp32>} : vector<32x132xf32>, vector<132x768xf32>, vector<32x768xf32> -> vector<32x768xf32>
    %c0_3 = arith.constant 0 : index
    %c0_4 = arith.constant 0 : index
    %3 = vector.load %arg2[%c0_3, %c0_4] : memref<3x768xf32, #tpu.memory_space<vmem>>, vector<3x768xf32>
    %4 = vector.extract_strided_slice %2 {offsets = [0, 0], sizes = [3, 768], strides = [1, 1]} : vector<32x768xf32> to vector<3x768xf32>
    %5 = vector.extract_strided_slice %2 {offsets = [3, 0], sizes = [3, 768], strides = [1, 1]} : vector<32x768xf32> to vector<3x768xf32>
    %c767_i32 = arith.constant 767 : i32
    %6 = tpu.dynamic_rotate %5 by %c767_i32 dim 1 : vector<3x768xf32>, i32 -> vector<3x768xf32>
    %7 = vector.extract_strided_slice %2 {offsets = [6, 0], sizes = [3, 768], strides = [1, 1]} : vector<32x768xf32> to vector<3x768xf32>
    %c766_i32 = arith.constant 766 : i32
    %8 = tpu.dynamic_rotate %7 by %c766_i32 dim 1 : vector<3x768xf32>, i32 -> vector<3x768xf32>
    %9 = vector.extract_strided_slice %2 {offsets = [9, 0], sizes = [3, 768], strides = [1, 1]} : vector<32x768xf32> to vector<3x768xf32>
    %c750_i32 = arith.constant 750 : i32
    %10 = tpu.dynamic_rotate %9 by %c750_i32 dim 1 : vector<3x768xf32>, i32 -> vector<3x768xf32>
    %11 = vector.extract_strided_slice %2 {offsets = [12, 0], sizes = [3, 768], strides = [1, 1]} : vector<32x768xf32> to vector<3x768xf32>
    %c749_i32 = arith.constant 749 : i32
    %12 = tpu.dynamic_rotate %11 by %c749_i32 dim 1 : vector<3x768xf32>, i32 -> vector<3x768xf32>
    %13 = vector.extract_strided_slice %2 {offsets = [15, 0], sizes = [3, 768], strides = [1, 1]} : vector<32x768xf32> to vector<3x768xf32>
    %c748_i32 = arith.constant 748 : i32
    %14 = tpu.dynamic_rotate %13 by %c748_i32 dim 1 : vector<3x768xf32>, i32 -> vector<3x768xf32>
    %15 = vector.extract_strided_slice %2 {offsets = [18, 0], sizes = [3, 768], strides = [1, 1]} : vector<32x768xf32> to vector<3x768xf32>
    %c732_i32 = arith.constant 732 : i32
    %16 = tpu.dynamic_rotate %15 by %c732_i32 dim 1 : vector<3x768xf32>, i32 -> vector<3x768xf32>
    %17 = vector.extract_strided_slice %2 {offsets = [21, 0], sizes = [3, 768], strides = [1, 1]} : vector<32x768xf32> to vector<3x768xf32>
    %c731_i32 = arith.constant 731 : i32
    %18 = tpu.dynamic_rotate %17 by %c731_i32 dim 1 : vector<3x768xf32>, i32 -> vector<3x768xf32>
    %19 = vector.extract_strided_slice %2 {offsets = [24, 0], sizes = [3, 768], strides = [1, 1]} : vector<32x768xf32> to vector<3x768xf32>
    %c730_i32 = arith.constant 730 : i32
    %20 = tpu.dynamic_rotate %19 by %c730_i32 dim 1 : vector<3x768xf32>, i32 -> vector<3x768xf32>
    %21 = arith.addf %3, %4 : vector<3x768xf32>
    %22 = arith.addf %6, %8 : vector<3x768xf32>
    %23 = arith.addf %10, %12 : vector<3x768xf32>
    %24 = arith.addf %14, %16 : vector<3x768xf32>
    %25 = arith.addf %18, %20 : vector<3x768xf32>
    %26 = arith.addf %21, %22 : vector<3x768xf32>
    %27 = arith.addf %23, %24 : vector<3x768xf32>
    %28 = arith.addf %26, %27 : vector<3x768xf32>
    %29 = arith.addf %28, %25 : vector<3x768xf32>
    %c0_5 = arith.constant 0 : index
    %c0_6 = arith.constant 0 : index
    %30 = vector.load %arg3[%c0_5, %c0_6] : memref<3x768xf32, #tpu.memory_space<vmem>>, vector<3x768xf32>
    tpu.vector_store %arg3[%c0_5, %c0_6], %29 {strides = array<i32>} : memref<3x768xf32, #tpu.memory_space<vmem>>, vector<3x768xf32>,
    return
  }
}

</mosaic_0001>

<bundles_post_ra>
// kernel: wrgbd_forward.1
= control target key start
LH: loop header
LB: loop body
LE: loop exit
PB: predicated region body
PF: predicated region fallthrough
CT: control target
= control target key end

     0   :  { %vm137_vm0 = vcmask 1043456   ;;  %vm124_vm1 = vcmask 31744   ;;  %s3781_s11 = smov 110   ;;  %s3782_s12 = smov 109   ;;  %vm3444_vm2 = vcmask 1041408   ;;  %vm3556_vm3 = vcmask 1040384   ;;  %s6700_s1 = inlined_call_operand.vmem [shape: f32[132,768], index: 1, kind: input, shape index: {}]   ;;  %s6701_s0 = inlined_call_operand.vmem [shape: f32[32,132], index: 0, kind: input, shape index: {}]   ;;  %s6702_s2 = inlined_call_operand.vmem [shape: f32[3,768], index: 2, kind: input, shape index: {}]   ;;  %s6703_s3 = inlined_call_operand.vmem [shape: f32[3,768], index: 3, kind: output, shape index: {}]  }
   0x1   :  { %v113_v0 = vld [vmem:[%s6700_s1 + $0x2d8] sm:$0xff]  ;;  %v112_v1 = vld [vmem:[%s6700_s1 + $0x2d0] sm:$0xff]  ;;  %v107_v2 = vld [vmem:[%s6700_s1 + $0x2a8] sm:$0xff]  ;;  %s3783_s13 = smov 126   ;;  %s3784_s14 = smov 92  }
   0x2   :  { %v3817_v3 = vand.u32 4294901760, %v113_v0  ;;  %v3819_v4 = vand.u32 4294901760, %v112_v1  ;;  %v3821_v5 = vand.u32 4294901760, %v107_v2  ;;  %v106_v6 = vld [vmem:[%s6700_s1 + $0x2a0] sm:$0xff]  ;;  %v101_v7 = vld [vmem:[%s6700_s1 + $0x278] sm:$0xff]  ;;  %v100_v8 = vld [vmem:[%s6700_s1 + $0x270] sm:$0xff] }
   0x3   :  { %v3832_v9 = vand.u32 4294901760, %v106_v6  ;;  %v3834_v10 = vand.u32 4294901760, %v101_v7  ;;  %v3836_v11 = vand.u32 4294901760, %v100_v8  ;;  %v95_v12 = vld [vmem:[%s6700_s1 + $0x248] sm:$0xff]  ;;  %v94_v13 = vld [vmem:[%s6700_s1 + $0x240] sm:$0xff]  ;;  %v89_v14 = vld [vmem:[%s6700_s1 + $0x218] sm:$0xff] }
   0x4   :  { %157 = vmatprep.subr.mxu0 %v3817_v3  ;;  %v3848_v15 = vand.u32 4294901760, %v95_v12  ;;  %v3850_v16 = vand.u32 4294901760, %v94_v13  ;;  %v3852_v17 = vand.u32 4294901760, %v89_v14  ;;  %v3855_v18 = vsub.f32 %v113_v0, %v3817_v3  ;;  %v3860_v19 = vld [vmem:[%s6700_s1 + $0x210] sm:$0xff]  ;;  %v3865_v20 = vld [vmem:[%s6700_s1 + $0x1e8] sm:$0xff]  ;;  %v3870_v21 = vld [vmem:[%s6700_s1 + $0x1e0] sm:$0xff] }
   0x5   :  { %6986 = vst [vmem:[#allocation2_spill] sm:$0xff] %v3836_v11  ;;  %159 = vmatpush1.msra.mxu0 %v3819_v4  ;;  %v3874_v22 = vand.u32 4294901760, %v3860_v19  ;;  %v3877_v23 = vsub.f32 %v112_v1, %v3819_v4  ;;  %v3880_v24 = vand.u32 4294901760, %v3865_v20  ;;  %v3883_v25 = vsub.f32 %v107_v2, %v3821_v5  ;;  %v3888_v26 = vld [vmem:[%s6700_s1 + $0x1b8] sm:$0xff]  ;;  %v3893_v27 = vld [vmem:[%s6700_s1 + $0x1b0] sm:$0xff]  ;;  %v3898_v28 = vld [vmem:[%s6700_s1 + $0x188] sm:$0xff] }
   0x6   :  { %6987 = vst [vmem:[#allocation3_spill] sm:$0xff] %v3848_v15  ;;  %6988 = vst [vmem:[#allocation4_spill] sm:$0xff] %v3850_v16  ;;  %161 = vmatprep.subr.mxu0 %v3821_v5  ;;  %v6717_v29 = vand.u32 4294901760, %v3855_v18  ;;  %v3903_v30 = vand.u32 4294901760, %v3870_v21  ;;  %v3906_v31 = vsub.f32 %v106_v6, %v3832_v9  ;;  %v3909_v32 = vand.u32 4294901760, %v3888_v26  ;;  %v3923_v37 = vld [vmem:[%s6700_s1 + $0x180] sm:$0xff] }
   0x7   :  { %6989 = vst [vmem:[#allocation5_spill] sm:$0xff] %v3852_v17  ;;  %6990 = vst [vmem:[#allocation6_spill] sm:$0xff] %v3874_v22  ;;  %163 = vmatpush1.msra.mxu0 %v3832_v9  ;;  %v6716_v33 = vand.u32 4294901760, %v3877_v23  ;;  %v6714_v34 = vand.u32 4294901760, %v3883_v25  ;;  %v3915_v35 = vsub.f32 %v101_v7, %v3834_v10  ;;  %v3918_v36 = vand.u32 4294901760, %v3893_v27  ;;  %v3950_v46 = vld [vmem:[%s6700_s1 + $0x158] sm:$0xff] }
   0x8   :  { %6991 = vst [vmem:[#allocation7_spill] sm:$0xff] %v3880_v24  ;;  %6992 = vst [vmem:[#allocation8_spill] sm:$0xff] %v3903_v30  ;;  %165 = vmatprep.subr.mxu0 %v3834_v10  ;;  %v322_v38 = vsub.f32 %v3855_v18, %v6717_v29  ;;  %v6713_v39 = vand.u32 4294901760, %v3906_v31  ;;  %v3931_v40 = vsub.f32 %v100_v8, %v3836_v11  ;;  %v3934_v41 = vand.u32 4294901760, %v3898_v28  ;;  %v3963_v51 = vld [vmem:[%s6700_s1 + $0x150] sm:$0xff]  ;;  %v3973_v56 = vld [vmem:[%s6700_s1 + $0x128] sm:$0xff] }
   0x9   :  { %6993 = vst [vmem:[#allocation9_spill] sm:$0xff] %v3909_v32  ;;  %6994 = vst [vmem:[#allocation10_spill] sm:$0xff] %v3918_v36  ;;  %167 = vmatpush1.msra.mxu0 %v3836_v11  ;;  %v328_v42 = vsub.f32 %v3877_v23, %v6716_v33  ;;  %v334_v43 = vsub.f32 %v3883_v25, %v6714_v34  ;;  %v6711_v44 = vand.u32 4294901760, %v3915_v35  ;;  %v3958_v50 = vand.u32 4294901760, %v3923_v37  ;;  %v3988_v61 = vld [vmem:[%s6700_s1 + $0x120] sm:$0xff]  ;;  %v4003_v2 = vld [vmem:[%s6700_s1 + $0xf8] sm:$0xff] }
   0xa   :  { %6995 = vst [vmem:[#allocation11_spill] sm:$0xff] %v3934_v41  ;;  %v3945_v45 = vsub.f32 %v95_v12, %v3848_v15  ;;  %169 = vmatprep.subr.mxu0 %v3848_v15  ;;  %v323_v47 = vand.u32 4294901760, %v322_v38  ;;  %v340_v48 = vsub.f32 %v3906_v31, %v6713_v39  ;;  %v6709_v49 = vand.u32 4294901760, %v3931_v40  ;;  %v4139_v33 = vld [vmem:[%s6700_s1 + $0x38] sm:$0xff]  ;;  %s3786_s15 = smov 108   ;;  %s3787_s16 = smov 90  }
   0xb   :  { %6996 = vst [vmem:[#allocation12_spill] sm:$0xff] %v3958_v50  ;;  %171 = vmatpush1.msra.mxu0 %v3850_v16  ;;  %v329_v52 = vand.u32 4294901760, %v328_v42  ;;  %v335_v53 = vand.u32 4294901760, %v334_v43  ;;  %v346_v54 = vsub.f32 %v3915_v35, %v6711_v44  ;;  %v3980_v59 = vsub.f32 %v94_v13, %v3850_v16  ;;  %v4017_v13 = vld [vmem:[%s6700_s1 + $0xf0] sm:$0xff]  ;;  %v4112_v44 = vld [vmem:[%s6700_s1 + $0x68] sm:$0xff] }
   0xc   :  { %v6708_v55 = vand.u32 4294901760, %v3945_v45  ;;  %173 = vmatprep.subr.mxu0 %v3852_v17  ;;  %324 = vmatprep.subr.mxu1 %v323_v47  ;;  %v341_v57 = vand.u32 4294901760, %v340_v48  ;;  %v352_v58 = vsub.f32 %v3931_v40, %v6709_v49  ;;  %v3983_v60 = vand.u32 4294901760, %v3950_v46  ;;  %v4096_v49 = vld [vmem:[%s6700_s1 + $0x90] sm:$0xff] }
   0xd   :  { %175 = vmatpush1.msra.mxu0 %v3874_v22  ;;  %330 = vmatpush1.msra.mxu1 %v329_v52  ;;  %v347_v62 = vand.u32 4294901760, %v346_v54  ;;  %v3995_v0 = vsub.f32 %v89_v14, %v3852_v17  ;;  %v3998_v1 = vand.u32 4294901760, %v3963_v51  ;;  %v6706_v7 = vand.u32 4294901760, %v3980_v59 }
   0xe   :  { %6997 = vst [vmem:[#allocation13_spill] sm:$0xff] %v3983_v60  ;;  %v358_v63 = vsub.f32 %v3945_v45, %v6708_v55  ;;  %177 = vmatprep.subr.mxu0 %v3880_v24  ;;  %336 = vmatprep.subr.mxu1 %v335_v53  ;;  %v353_v6 = vand.u32 4294901760, %v352_v58  ;;  %v4009_v8 = vsub.f32 %v3860_v19, %v3874_v22  ;;  %v4012_v12 = vand.u32 4294901760, %v3973_v56 }
   0xf   :  { %6998 = vst [vmem:[#allocation14_spill] sm:$0xff] %v3998_v1  ;;  %179 = vmatpush1.msra.mxu0 %v3903_v30  ;;  %342 = vmatpush1.msra.mxu1 %v341_v57  ;;  %v6704_v38 = vand.u32 4294901760, %v3995_v0  ;;  %v4023_v42 = vsub.f32 %v3865_v20, %v3880_v24  ;;  %v4026_v19 = vand.u32 4294901760, %v3988_v61  ;;  %v364_v43 = vsub.f32 %v3980_v59, %v6706_v7  ;;  %v4043_v20 = vld [vmem:[%s6700_s1 + $0xc8] sm:$0xff] }
  0x10   :  { %6999 = vst [vmem:[#allocation15_spill] sm:$0xff] %v4012_v12  ;;  %v359_v14 = vand.u32 4294901760, %v358_v63  ;;  %181 = vmatprep.subr.mxu0 %v3909_v32  ;;  %348 = vmatprep.subr.mxu1 %v347_v62  ;;  %v6705_v47 = vand.u32 4294901760, %v4009_v8  ;;  %v4035_v48 = vsub.f32 %v3870_v21, %v3903_v30  ;;  %v4038_v52 = vand.u32 4294901760, %v4003_v2 }
  0x11   :  { %7000 = vst [vmem:[#allocation16_spill] sm:$0xff] %v4026_v19  ;;  %183 = vmatpush1.msra.mxu0 %v3918_v36  ;;  %354 = vmatpush1.msra.mxu1 %v353_v6  ;;  %v370_v53 = vsub.f32 %v3995_v0, %v6704_v38  ;;  %v6707_v54 = vand.u32 4294901760, %v4023_v42  ;;  %v4052_v21 = vsub.f32 %v3888_v26, %v3909_v32  ;;  %v4055_v57 = vand.u32 4294901760, %v4017_v13  ;;  %v4069_v26 = vld [vmem:[%s6700_s1 + $0xc0] sm:$0xff] }
  0x12   :  { %7001 = vst [vmem:[#allocation17_spill] sm:$0xff] %v4038_v52  ;;  %185 = vmatprep.subr.mxu0 %v3934_v41  ;;  %360 = vmatprep.subr.mxu1 %v359_v14  ;;  %v365_v58 = vand.u32 4294901760, %v364_v43  ;;  %v376_v62 = vsub.f32 %v4009_v8, %v6705_v47  ;;  %v6710_v63 = vand.u32 4294901760, %v4035_v48  ;;  %v4064_v6 = vsub.f32 %v3893_v27, %v3918_v36  ;;  %v4082_v27 = vld [vmem:[%s6700_s1 + $0x98] sm:$0xff] }
  0x13   :  { %7002 = vst [vmem:[#allocation18_spill] sm:$0xff] %v4055_v57  ;;  %187 = vmatpush1.msra.mxu0 %v3958_v50  ;;  %v371_v38 = vand.u32 4294901760, %v370_v53  ;;  %v382_v14 = vsub.f32 %v4023_v42, %v6707_v54  ;;  %v6712_v43 = vand.u32 4294901760, %v4052_v21  ;;  %v4077_v47 = vand.u32 4294901760, %v4043_v20 }
  0x14   :  { %366 = vmatpush1.msra.mxu1 %v365_v58  ;;  %189 = vmatprep.subr.mxu0 %v3983_v60  ;;  %v377_v7 = vand.u32 4294901760, %v376_v62  ;;  %v388_v53 = vsub.f32 %v4035_v48, %v6710_v63  ;;  %v6715_v54 = vand.u32 4294901760, %v4064_v6  ;;  %v4091_v55 = vsub.f32 %v3898_v28, %v3934_v41 }
  0x15   :  { %7003 = vst [vmem:[#allocation19_spill] sm:$0xff] %v4077_v47  ;;  %372 = vmatprep.subr.mxu1 %v371_v38  ;;  %191 = vmatpush1.msra.mxu0 %v3998_v1  ;;  %v383_v58 = vand.u32 4294901760, %v382_v14  ;;  %v394_v62 = vsub.f32 %v4052_v21, %v6712_v43  ;;  %v4103_v63 = vand.u32 4294901760, %v4069_v26  ;;  %v4107_v28 = vsub.f32 %v3923_v37, %v3958_v50  ;;  %v4125_v37 = vld [vmem:[%s6700_s1 + $0x60] sm:$0xff] }
  0x16   :  { %7004 = vst [vmem:[#allocation20_spill] sm:$0xff] %v4091_v55  ;;  %378 = vmatpush1.msra.mxu1 %v377_v7  ;;  %193 = vmatprep.subr.mxu0 %v4012_v12  ;;  %v389_v38 = vand.u32 4294901760, %v388_v53  ;;  %v400_v14 = vsub.f32 %v4064_v6, %v6715_v54  ;;  %v6718_v43 = vand.u32 4294901760, %v4091_v55  ;;  %v4120_v39 = vand.u32 4294901760, %v4082_v27 }
  0x17   :  { %7005 = vst [vmem:[#allocation21_spill] sm:$0xff] %v4103_v63  ;;  %7006 = vst [vmem:[#allocation22_spill] sm:$0xff] %v4107_v28  ;;  %384 = vmatprep.subr.mxu1 %v383_v58  ;;  %195 = vmatpush1.msra.mxu0 %v4026_v19  ;;  %v395_v7 = vand.u32 4294901760, %v394_v62  ;;  %v6721_v53 = vand.u32 4294901760, %v4107_v28  ;;  %v4131_v34 = vsub.f32 %v3950_v46, %v3983_v60  ;;  %v4134_v54 = vand.u32 4294901760, %v4096_v49 }
  0x18   :  { %7007 = vst [vmem:[#allocation23_spill] sm:$0xff] %v4120_v39  ;;  %390 = vmatpush1.msra.mxu1 %v389_v38  ;;  %197 = vmatprep.subr.mxu0 %v4038_v52  ;;  %v401_v58 = vand.u32 4294901760, %v400_v14  ;;  %v406_v62 = vsub.f32 %v4091_v55, %v6718_v43  ;;  %v4147_v46 = vsub.f32 %v3963_v51, %v3998_v1  ;;  %v4150_v29 = vand.u32 4294901760, %v4112_v44  ;;  %v4167_v1 = vld [vmem:[%s6700_s1 + $0x30] sm:$0xff] }
  0x19   :  { %7008 = vst [vmem:[#allocation24_spill] sm:$0xff] %v4134_v54  ;;  %396 = vmatprep.subr.mxu1 %v395_v7  ;;  %199 = vmatpush1.msra.mxu0 %v4055_v57  ;;  %v412_v38 = vsub.f32 %v4107_v28, %v6721_v53  ;;  %v4159_v43 = vsub.f32 %v3973_v56, %v4012_v12  ;;  %v4162_v51 = vand.u32 4294901760, %v4125_v37  ;;  %v4176_v56 = vand.u32 4294901760, %v4139_v33  ;;  %v4181_v12 = vld [vmem:[%s6700_s1 + $0x8] sm:$0xff] }
  0x1a   :  { %7009 = vst [vmem:[#allocation25_spill] sm:$0xff] %v4150_v29  ;;  %402 = vmatpush1.msra.mxu1 %v401_v58  ;;  %201 = vmatprep.subr.mxu0 %v4077_v47  ;;  %v407_v7 = vand.u32 4294901760, %v406_v62  ;;  %v4173_v14 = vsub.f32 %v3988_v61, %v4026_v19  ;;  %v7014_v60 = vand.u32 4294901760, %v4131_v34  ;;  %v4190_v61 = vsub.f32 %v4003_v2, %v4038_v52  ;;  %v4207_v2 = vld [vmem:[%s6700_s1] sm:$0xff] }
  0x1b   :  { %7010 = vst [vmem:[#allocation26_spill] sm:$0xff] %v4159_v43  ;;  %7011 = vst [vmem:[#allocation27_spill] sm:$0xff] %v4162_v51  ;;  %203 = vmatpush1.msra.mxu0 %v4103_v63  ;;  %v413_v58 = vand.u32 4294901760, %v412_v38  ;;  %v6738_v53 = vand.u32 4294901760, %v4159_v43  ;;  %v7016_v19 = vand.u32 4294901760, %v4147_v46  ;;  %v4198_v38 = vand.u32 4294901760, %v4167_v1 }
  0x1c   :  { %7012 = vst [vmem:[#allocation28_spill] sm:$0xff] %v4173_v14  ;;  %7013 = vst [vmem:[#allocation29_spill] sm:$0xff] %v4176_v56  ;;  %v418_v62 = vsub.f32 %v4131_v34, %v7014_v60  ;;  %408 = vmatprep.subr.mxu1 %v407_v7  ;;  %205 = vmatprep.subr.mxu0 %v4120_v39  ;;  %v4202_v60 = vsub.f32 %v4017_v13, %v4055_v57  ;;  %v4215_v52 = vand.u32 4294901760, %v4181_v12  ;;  %v119_v13 = vld [vmem:[%s6700_s1 + $0x308] sm:$0xf] }
  0x1d   :  { %7015 = vst [vmem:[#allocation30_spill] sm:$0xff] %v4190_v61  ;;  %v424_v50 = vsub.f32 %v4147_v46, %v7016_v19  ;;  %7017 = vst [vmem:[#allocation31_spill] sm:$0xff] %v4198_v38  ;;  %414 = vmatpush1.msra.mxu1 %v413_v58  ;;  %207 = vmatpush1.msra.mxu0 %v4134_v54  ;;  %v430_v19 = vsub.f32 %v4159_v43, %v6738_v53  ;;  %v7020_v58 = vand.u32 4294901760, %v4173_v14 }
  0x1e   :  { %7018 = vst [vmem:[#allocation32_spill] sm:$0xff] %v4202_v60  ;;  %v419_v7 = vand.u32 4294901760, %v418_v62  ;;  %7019 = vst [vmem:[#allocation33_spill] sm:$0xff] %v4215_v52  ;;  %209 = vmatprep.subr.mxu0 %v4150_v29  ;;  %v6747_v36 = vand.u32 4294901760, %v4202_v60  ;;  %v4227_v53 = vsub.f32 %v4043_v20, %v4077_v47  ;;  %v7022_v32 = vand.u32 4294901760, %v4190_v61 }
  0x1f   :  { %v425_v57 = vand.u32 4294901760, %v424_v50  ;;  %v436_v62 = vsub.f32 %v4173_v14, %v7020_v58  ;;  %v431_v41 = vand.u32 4294901760, %v430_v19  ;;  %211 = vmatpush1.msra.mxu0 %v4162_v51  ;;  %v4234_v30 = vand.u32 4294901760, %v4207_v2  ;;  %v118_v20 = vld [vmem:[%s6700_s1 + $0x300] sm:$0xf] }
  0x20   :  { %7021 = vst [vmem:[#allocation34_spill] sm:$0xff] %v4227_v53  ;;  %420 = vmatprep.subr.mxu1 %v419_v7  ;;  %v442_v50 = vsub.f32 %v4190_v61, %v7022_v32  ;;  %v4238_v58 = vsub.f32 %v4069_v26, %v4103_v63  ;;  %213 = vmatprep.subr.mxu0 %v4176_v56  ;;  %v6750_v32 = vand.u32 4294901760, %v4227_v53  ;;  %v4249_v47 = vsel %vm137_vm0, %v119_v13, 0  ;;  %v15_v26 = vld [vmem:[%s6701_s0 + $0x8] sm:$0xff] }
  0x21   :  { %7023 = vst [vmem:[#allocation35_spill] sm:$0xff] %v4234_v30  ;;  %426 = vmatpush1.msra.mxu1 %v425_v57  ;;  %v437_v7 = vand.u32 4294901760, %v436_v62  ;;  %v448_v19 = vsub.f32 %v4202_v60, %v6747_v36  ;;  %215 = vmatpush1.msra.mxu0 %v4198_v38  ;;  %v4257_v62 = vand.u32 4294901760, %v4249_v47  ;;  %v4261_v36 = vsub.f32 %v4082_v27, %v4120_v39  ;;  %v14_v60 = vld [vmem:[%s6701_s0] sm:$0xff] }
  0x22   :  { %432 = vmatprep.subr.mxu1 %v431_v41  ;;  %v443_v63 = vand.u32 4294901760, %v442_v50  ;;  %217 = vmatprep.subr.mxu0 %v4215_v52  ;;  %v454_v41 = vsub.f32 %v4227_v53, %v6750_v32  ;;  %v139_v50 = vsel %vm137_vm0, %v118_v20, 0  ;;  %v4270_v57 = vsub.f32 %v4096_v49, %v4134_v54 }
  0x23   :  { %7024 = vst [vmem:[#allocation36_spill] sm:$0xff] %v4261_v36  ;;  %438 = vmatpush1.msra.mxu1 %v437_v7  ;;  %v449_v13 = vand.u32 4294901760, %v448_v19  ;;  %219 = vmatpush1.msra.mxu0 %v4234_v30  ;;  %v7025_v27 = vand.u32 4294901760, %v4238_v58  ;;  %v6757_v19 = vand.u32 4294901760, %v4261_v36  ;;  %v4280_v32 = vand.u32 4294901760, %v139_v50 }
  0x24   :  { %444 = vmatprep.subr.mxu1 %v443_v63  ;;  %v126_v20 = vsel %vm124_vm1, %v15_v26, 0  ;;  %v455_v49 = vand.u32 4294901760, %v454_v41  ;;  %251 = vmatprep.subr.mxu0 %v4257_v62  ;;  %v6760_v54 = vand.u32 4294901760, %v4270_v57  ;;  %v4289_v63 = vsub.f32 %v4112_v44, %v4150_v29 }
  0x25   :  { %v460_v7 = vsub.f32 %v4238_v58, %v7025_v27  ;;  %450 = vmatpush1.msra.mxu1 %v449_v13  ;;  %v4285_v39 = vand.u32 4294901760, %v126_v20  ;;  %v466_v27 = vsub.f32 %v4261_v36, %v6757_v19  ;;  %253 = vmatpush2.msra.mxu0 %v4280_v32  ;;  %v4295_v26 = vand.u32 4294901760, %v14_v60 }
  0x26   :  { %v4299_v13 = vsub.f32 %v4125_v37, %v4162_v51  ;;  %456 = vmatprep.subr.mxu1 %v455_v49  ;;  %v472_v41 = vsub.f32 %v4270_v57, %v6760_v54  ;;  %588 = vmatprep.subr.mxu0 %v3855_v18  ;;  %v4311_v19 = vsub.f32 %v4139_v33, %v4176_v56  ;;  %v7031_v33 = vand.u32 4294901760, %v4289_v63 }
  0x27   :  { %7026 = vst [vmem:[#allocation37_spill] sm:$0xff] %v4285_v39  ;;  %v461_v53 = vand.u32 4294901760, %v460_v7  ;;  %7027 = vst [vmem:[#allocation38_spill] sm:$0xff] %v4295_v26  ;;  %v4305_v44 = vsub.f32 %v126_v20, %v4285_v39  ;;  %v467_v29 = vand.u32 4294901760, %v466_v27  ;;  %v4314_v37 = vsub.f32 %v14_v60, %v4295_v26  ;;  %554 = vmatprep.mubr.f32.mxu1 %v4285_v39 }
  0x28   :  { %v6767_v49 = vand.u32 4294901760, %v4299_v13  ;;  %v4319_v54 = vsub.f32 %v4167_v1, %v4198_v38  ;;  %v473_v20 = vand.u32 4294901760, %v472_v41  ;;  %v6772_v27 = vand.u32 4294901760, %v4311_v19 }
  0x29   :  { %7028 = vst [vmem:[#allocation39_spill] sm:$0xff] %v4305_v44  ;;  %462 = vmatpush1.msra.mxu1 %v461_v53  ;;  %7029 = vst [vmem:[#allocation40_spill] sm:$0xff] %v4314_v37  ;;  %v4323_v7 = vand.u32 4294901760, %v4305_v44  ;;  %v478_v53 = vsub.f32 %v4289_v63, %v7031_v33  ;;  %v4330_v60 = vand.u32 4294901760, %v4314_v37  ;;  %v4338_v41 = vsub.f32 %v4181_v12, %v4215_v52 }
  0x2a   :  { %468 = vmatprep.subr.mxu1 %v467_v29  ;;  %v484_v1 = vsub.f32 %v4299_v13, %v6767_v49  ;;  %v490_v29 = vsub.f32 %v4311_v19, %v6772_v27  ;;  %v4347_v56 = vsub.f32 %v4207_v2, %v4234_v30  ;;  %v7033_v12 = vand.u32 4294901760, %v4319_v54 }
  0x2b   :  { %7030 = vst [vmem:[#allocation41_spill] sm:$0xff] %v4323_v7  ;;  %7032 = vst [vmem:[#allocation42_spill] sm:$0xff] %v4330_v60  ;;  %474 = vmatpush1.msra.mxu1 %v473_v20  ;;  %v257_v33 = vsub.f32 %v4305_v44, %v4323_v7  ;;  %v479_v38 = vand.u32 4294901760, %v478_v53  ;;  %v263_v49 = vsub.f32 %v4314_v37, %v4330_v60  ;;  %v6781_v52 = vand.u32 4294901760, %v4338_v41  ;;  %v17_v53 = vld [vmem:[%s6701_s0 + $0x18] sm:$0xff] }
  0x2c   :  { %v485_v39 = vand.u32 4294901760, %v484_v1  ;;  %v496_v20 = vsub.f32 %v4319_v54, %v7033_v12  ;;  %v491_v27 = vand.u32 4294901760, %v490_v29  ;;  %v6779_v2 = vand.u32 4294901760, %v4347_v56 }
  0x2d   :  { %v4358_v7 = vand.u32 4294901760, %v257_v33  ;;  %480 = vmatprep.subr.mxu1 %v479_v38  ;;  %v4363_v60 = vsub.f32 %v4249_v47, %v4257_v62  ;;  %v4365_v1 = vand.u32 4294901760, %v263_v49  ;;  %v502_v30 = vsub.f32 %v4338_v41, %v6781_v52  ;;  %v18_v52 = vld [vmem:[%s6701_s0 + $0x20] sm:$0xff] }
  0x2e   :  { %486 = vmatpush1.msra.mxu1 %v485_v39  ;;  %v497_v12 = vand.u32 4294901760, %v496_v20  ;;  %v4371_v51 = vsub.f32 %v139_v50, %v4280_v32  ;;  %v508_v38 = vsub.f32 %v4347_v56, %v6779_v2  ;;  %v129_v49 = vsel %vm124_vm1, %v17_v53, 0  ;;  %v16_v39 = vld [vmem:[%s6701_s0 + $0x10] sm:$0xff] }
  0x2f   :  { %7034 = vst [vmem:[#allocation43_spill] sm:$0xff] %v4358_v7  ;;  %7035 = vst [vmem:[#allocation44_spill] sm:$0xff] %v4365_v1  ;;  %259 = vmatprep.mubr.f32.mxu0 %v4358_v7  ;;  %492 = vmatprep.subr.mxu1 %v491_v27  ;;  %v6780_v47 = vand.u32 4294901760, %v4363_v60  ;;  %v503_v50 = vand.u32 4294901760, %v502_v30  ;;  %v19_v27 = vld [vmem:[%s6701_s0 + $0x28] sm:$0xff]  ;;  %v4391_v53 = vand.u32 4294901760, %v129_v49 }
  0x30   :  { %7036 = vst [vmem:[#allocation45_spill] sm:$0xff] %v4371_v51  ;;  %265 = vmatmul.mubr.f32.vlgmr.msra.gmra.mxu0 %v4365_v1  ;;  %498 = vmatpush1.msra.mxu1 %v497_v12  ;;  %v6782_v33 = vand.u32 4294901760, %v4371_v51  ;;  %v509_v29 = vand.u32 4294901760, %v508_v38  ;;  %v4397_v12 = vand.u32 4294901760, %v16_v39  ;;  %v132_v38 = vsel %vm124_vm1, %v19_v27, 0 }
  0x31   :  { %591 = vmatpush1.msra.mxu0 %v3877_v23  ;;  %v544_v20 = vsub.f32 %v4363_v60, %v6780_v47  ;;  %7037 = vst [vmem:[#allocation46_spill] sm:$0xff] %v4391_v53  ;;  %504 = vmatprep.subr.mxu1 %v503_v50  ;;  %v4407_v50 = vsub.f32 %v129_v49, %v4391_v53  ;;  %v4413_v27 = vand.u32 4294901760, %v132_v38 }
  0x32   :  { %594 = vmatprep.subr.mxu0 %v3883_v25  ;;  %v550_v30 = vsub.f32 %v4371_v51, %v6782_v33  ;;  %7038 = vst [vmem:[#allocation47_spill] sm:$0xff] %v4397_v12  ;;  %510 = vmatpush1.msra.mxu1 %v509_v29  ;;  %v4411_v29 = vsub.f32 %v16_v39, %v4397_v12  ;;  %v20_v33 = vld [vmem:[%s6701_s0 + $0x30] sm:$0xff] }
  0x33   :  { %597 = vmatpush1.msra.mxu0 %v3906_v31  ;;  %v545_v2 = vand.u32 4294901760, %v544_v20  ;;  %7039 = vst [vmem:[#allocation48_spill] sm:$0xff] %v4407_v50  ;;  %7041 = vst [vmem:[#allocation50_spill] sm:$0xff] %v4413_v27  ;;  %v21_v20 = vld [vmem:[%s6701_s0 + $0x38] sm:$0xff]  ;;  %v4454_v7 = vand.u32 4294901760, %v20_v33  ;;  %s3785_s0 = smov 91  }
  0x34   :  { %600 = vmatprep.subr.mxu0 %v3915_v35  ;;  %v551_v47 = vand.u32 4294901760, %v550_v30  ;;  %7040 = vst [vmem:[#allocation49_spill] sm:$0xff] %v4411_v29  ;;  %v135_v49 = vsel %vm124_vm1, %v21_v20, 0  ;;  %v4433_v39 = vand.u32 4294901760, %v4411_v29  ;;  %v4436_v30 = vsub.f32 %v132_v38, %v4413_v27 }
  0x35   :  { %603 = vmatpush1.msra.mxu0 %v3931_v40  ;;  %546 = vmatprep.subr.mxu1 %v545_v2  ;;  %v4420_v2 = vand.u32 4294901760, %v18_v52  ;;  %v4448_v1 = vand.u32 4294901760, %v135_v49  ;;  %7048 = vst [vmem:[#allocation57_spill] sm:$0xff] %v4454_v7 }
  0x36   :  { %606 = vmatprep.subr.mxu0 %v3945_v45  ;;  %552 = vmatpush2.msra.mxu1 %v551_v47  ;;  %v4427_v47 = vand.u32 4294901760, %v4407_v50  ;;  %7044 = vst [vmem:[#allocation53_spill] sm:$0xff] %v4433_v39  ;;  %7045 = vst [vmem:[#allocation54_spill] sm:$0xff] %v4436_v30 }
  0x37   :  { %609 = vmatpush1.msra.mxu0 %v3980_v59  ;;  %556 = vmatmul.mubr.f32.vlgmr.msra.gmra.mxu1 %v4295_v26  ;;  %7042 = vst [vmem:[#allocation51_spill] sm:$0xff] %v4420_v2  ;;  %v4444_v20 = vsub.f32 %v18_v52, %v4420_v2  ;;  %7047 = vst [vmem:[#allocation56_spill] sm:$0xff] %v4448_v1  ;;  %v279_v52 = vsub.f32 %v4411_v29, %v4433_v39  ;;  %v4461_v26 = vand.u32 4294901760, %v4436_v30 }
  0x38   :  { %612 = vmatprep.subr.mxu0 %v3995_v0  ;;  %760 = vmatprep.subr.mxu1 %v3817_v3  ;;  %7043 = vst [vmem:[#allocation52_spill] sm:$0xff] %v4427_v47  ;;  %v273_v38 = vsub.f32 %v4407_v50, %v4427_v47 }
  0x39   :  { %615 = vmatpush1.msra.mxu0 %v4009_v8  ;;  %762 = vmatpush1.msra.mxu1 %v3819_v4  ;;  %7046 = vst [vmem:[#allocation55_spill] sm:$0xff] %v4444_v20  ;;  %7049 = vst [vmem:[#allocation58_spill] sm:$0xff] %v4461_v26 }
  0x3a   :  { %618 = vmatprep.subr.mxu0 %v4023_v42  ;;  %764 = vmatprep.subr.mxu1 %v3821_v5 }
  0x3b   :  { %621 = vmatpush1.msra.mxu0 %v4035_v48  ;;  %766 = vmatpush1.msra.mxu1 %v3832_v9 }
  0x3c   :  { %624 = vmatprep.subr.mxu0 %v4052_v21  ;;  %768 = vmatprep.subr.mxu1 %v3834_v10 }
  0x3d   :  { %627 = vmatpush1.msra.mxu0 %v4064_v6  ;;  %770 = vmatpush1.msra.mxu1 %v3836_v11  ;;  %v4466_v11 = vand.u32 4294901760, %v4444_v20 }
  0x3e   :  { %630 = vmatprep.subr.mxu0 %v4091_v55  ;;  %772 = vmatprep.subr.mxu1 %v3848_v15  ;;  %v4471_v55 = vsub.f32 %v135_v49, %v4448_v1  ;;  %v4475_v15 = vand.u32 4294901760, %v273_v38  ;;  %v7055_v49 = vld [vmem:[#allocation8_spill] sm:$0xff] }
  0x3f   :  { %633 = vmatpush1.msra.mxu0 %v4107_v28  ;;  %774 = vmatpush1.msra.mxu1 %v3850_v16  ;;  %7050 = vst [vmem:[#allocation59_spill] sm:$0xff] %v4466_v11  ;;  %v4478_v28 = vsub.f32 %v20_v33, %v4454_v7  ;;  %v4482_v16 = vand.u32 4294901760, %v279_v52  ;;  %v295_v38 = vsub.f32 %v4444_v20, %v4466_v11  ;;  %v7056_v33 = vld [vmem:[#allocation9_spill] sm:$0xff]  ;;  %v7058_v52 = vld [vmem:[#allocation32_spill] sm:$0xff] }
  0x40   :  { %636 = vmatprep.subr.mxu0 %v4131_v34  ;;  %776 = vmatprep.subr.mxu1 %v3852_v17  ;;  %7051 = vst [vmem:[#allocation60_spill] sm:$0xff] %v4471_v55  ;;  %7052 = vst [vmem:[#allocation61_spill] sm:$0xff] %v4475_v15  ;;  %v289_v17 = vsub.f32 %v4436_v30, %v4461_v26 }
  0x41   :  { %639 = vmatpush1.msra.mxu0 %v4147_v46  ;;  %778 = vmatpush1.msra.mxu1 %v3874_v22  ;;  %7053 = vst [vmem:[#allocation62_spill] sm:$0xff] %v4478_v28  ;;  %7054 = vst [vmem:[#allocation63_spill] sm:$0xff] %v4482_v16  ;;  %v7062_v22 = vld [vmem:[#allocation34_spill] sm:$0xff] }
  0x42   :  { %642 = vmatprep.subr.mxu0 %v4159_v43  ;;  %780 = vmatprep.subr.mxu1 %v3880_v24  ;;  %v4493_v43 = vand.u32 4294901760, %v4471_v55  ;;  %v4498_v24 = vand.u32 4294901760, %v4478_v28 }
  0x43   :  { %645 = vmatpush1.msra.mxu0 %v4173_v14  ;;  %782 = vmatpush1.msra.mxu1 %v7055_v49  ;;  %v7060_v14 = vld [vmem:[#allocation10_spill] sm:$0xff]  ;;  %v4502_v49 = vand.u32 4294901760, %v289_v17 }
  0x44   :  { %648 = vmatprep.subr.mxu0 %v4190_v61  ;;  %784 = vmatprep.subr.mxu1 %v7056_v33  ;;  %7057 = vst [vmem:[#allocation64_spill] sm:$0xff] %v4493_v43  ;;  %7059 = vst [vmem:[#allocation65_spill] sm:$0xff] %v4498_v24  ;;  %v7063_v61 = vld [vmem:[#allocation11_spill] sm:$0xff]  ;;  %v4506_v33 = vand.u32 4294901760, %v295_v38  ;;  %v311_v17 = vsub.f32 %v4478_v28, %v4498_v24  ;;  %v7067_v38 = vld [vmem:[#allocation14_spill] sm:$0xff] }
  0x45   :  { %275 = vmatprep.mubr.f32.mxu0 %v4475_v15  ;;  %651 = vmatpush1.msra.mxu0 %v7058_v52  ;;  %7061 = vst [vmem:[#allocation66_spill] sm:$0xff] %v4502_v49  ;;  %v7065_v15 = vld [vmem:[#allocation12_spill] sm:$0xff]  ;;  %v305_v52 = vsub.f32 %v4471_v55, %v4493_v43 }
  0x46   :  { %786 = vmatpush1.msra.mxu1 %v7060_v14  ;;  %281 = vmatmul.mubr.f32.gmra.mxu0 %v4482_v16  ;;  %7064 = vst [vmem:[#allocation34_spill] sm:$0xff] %v4506_v33  ;;  %v7066_v14 = vld [vmem:[#allocation13_spill] sm:$0xff] }
  0x47   :  { %654 = vmatprep.subr.mxu0 %v7062_v22  ;;  %788 = vmatprep.subr.mxu1 %v7063_v61  ;;  %v4522_v16 = vand.u32 4294901760, %v305_v52  ;;  %v7073_v52 = vld [vmem:[#allocation18_spill] sm:$0xff] }
  0x48   :  { %657 = vmatpush1.msra.mxu0 %v4238_v58  ;;  %790 = vmatpush1.msra.mxu1 %v7065_v15 }
  0x49   :  { %660 = vmatprep.subr.mxu0 %v4261_v36  ;;  %792 = vmatprep.subr.mxu1 %v7066_v14  ;;  %7068 = vst [vmem:[#allocation11_spill] sm:$0xff] %v4522_v16  ;;  %v7069_v36 = vld [vmem:[#allocation15_spill] sm:$0xff]  ;;  %v4526_v14 = vand.u32 4294901760, %v311_v17 }
  0x4a   :  { %291 = vmatprep.mubr.f32.mxu0 %v4502_v49  ;;  %663 = vmatpush1.msra.mxu0 %v4270_v57  ;;  %v7071_v49 = vld [vmem:[#allocation16_spill] sm:$0xff]  ;;  %v7074_v17 = vld [vmem:[#allocation19_spill] sm:$0xff] }
  0x4b   :  { %794 = vmatpush1.msra.mxu1 %v7067_v38  ;;  %297 = vmatmul.mubr.f32.gmra.mxu0 %v4506_v33  ;;  %7070 = vst [vmem:[#allocation12_spill] sm:$0xff] %v4526_v14  ;;  %v7072_v38 = vld [vmem:[#allocation17_spill] sm:$0xff] }
  0x4c   :  { %562 = vmatprep.mubr.f32.mxu1 %v4391_v53  ;;  %666 = vmatprep.subr.mxu0 %v4289_v63  ;;  %v7075_v33 = vld [vmem:[#allocation21_spill] sm:$0xff]  ;;  %v7081_v53 = vand.u32 4294901760, %v3877_v23  ;;  %v7088_v23 = vld [vmem:[#allocation35_spill] sm:$0xff] }
  0x4d   :  { %796 = vmatprep.subr.mxu1 %v7069_v36  ;;  %564 = vmatmul.mubr.f32.gmra.mxu1 %v4397_v12  ;;  %v7080_v12 = vld [vmem:[#allocation27_spill] sm:$0xff] }
  0x4e   :  { %669 = vmatpush1.msra.mxu0 %v4299_v13  ;;  %798 = vmatpush1.msra.mxu1 %v7071_v49 }
  0x4f   :  { %672 = vmatprep.subr.mxu0 %v4311_v19  ;;  %800 = vmatprep.subr.mxu1 %v7072_v38 }
  0x50   :  { %307 = vmatprep.mubr.f32.mxu0 %v4522_v16  ;;  %675 = vmatpush1.msra.mxu0 %v4319_v54  ;;  %v7076_v16 = vld [vmem:[#allocation23_spill] sm:$0xff] }
  0x51   :  { %802 = vmatpush1.msra.mxu1 %v7073_v52  ;;  %313 = vmatmul.mubr.f32.gmra.mxu0 %v4526_v14  ;;  %v7077_v14 = vld [vmem:[#allocation24_spill] sm:$0xff] }
  0x52   :  { %570 = vmatprep.mubr.f32.mxu1 %v4413_v27  ;;  %678 = vmatprep.subr.mxu0 %v4338_v41  ;;  %v7078_v27 = vld [vmem:[#allocation25_spill] sm:$0xff] }
  0x53   :  { %804 = vmatprep.subr.mxu1 %v7074_v17  ;;  %572 = vmatmul.mubr.f32.gmra.mxu1 %v4420_v2  ;;  %v7079_v2 = vand.u32 4294901760, %v3855_v18  ;;  %v7086_v18 = vld [vmem:[#allocation33_spill] sm:$0xff] }
  0x54   :  { %681 = vmatpush1.msra.mxu0 %v4347_v56  ;;  %806 = vmatpush1.msra.mxu1 %v7075_v33 }
  0x55   :  { %714 = vmatprep.subr.mxu0 %v4363_v60  ;;  %808 = vmatprep.subr.mxu1 %v7076_v16 }
  0x56   :  { %717 = vmatpush2.msra.mxu0 %v4371_v51  ;;  %720 = vmatprep.mubr.f32.mxu0 %v4305_v44  ;;  %v7082_v51 = vld [vmem:[#allocation29_spill] sm:$0xff]  ;;  %v7083_v44 = vand.u32 4294901760, %v3883_v25  ;;  %v7090_v25 = vand.u32 4294901760, %v3945_v45  ;;  %v7095_v45 = vand.u32 4294901760, %v4009_v8 }
  0x57   :  { %810 = vmatpush1.msra.mxu1 %v7077_v14  ;;  %578 = vmatprep.mubr.f32.mxu1 %v4448_v1  ;;  %v7085_v1 = vand.u32 4294901760, %v3906_v31  ;;  %v7091_v31 = vld [vmem:[#allocation41_spill] sm:$0xff] }
  0x58   :  { %723 = vmatmul.mubr.f32.vlgmr.msra.gmra.mxu0 %v4314_v37  ;;  %812 = vmatprep.subr.mxu1 %v7078_v27  ;;  %v7084_v37 = vld [vmem:[#allocation31_spill] sm:$0xff] }
  0x59   :  { %909 = vmatprep.subr.mxu0 %v7079_v2  ;;  %580 = vmatmul.mubr.f32.gmra.mxu1 %v4454_v7  ;;  %v7087_v2 = vand.u32 4294901760, %v3915_v35  ;;  %v7093_v35 = vld [vmem:[#allocation42_spill] sm:$0xff] }
  0x5a   :  { %814 = vmatpush1.msra.mxu1 %v7080_v12  ;;  %913 = vmatpush1.msra.mxu0 %v7081_v53  ;;  %v7089_v53 = vand.u32 4294901760, %v3931_v40  ;;  %v7094_v40 = vand.u32 4294901760, %v3995_v0  ;;  %v7101_v0 = vld [vmem:[#allocation20_spill] sm:$0xff] }
  0x5b   :  { %816 = vmatprep.subr.mxu1 %v7082_v51  ;;  %917 = vmatprep.subr.mxu0 %v7083_v44  ;;  %v7092_v44 = vand.u32 4294901760, %v3980_v59  ;;  %v7097_v59 = vand.u32 4294901760, %v4035_v48  ;;  %v7102_v8 = vand.u32 4294901760, %v7101_v0  ;;  %v7122_v0 = vld [vmem:[#allocation10_spill] sm:$0xff] }
  0x5c   :  { %730 = vmatprep.mubr.f32.mxu0 %v4407_v50  ;;  %818 = vmatpush1.msra.mxu1 %v7084_v37 }
  0x5d   :  { %921 = vmatpush1.msra.mxu0 %v7085_v1  ;;  %820 = vmatprep.subr.mxu1 %v7086_v18  ;;  %v7096_v1 = vand.u32 4294901760, %v4023_v42  ;;  %v7103_v42 = vld [vmem:[#allocation3_spill] sm:$0xff] }
  0x5e   :  { %733 = vmatmul.mubr.f32.gmra.mxu0 %v4411_v29  ;;  %925 = vmatprep.subr.mxu0 %v7087_v2  ;;  %v7106_v2 = vld [vmem:[#allocation4_spill] sm:$0xff] }
  0x5f   :  { %822 = vmatpush1.msra.mxu1 %v7088_v23  ;;  %929 = vmatpush1.msra.mxu0 %v7089_v53  ;;  %v7110_v53 = vld [vmem:[#allocation6_spill] sm:$0xff] }
  0x60   :  { %854 = vmatprep.subr.mxu1 %v4257_v62  ;;  %933 = vmatprep.subr.mxu0 %v7090_v25  ;;  %v7111_v25 = vld [vmem:[#allocation26_spill] sm:$0xff] }
  0x61   :  { %740 = vmatprep.mubr.f32.mxu0 %v4436_v30  ;;  %856 = vmatpush2.msra.mxu1 %v4280_v32 }
  0x62   :  { %860 = vmatprep.mubr.f32.mxu1 %v7091_v31  ;;  %937 = vmatpush1.msra.mxu0 %v7092_v44  ;;  %v7112_v44 = vand.u32 4294901760, %v7111_v25  ;;  %v7130_v25 = vand.u32 4294901760, %v4289_v63  ;;  %v102_v63 = vld [vmem:[%s6700_s1 + $0x280] sm:$0xff] }
  0x63   :  { %743 = vmatmul.mubr.f32.gmra.mxu0 %v4444_v20  ;;  %864 = vmatmul.mubr.f32.vlgmr.msra.gmra.mxu1 %v7093_v35 }
  0x64   :  { %941 = vmatprep.subr.mxu0 %v7094_v40  ;;  %1106 = vmatprep.subr.mxu1 %v3817_v3  ;;  %v7098_v3 = vand.u32 4294901760, %v4052_v21  ;;  %v7107_v21 = vand.u32 4294901760, %v4131_v34  ;;  %v7113_v40 = vld [vmem:[#allocation7_spill] sm:$0xff]  ;;  %v7116_v34 = vld [vmem:[#allocation8_spill] sm:$0xff] }
  0x65   :  { %945 = vmatpush1.msra.mxu0 %v7095_v45  ;;  %1108 = vmatpush1.msra.mxu1 %v3819_v4  ;;  %v7099_v4 = vand.u32 4294901760, %v4064_v6  ;;  %v7109_v6 = vand.u32 4294901760, %v4147_v46  ;;  %v7114_v45 = vld [vmem:[#allocation28_spill] sm:$0xff]  ;;  %v7119_v46 = vld [vmem:[#allocation9_spill] sm:$0xff] }
  0x66   :  { %949 = vmatprep.subr.mxu0 %v7096_v1  ;;  %1110 = vmatprep.subr.mxu1 %v3821_v5  ;;  %v7100_v5 = vld [vmem:[#allocation2_spill] sm:$0xff]  ;;  %v7115_v1 = vand.u32 4294901760, %v7114_v45 }
  0x67   :  { %750 = vmatprep.mubr.f32.mxu0 %v4471_v55  ;;  %872 = vmatprep.mubr.f32.mxu1 %v4427_v47 }
  0x68   :  { %953 = vmatpush1.msra.mxu0 %v7097_v59  ;;  %1112 = vmatpush1.msra.mxu1 %v3832_v9  ;;  %v7104_v9 = vld [vmem:[#allocation22_spill] sm:$0xff] }
  0x69   :  { %753 = vmatmul.mubr.f32.gmra.mxu0 %v4478_v28  ;;  %876 = vmatmul.mubr.f32.gmra.mxu1 %v4433_v39  ;;  %v7105_v48 = vand.u32 4294901760, %v7104_v9  ;;  %v7117_v59 = vld [vmem:[#allocation30_spill] sm:$0xff]  ;;  %v115_v9 = vld [vmem:[%s6700_s1 + $0x2e8] sm:$0xff] }
  0x6a   :  { %957 = vmatprep.subr.mxu0 %v7098_v3  ;;  %1114 = vmatprep.subr.mxu1 %v3834_v10  ;;  %v7108_v10 = vld [vmem:[#allocation5_spill] sm:$0xff]  ;;  %v7118_v3 = vand.u32 4294901760, %v7117_v59  ;;  %v7134_v59 = vand.u32 4294901760, %v4338_v41  ;;  %v90_v41 = vld [vmem:[%s6700_s1 + $0x220] sm:$0xff] }
  0x6b   :  { %961 = vmatpush1.msra.mxu0 %v7099_v4  ;;  %1116 = vmatpush1.msra.mxu1 %v7100_v5  ;;  %v7120_v4 = vld [vmem:[#allocation32_spill] sm:$0xff] }
  0x6c   :  { %965 = vmatprep.subr.mxu0 %v7102_v8  ;;  %1118 = vmatprep.subr.mxu1 %v7103_v42  ;;  %v7121_v5 = vand.u32 4294901760, %v7120_v4  ;;  %v114_v8 = vld [vmem:[%s6700_s1 + $0x2e0] sm:$0xff]  ;;  %v7123_v42 = vand.u32 4294901760, %v7062_v22  ;;  %v109_v22 = vld [vmem:[%s6700_s1 + $0x2b8] sm:$0xff]  ;;  %v7137_v4 = vand.u32 4294901760, %v4363_v60 }
  0x6d   :  { %884 = vmatprep.mubr.f32.mxu1 %v4461_v26  ;;  %969 = vmatpush1.msra.mxu0 %v7105_v48  ;;  %v7124_v48 = vand.u32 4294901760, %v4238_v58  ;;  %v7128_v58 = vand.u32 4294901760, %v4270_v57  ;;  %v4667_v57 = vand.u32 4294901760, %v109_v22 }
  0x6e   :  { %1120 = vmatpush1.msra.mxu1 %v7106_v2  ;;  %973 = vmatprep.subr.mxu0 %v7107_v21  ;;  %v7125_v2 = vld [vmem:[#allocation36_spill] sm:$0xff] }
  0x6f   :  { %888 = vmatmul.mubr.f32.gmra.mxu1 %v4466_v11  ;;  %1122 = vmatprep.subr.mxu1 %v7108_v10  ;;  %v7126_v21 = vand.u32 4294901760, %v7125_v2  ;;  %v7127_v10 = vld [vmem:[#allocation13_spill] sm:$0xff]  ;;  %v7143_v2 = vld [vmem:[#allocation38_spill] sm:$0xff] }
  0x70   :  { %977 = vmatpush1.msra.mxu0 %v7109_v6  ;;  %1124 = vmatpush1.msra.mxu1 %v7110_v53  ;;  %v4645_v6 = vand.u32 4294901760, %v114_v8  ;;  %v7129_v53 = vld [vmem:[#allocation14_spill] sm:$0xff] }
  0x71   :  { %981 = vmatprep.subr.mxu0 %v7112_v44  ;;  %1126 = vmatprep.subr.mxu1 %v7113_v40  ;;  %v103_v44 = vld [vmem:[%s6700_s1 + $0x288] sm:$0xff]  ;;  %v7131_v40 = vand.u32 4294901760, %v4299_v13  ;;  %v7133_v13 = vand.u32 4294901760, %v4319_v54  ;;  %v4697_v54 = vand.u32 4294901760, %v102_v63 }
  0x72   :  { %896 = vmatprep.mubr.f32.mxu1 %v4493_v43  ;;  %985 = vmatpush1.msra.mxu0 %v7115_v1  ;;  %v7132_v1 = vand.u32 4294901760, %v4311_v19  ;;  %v96_v19 = vld [vmem:[%s6700_s1 + $0x250] sm:$0xff]  ;;  %v7156_v43 = vld [vmem:[#allocation50_spill] sm:$0xff] }
  0x73   :  { %1128 = vmatpush1.msra.mxu1 %v7116_v34  ;;  %989 = vmatprep.subr.mxu0 %v7118_v3  ;;  %v97_v34 = vld [vmem:[%s6700_s1 + $0x258] sm:$0xff]  ;;  %7135 = vst [vmem:[#allocation15_spill] sm:$0xff] %v4697_v54 }
  0x74   :  { %900 = vmatmul.mubr.f32.gmra.mxu1 %v4498_v24  ;;  %1130 = vmatprep.subr.mxu1 %v7119_v46  ;;  %v91_v46 = vld [vmem:[%s6700_s1 + $0x228] sm:$0xff] }
  0x75   :  { %993 = vmatpush1.msra.mxu0 %v7121_v5  ;;  %1132 = vmatpush1.msra.mxu1 %v7122_v0  ;;  %v84_v0 = vld [vmem:[%s6700_s1 + $0x1f0] sm:$0xff] }
  0x76   :  { %997 = vmatprep.subr.mxu0 %v7123_v42  ;;  %1134 = vmatprep.subr.mxu1 %v7063_v61  ;;  %v108_v61 = vld [vmem:[%s6700_s1 + $0x2b0] sm:$0xff] }
  0x77   :  { %1001 = vmatpush1.msra.mxu0 %v7124_v48  ;;  %1136 = vmatpush1.msra.mxu1 %v7065_v15  ;;  %v4656_v15 = vand.u32 4294901760, %v115_v9  ;;  %v4669_v45 = vand.u32 4294901760, %v108_v61 }
  0x78   :  { %1005 = vmatprep.subr.mxu0 %v7126_v21  ;;  %1138 = vmatprep.subr.mxu1 %v7127_v10  ;;  %v4738_v21 = vsub.f32 %v102_v63, %v4697_v54  ;;  %v4740_v10 = vand.u32 4294901760, %v91_v46 }
  0x79   :  { %1009 = vmatpush1.msra.mxu0 %v7128_v58  ;;  %1140 = vmatpush1.msra.mxu1 %v7129_v53  ;;  %v4703_v3 = vsub.f32 %v108_v61, %v4669_v45  ;;  %v4747_v58 = vand.u32 4294901760, %v84_v0 }
  0x7a   :  { %1013 = vmatprep.subr.mxu0 %v7130_v25  ;;  %1142 = vmatprep.subr.mxu1 %v7069_v36  ;;  %v4678_v36 = vsub.f32 %v114_v8, %v4645_v6  ;;  %v7140_v8 = vld [vmem:[#allocation45_spill] sm:$0xff]  ;;  %7144 = vst [vmem:[#allocation18_spill] sm:$0xff] %v4740_v10 }
  0x7b   :  { %1017 = vmatpush1.msra.mxu0 %v7131_v40  ;;  %1144 = vmatpush1.msra.mxu1 %v7071_v49  ;;  %v4683_v49 = vand.u32 4294901760, %v103_v44  ;;  %v7141_v42 = vand.u32 4294901760, %v7140_v8  ;;  %7146 = vst [vmem:[#allocation21_spill] sm:$0xff] %v4747_v58  ;;  %v6830_v53 = vand.u32 4294901760, %v4703_v3  ;;  %v78_v40 = vld [vmem:[%s6700_s1 + $0x1c0] sm:$0xff] }
  0x7c   :  { %1021 = vmatprep.subr.mxu0 %v7132_v1  ;;  %1146 = vmatprep.subr.mxu1 %v7072_v38  ;;  %v4692_v38 = vsub.f32 %v115_v9, %v4656_v15  ;;  %v6828_v5 = vand.u32 4294901760, %v4678_v36  ;;  %v7142_v9 = vld [vmem:[#allocation37_spill] sm:$0xff] }
  0x7d   :  { %1025 = vmatpush1.msra.mxu0 %v7133_v13  ;;  %1148 = vmatpush1.msra.mxu1 %v7073_v52  ;;  %v7136_v52 = vand.u32 4294901760, %v4347_v56  ;;  %v4717_v56 = vand.u32 4294901760, %v97_v34  ;;  %v4733_v48 = vsub.f32 %v103_v44, %v4683_v49  ;;  %v7148_v13 = vld [vmem:[#allocation46_spill] sm:$0xff]  ;;  %v4805_v8 = vsub.f32 %v4703_v3, %v6830_v53  ;;  %v67_v53 = vld [vmem:[%s6700_s1 + $0x168] sm:$0xff] }
  0x7e   :  { %1029 = vmatprep.subr.mxu0 %v7134_v59  ;;  %1150 = vmatprep.subr.mxu1 %v7074_v17  ;;  %v4712_v17 = vsub.f32 %v109_v22, %v4667_v57  ;;  %v6831_v60 = vand.u32 4294901760, %v4692_v38  ;;  %v4742_v22 = vand.u32 4294901760, %v90_v41  ;;  %v4851_v39 = vand.u32 4294901760, %v67_v53 }
  0x7f   :  { %1033 = vmatpush1.msra.mxu0 %v7136_v52  ;;  %1152 = vmatpush1.msra.mxu1 %v7075_v33  ;;  %7138 = vst [vmem:[#allocation16_spill] sm:$0xff] %v4717_v56  ;;  %v4719_v33 = vand.u32 4294901760, %v96_v19  ;;  %v4769_v63 = vsub.f32 %v97_v34, %v4717_v56  ;;  %v6834_v1 = vand.u32 4294901760, %v4733_v48  ;;  %v72_v52 = vld [vmem:[%s6700_s1 + $0x190] sm:$0xff] }
  0x80   :  { %1067 = vmatprep.subr.mxu0 %v7137_v4  ;;  %1154 = vmatprep.subr.mxu1 %v7076_v16  ;;  %v85_v16 = vld [vmem:[%s6700_s1 + $0x1f8] sm:$0xff]  ;;  %7145 = vst [vmem:[#allocation19_spill] sm:$0xff] %v4742_v22  ;;  %v6829_v61 = vand.u32 4294901760, %v4712_v17  ;;  %v4792_v4 = vsub.f32 %v91_v46, %v4740_v10  ;;  %v66_v46 = vld [vmem:[%s6700_s1 + $0x160] sm:$0xff]  ;;  %7158 = vst [vmem:[#allocation35_spill] sm:$0xff] %v4851_v39  ;;  %v4916_v31 = vsub.f32 %v67_v53, %v4851_v39 }
  0x81   :  { %7139 = vst [vmem:[#allocation17_spill] sm:$0xff] %v4719_v33  ;;  %1071 = vmatpush2.msra.mxu0 %v7141_v42  ;;  %1073 = vmatprep.mubr.f32.mxu0 %v7142_v9  ;;  %v4756_v25 = vsub.f32 %v96_v19, %v4719_v33  ;;  %v4763_v44 = vand.u32 4294901760, %v85_v16  ;;  %v4780_v19 = vsub.f32 %v90_v41, %v4742_v22  ;;  %v4807_v42 = vand.u32 4294901760, %v78_v40 }
  0x82   :  { %1156 = vmatpush1.msra.mxu1 %v7077_v14  ;;  %1075 = vmatmul.mubr.f32.vlgmr.msra.gmra.mxu0 %v7143_v2  ;;  %v79_v14 = vld [vmem:[%s6700_s1 + $0x1c8] sm:$0xff]  ;;  %v4800_v41 = vsub.f32 %v84_v0, %v4747_v58  ;;  %v4842_v24 = vand.u32 4294901760, %v66_v46  ;;  %v7163_v35 = vand.u32 4294901760, %v4792_v4  ;;  %7168 = vst [vmem:[#allocation4_spill] sm:$0xff] %v4916_v31 }
  0x83   :  { %1158 = vmatprep.subr.mxu1 %v7078_v27  ;;  %1237 = vmatprep.subr.mxu0 %v4656_v15  ;;  %v4761_v27 = vsub.f32 %v4678_v36, %v6828_v5  ;;  %7147 = vst [vmem:[#allocation23_spill] sm:$0xff] %v4763_v44  ;;  %v4782_v59 = vand.u32 4294901760, %v79_v14  ;;  %7150 = vst [vmem:[#allocation25_spill] sm:$0xff] %v4807_v42  ;;  %v7151_v5 = vld [vmem:[#allocation47_spill] sm:$0xff]  ;;  %v4849_v26 = vsub.f32 %v78_v40, %v4807_v42  ;;  %v61_v40 = vld [vmem:[%s6700_s1 + $0x138] sm:$0xff] }
  0x84   :  { %1160 = vmatpush1.msra.mxu1 %v7080_v12  ;;  %1239 = vmatpush1.msra.mxu0 %v4645_v6  ;;  %v1402_v12 = vsub.f32 %v4692_v38, %v6831_v60  ;;  %v4821_v60 = vsub.f32 %v85_v16, %v4763_v44  ;;  %v7154_v16 = vand.u32 4294901760, %v4738_v21  ;;  %7155 = vst [vmem:[#allocation31_spill] sm:$0xff] %v4842_v24  ;;  %v7171_v53 = vand.u32 4294901760, %v4800_v41 }
  0x85   :  { %1162 = vmatprep.subr.mxu1 %v7082_v51  ;;  %1241 = vmatprep.subr.mxu0 %v4667_v57  ;;  %7149 = vst [vmem:[#allocation24_spill] sm:$0xff] %v4782_v59  ;;  %v73_v51 = vld [vmem:[%s6700_s1 + $0x198] sm:$0xff]  ;;  %7157 = vst [vmem:[#allocation33_spill] sm:$0xff] %v4849_v26  ;;  %v4873_v28 = vsub.f32 %v79_v14, %v4782_v59  ;;  %v4890_v20 = vsub.f32 %v4792_v4, %v7163_v35  ;;  %v54_v35 = vld [vmem:[%s6700_s1 + $0x100] sm:$0xff] }
  0x86   :  { %1081 = vmatprep.mubr.f32.mxu0 %v7148_v13  ;;  %1164 = vmatpush1.msra.mxu1 %v7084_v37  ;;  %v1414_v37 = vsub.f32 %v4712_v17, %v6829_v61  ;;  %v1403_v34 = vand.u32 4294901760, %v1402_v12  ;;  %v4830_v0 = vand.u32 4294901760, %v73_v51  ;;  %v4832_v61 = vand.u32 4294901760, %v72_v52 }
  0x87   :  { %1243 = vmatpush1.msra.mxu0 %v4669_v45  ;;  %1166 = vmatprep.subr.mxu1 %v7086_v18  ;;  %v1409_v18 = vand.u32 4294901760, %v4761_v27  ;;  %v4828_v27 = vsub.f32 %v4733_v48, %v6834_v1  ;;  %v7160_v12 = vand.u32 4294901760, %v4756_v25  ;;  %v7169_v29 = vand.u32 4294901760, %v4821_v60 }
  0x88   :  { %1083 = vmatmul.mubr.f32.gmra.mxu0 %v7151_v5  ;;  %1245 = vmatprep.subr.mxu0 %v4683_v49  ;;  %7152 = vst [vmem:[#allocation27_spill] sm:$0xff] %v4830_v0  ;;  %7153 = vst [vmem:[#allocation29_spill] sm:$0xff] %v4832_v61  ;;  %v1415_v11 = vand.u32 4294901760, %v1414_v37  ;;  %v4879_v47 = vsub.f32 %v72_v52, %v4832_v61  ;;  %v4883_v37 = vsub.f32 %v73_v51, %v4830_v0  ;;  %v55_v51 = vld [vmem:[%s6700_s1 + $0x108] sm:$0xff] }
  0x89   :  { %1168 = vmatpush1.msra.mxu1 %v7088_v23  ;;  %1247 = vmatpush1.msra.mxu0 %v4697_v54  ;;  %v4839_v23 = vsub.f32 %v4738_v21, %v7154_v16  ;;  %v7159_v16 = vand.u32 4294901760, %v4769_v63  ;;  %v7165_v52 = vand.u32 4294901760, %v4780_v19  ;;  %v4924_v50 = vsub.f32 %v4821_v60, %v7169_v29  ;;  %v36_v29 = vld [vmem:[%s6700_s1 + $0x70] sm:$0xff] }
  0x8a   :  { %1200 = vmatprep.subr.mxu1 %v4257_v62  ;;  %1249 = vmatprep.subr.mxu0 %v4717_v56  ;;  %v1421_v62 = vand.u32 4294901760, %v4805_v8  ;;  %v60_v8 = vld [vmem:[%s6700_s1 + $0x130] sm:$0xff]  ;;  %7162 = vst [vmem:[#allocation2_spill] sm:$0xff] %v4879_v47 }
  0x8b   :  { %1089 = vmatprep.mubr.f32.mxu0 %v7156_v43  ;;  %1202 = vmatpush2.msra.mxu1 %v4280_v32  ;;  %v4858_v1 = vsub.f32 %v4769_v63, %v7159_v16  ;;  %v4863_v32 = vsub.f32 %v4756_v25, %v7160_v12  ;;  %v7161_v16 = vld [vmem:[#allocation51_spill] sm:$0xff]  ;;  %v1427_v12 = vand.u32 4294901760, %v4828_v27  ;;  %v1433_v14 = vand.u32 4294901760, %v4839_v23 }
  0x8c   :  { %1204 = vmatprep.mubr.f32.mxu1 %v7142_v9  ;;  %1251 = vmatpush1.msra.mxu0 %v4719_v33  ;;  %v4893_v27 = vsub.f32 %v66_v46, %v4842_v24  ;;  %v4898_v55 = vsub.f32 %v4780_v19, %v7165_v52  ;;  %v4906_v23 = vand.u32 4294901760, %v60_v8  ;;  %v48_v52 = vld [vmem:[%s6700_s1 + $0xd0] sm:$0xff]  ;;  %v1451_v46 = vand.u32 4294901760, %v4890_v20  ;;  %v42_v33 = vld [vmem:[%s6700_s1 + $0xa0] sm:$0xff] }
  0x8d   :  { %1091 = vmatmul.mubr.f32.gmra.mxu0 %v7161_v16  ;;  %1206 = vmatmul.mubr.f32.vlgmr.msra.gmra.mxu1 %v7143_v2  ;;  %v1445_v30 = vand.u32 4294901760, %v4863_v32 }
  0x8e   :  { %1253 = vmatprep.subr.mxu0 %v4740_v10  ;;  %1404 = vmatprep.subr.mxu1 %v1403_v34  ;;  %7164 = vst [vmem:[#allocation20_spill] sm:$0xff] %v4893_v27  ;;  %v4904_v34 = vand.u32 4294901760, %v61_v40  ;;  %7167 = vst [vmem:[#allocation22_spill] sm:$0xff] %v4906_v23  ;;  %v4944_v10 = vand.u32 4294901760, %v54_v35  ;;  %v4954_v32 = vsub.f32 %v60_v8, %v4906_v23  ;;  %v7176_v8 = vand.u32 4294901760, %v4873_v28 }
  0x8f   :  { %1255 = vmatpush1.msra.mxu0 %v4742_v22  ;;  %1410 = vmatpush1.msra.mxu1 %v1409_v18  ;;  %v1439_v18 = vand.u32 4294901760, %v4858_v1  ;;  %v7170_v22 = vld [vmem:[#allocation56_spill] sm:$0xff]  ;;  %v49_v1 = vld [vmem:[%s6700_s1 + $0xd8] sm:$0xff] }
  0x90   :  { %7166 = vst [vmem:[#allocation3_spill] sm:$0xff] %v4904_v34  ;;  %1257 = vmatprep.subr.mxu0 %v4763_v44  ;;  %1416 = vmatprep.subr.mxu1 %v1415_v11  ;;  %v4932_v44 = vsub.f32 %v4800_v41, %v7171_v53  ;;  %v4934_v11 = vand.u32 4294901760, %v55_v51  ;;  %7173 = vst [vmem:[#allocation6_spill] sm:$0xff] %v4944_v10  ;;  %v4946_v53 = vand.u32 4294901760, %v48_v52 }
  0x91   :  { %1097 = vmatprep.mubr.f32.mxu0 %v7170_v22  ;;  %1212 = vmatprep.mubr.f32.mxu1 %v7148_v13  ;;  %v1457_v13 = vand.u32 4294901760, %v4898_v55  ;;  %v43_v55 = vld [vmem:[%s6700_s1 + $0xa8] sm:$0xff]  ;;  %v4971_v56 = vsub.f32 %v4873_v28, %v7176_v8  ;;  %v4976_v54 = vsub.f32 %v61_v40, %v4904_v34  ;;  %v7179_v8 = vand.u32 4294901760, %v4879_v47 }
  0x92   :  { %7172 = vst [vmem:[#allocation5_spill] sm:$0xff] %v4934_v11  ;;  %1259 = vmatpush1.msra.mxu0 %v4747_v58  ;;  %1422 = vmatpush1.msra.mxu1 %v1421_v62  ;;  %7174 = vst [vmem:[#allocation26_spill] sm:$0xff] %v4946_v53  ;;  %v7175_v62 = vand.u32 4294901760, %v4849_v26  ;;  %v4993_v40 = vand.u32 4294901760, %v42_v33 }
  0x93   :  { %1099 = vmatmul.mubr.f32.gmra.mxu0 %v4454_v7  ;;  %1214 = vmatmul.mubr.f32.gmra.mxu1 %v7151_v5  ;;  %v1463_v5 = vand.u32 4294901760, %v4924_v50  ;;  %v7178_v50 = vand.u32 4294901760, %v4883_v37 }
  0x94   :  { %v4959_v20 = vsub.f32 %v4849_v26, %v7175_v62  ;;  %1261 = vmatprep.subr.mxu0 %v4782_v59  ;;  %1428 = vmatprep.subr.mxu1 %v1427_v12  ;;  %v4973_v62 = vand.u32 4294901760, %v49_v1  ;;  %v1469_v12 = vand.u32 4294901760, %v4932_v44  ;;  %v4991_v59 = vsub.f32 %v4879_v47, %v7179_v8  ;;  %v37_v26 = vld [vmem:[%s6700_s1 + $0x78] sm:$0xff] }
  0x95   :  { %1263 = vmatpush1.msra.mxu0 %v4807_v42  ;;  %1434 = vmatpush1.msra.mxu1 %v1433_v14  ;;  %v4986_v58 = vsub.f32 %v4883_v37, %v7178_v50  ;;  %v5000_v44 = vsub.f32 %v54_v35, %v4944_v10  ;;  %v5003_v14 = vsub.f32 %v48_v52, %v4946_v53  ;;  %v5005_v50 = vand.u32 4294901760, %v43_v55 }
  0x96   :  { %7177 = vst [vmem:[#allocation7_spill] sm:$0xff] %v4973_v62  ;;  %1265 = vmatprep.subr.mxu0 %v4830_v0  ;;  %1440 = vmatprep.subr.mxu1 %v1439_v18  ;;  %v5008_v8 = vsub.f32 %v55_v51, %v4934_v11  ;;  %v1481_v42 = vand.u32 4294901760, %v4959_v20  ;;  %v7182_v0 = vand.u32 4294901760, %v4916_v31  ;;  %v7183_v35 = vand.u32 4294901760, %v4893_v27  ;;  %v31_v51 = vld [vmem:[%s6700_s1 + $0x48] sm:$0xff]  ;;  %v30_v20 = vld [vmem:[%s6700_s1 + $0x40] sm:$0xff] }
  0x97   :  { %7180 = vst [vmem:[#allocation28_spill] sm:$0xff] %v5003_v14  ;;  %7181 = vst [vmem:[#allocation8_spill] sm:$0xff] %v5005_v50  ;;  %1220 = vmatprep.mubr.f32.mxu1 %v7156_v43  ;;  %1267 = vmatpush1.msra.mxu0 %v4832_v61  ;;  %v5023_v47 = vand.u32 4294901760, %v36_v29  ;;  %v5033_v43 = vand.u32 4294901760, %v37_v26  ;;  %v5037_v61 = vsub.f32 %v49_v1, %v4973_v62  ;;  %v5050_v1 = vand.u32 4294901760, %v31_v51 }
  0x98   :  { %v5016_v18 = vsub.f32 %v4916_v31, %v7182_v0  ;;  %v5021_v52 = vsub.f32 %v4893_v27, %v7183_v35  ;;  %1446 = vmatpush1.msra.mxu1 %v1445_v30  ;;  %1269 = vmatprep.subr.mxu0 %v4851_v39  ;;  %v1475_v0 = vand.u32 4294901760, %v4971_v56  ;;  %v1487_v27 = vand.u32 4294901760, %v4986_v58  ;;  %v121_v56 = vld [vmem:[%s6700_s1 + $0x318] sm:$0xf] }
  0x99   :  { %1222 = vmatmul.mubr.f32.gmra.mxu1 %v7161_v16  ;;  %1452 = vmatprep.subr.mxu1 %v1451_v46  ;;  %v1493_v31 = vand.u32 4294901760, %v4991_v59  ;;  %v5043_v30 = vsub.f32 %v42_v33, %v4993_v40  ;;  %v5053_v35 = vand.u32 4294901760, %v30_v20  ;;  %v25_v33 = vld [vmem:[%s6700_s1 + $0x18] sm:$0xff]  ;;  %v5059_v58 = vsub.f32 %v43_v55, %v5005_v50  ;;  %v120_v59 = vld [vmem:[%s6700_s1 + $0x310] sm:$0xf] }
  0x9a   :  { %1271 = vmatpush1.msra.mxu0 %v4842_v24  ;;  %1458 = vmatpush1.msra.mxu1 %v1457_v13  ;;  %v1499_v13 = vand.u32 4294901760, %v5016_v18  ;;  %v1505_v46 = vand.u32 4294901760, %v5021_v52  ;;  %v5068_v39 = vsub.f32 %v36_v29, %v5023_v47  ;;  %v24_v55 = vld [vmem:[%s6700_s1 + $0x10] sm:$0xff]  ;;  %v148_v52 = vsel %vm137_vm0, %v121_v56, 0 }
  0x9b   :  { %7184 = vst [vmem:[#allocation30_spill] sm:$0xff] %v5043_v30  ;;  %7185 = vst [vmem:[#allocation9_spill] sm:$0xff] %v5059_v58  ;;  %1273 = vmatprep.subr.mxu0 %v4904_v34  ;;  %1464 = vmatprep.subr.mxu1 %v1463_v5  ;;  %v7187_v34 = vand.u32 4294901760, %v4976_v54  ;;  %v5082_v29 = vsub.f32 %v37_v26, %v5033_v43  ;;  %v7189_v16 = vand.u32 4294901760, %v4954_v32  ;;  %v5088_v24 = vand.u32 4294901760, %v25_v33 }
  0x9c   :  { %7186 = vst [vmem:[#allocation32_spill] sm:$0xff] %v5068_v39  ;;  %1228 = vmatprep.mubr.f32.mxu1 %v7170_v22  ;;  %1275 = vmatpush1.msra.mxu0 %v4906_v23  ;;  %v7190_v56 = vand.u32 4294901760, %v5008_v8  ;;  %v5099_v18 = vand.u32 4294901760, %v24_v55  ;;  %v7191_v23 = vand.u32 4294901760, %v5000_v44 }
  0x9d   :  { %v1510_v5 = vsub.f32 %v4976_v54, %v7187_v34  ;;  %7188 = vst [vmem:[#allocation10_spill] sm:$0xff] %v5082_v29  ;;  %1470 = vmatpush1.msra.mxu1 %v1469_v12  ;;  %1277 = vmatprep.subr.mxu0 %v4934_v11  ;;  %v1516_v22 = vsub.f32 %v4954_v32, %v7189_v16  ;;  %v145_v34 = vsel %vm137_vm0, %v120_v59, 0  ;;  %v7192_v16 = vand.u32 4294901760, %v5037_v61 }
  0x9e   :  { %1230 = vmatmul.mubr.f32.gmra.mxu1 %v4454_v7  ;;  %1476 = vmatprep.subr.mxu1 %v1475_v0  ;;  %v1522_v26 = vsub.f32 %v5008_v8, %v7190_v56  ;;  %v5097_v12 = vsub.f32 %v30_v20, %v5053_v35  ;;  %v1528_v59 = vsub.f32 %v5000_v44, %v7191_v23  ;;  %v5106_v7 = vand.u32 4294901760, %v148_v52 }
  0x9f   :  { %1279 = vmatpush1.msra.mxu0 %v4944_v10  ;;  %1482 = vmatpush1.msra.mxu1 %v1481_v42  ;;  %v5110_v56 = vsub.f32 %v31_v51, %v5050_v1  ;;  %v1511_v20 = vand.u32 4294901760, %v1510_v5  ;;  %v1534_v10 = vsub.f32 %v5037_v61, %v7192_v16  ;;  %v5116_v42 = vand.u32 4294901760, %v145_v34 }
  0xa0   :  { %1281 = vmatprep.subr.mxu0 %v4973_v62  ;;  %1488 = vmatprep.subr.mxu1 %v1487_v27  ;;  %v1517_v23 = vand.u32 4294901760, %v1516_v22  ;;  %v7193_v0 = vand.u32 4294901760, %v5003_v14  ;;  %v5124_v62 = vsub.f32 %v25_v33, %v5088_v24  ;;  %v1523_v27 = vand.u32 4294901760, %v1522_v26 }
  0xa1   :  { %1283 = vmatpush1.msra.mxu0 %v4946_v53  ;;  %1494 = vmatpush1.msra.mxu1 %v1493_v31  ;;  %v5128_v5 = vsub.f32 %v24_v55, %v5099_v18  ;;  %v7194_v16 = vand.u32 4294901760, %v5059_v58  ;;  %v1529_v22 = vand.u32 4294901760, %v1528_v59  ;;  %v7195_v33 = vand.u32 4294901760, %v5043_v30 }
  0xa2   :  { %v1540_v51 = vsub.f32 %v5003_v14, %v7193_v0  ;;  %1285 = vmatprep.subr.mxu0 %v5005_v50  ;;  %1500 = vmatprep.subr.mxu1 %v1499_v13  ;;  %v5140_v26 = vsub.f32 %v148_v52, %v5106_v7  ;;  %v1535_v55 = vand.u32 4294901760, %v1534_v10  ;;  %v7196_v31 = vand.u32 4294901760, %v5082_v29 }
  0xa3   :  { %v1546_v11 = vsub.f32 %v5059_v58, %v7194_v16  ;;  %1287 = vmatpush1.msra.mxu0 %v4993_v40  ;;  %1506 = vmatpush1.msra.mxu1 %v1505_v46  ;;  %v1552_v0 = vsub.f32 %v5043_v30, %v7195_v33  ;;  %v5144_v16 = vsub.f32 %v145_v34, %v5116_v42  ;;  %v6908_v52 = vand.u32 4294901760, %v5124_v62 }
  0xa4   :  { %1289 = vmatprep.subr.mxu0 %v5033_v43  ;;  %1512 = vmatprep.subr.mxu1 %v1511_v20  ;;  %v1558_v46 = vsub.f32 %v5082_v29, %v7196_v31  ;;  %v1541_v33 = vand.u32 4294901760, %v1540_v51  ;;  %v7197_v10 = vand.u32 4294901760, %v5068_v39  ;;  %v7198_v59 = vand.u32 4294901760, %v5110_v56 }
  0xa5   :  { %1291 = vmatpush1.msra.mxu0 %v5023_v47  ;;  %1518 = vmatpush1.msra.mxu1 %v1517_v23  ;;  %v1547_v20 = vand.u32 4294901760, %v1546_v11  ;;  %v1553_v31 = vand.u32 4294901760, %v1552_v0  ;;  %v6910_v51 = vand.u32 4294901760, %v5140_v26  ;;  %v6909_v13 = vand.u32 4294901760, %v5144_v16 }
  0xa6   :  { %1293 = vmatprep.subr.mxu0 %v5050_v1  ;;  %1524 = vmatprep.subr.mxu1 %v1523_v27  ;;  %v1564_v34 = vsub.f32 %v5068_v39, %v7197_v10  ;;  %v1570_v23 = vsub.f32 %v5110_v56, %v7198_v59  ;;  %v1559_v11 = vand.u32 4294901760, %v1558_v46  ;;  %v7199_v27 = vand.u32 4294901760, %v5097_v12 }
  0xa7   :  { %1295 = vmatpush1.msra.mxu0 %v5053_v35  ;;  %1530 = vmatpush1.msra.mxu1 %v1529_v22  ;;  %v1582_v22 = vsub.f32 %v5124_v62, %v6908_v52 }
  0xa8   :  { %1297 = vmatprep.subr.mxu0 %v5088_v24  ;;  %1536 = vmatprep.subr.mxu1 %v1535_v55  ;;  %v1576_v10 = vsub.f32 %v5097_v12, %v7199_v27  ;;  %v1565_v0 = vand.u32 4294901760, %v1564_v34  ;;  %v7200_v55 = vand.u32 4294901760, %v5128_v5  ;;  %v1571_v59 = vand.u32 4294901760, %v1570_v23  ;;  %v7201_v27 = vld [vmem:[#allocation43_spill] sm:$0xff]  ;;  %v7202_v34 = vld [vmem:[#allocation44_spill] sm:$0xff] }
  0xa9   :  { %1299 = vmatpush1.msra.mxu0 %v5099_v18  ;;  %1542 = vmatpush1.msra.mxu1 %v1541_v33  ;;  %v1624_v33 = vsub.f32 %v5140_v26, %v6910_v51  ;;  %v7216_v51 = vld [vmem:[#allocation25_spill] sm:$0xff] }
  0xaa   :  { %1331 = vmatprep.subr.mxu0 %v5106_v7  ;;  %1548 = vmatprep.subr.mxu1 %v1547_v20  ;;  %v1588_v46 = vsub.f32 %v5128_v5, %v7200_v55  ;;  %v1577_v52 = vand.u32 4294901760, %v1576_v10  ;;  %v1630_v20 = vsub.f32 %v5144_v16, %v6909_v13  ;;  %v1583_v55 = vand.u32 4294901760, %v1582_v22  ;;  %v7204_v10 = vld [vmem:[#allocation15_spill] sm:$0xff]  ;;  %v7205_v22 = vld [vmem:[#allocation16_spill] sm:$0xff]  ;;  %v7215_v13 = vld [vmem:[#allocation61_spill] sm:$0xff] }
  0xab   :  { %1333 = vmatpush2.msra.mxu0 %v5116_v42  ;;  %1554 = vmatpush1.msra.mxu1 %v1553_v31  ;;  %v1625_v23 = vand.u32 4294901760, %v1624_v33  ;;  %v7209_v33 = vld [vmem:[#allocation18_spill] sm:$0xff] }
  0xac   :  { %1339 = vmatprep.mubr.f32.mxu0 %v7201_v27  ;;  %1560 = vmatprep.subr.mxu1 %v1559_v11  ;;  %v1589_v31 = vand.u32 4294901760, %v1588_v46  ;;  %v1631_v11 = vand.u32 4294901760, %v1630_v20  ;;  %v7207_v46 = vld [vmem:[#allocation17_spill] sm:$0xff]  ;;  %v7210_v20 = vld [vmem:[#allocation20_spill] sm:$0xff]  ;;  %v7218_v27 = vld [vmem:[#allocation27_spill] sm:$0xff] }
  0xad   :  { %1668 = vmatprep.subr.mxu0 %v4692_v38  ;;  %1345 = vmatmul.mubr.f32.vlgmr.msra.gmra.mxu0 %v7202_v34  ;;  %v7217_v34 = vld [vmem:[#allocation63_spill] sm:$0xff] }
  0xae   :  { %1566 = vmatpush1.msra.mxu1 %v1565_v0  ;;  %1671 = vmatpush1.msra.mxu0 %v4678_v36  ;;  %v7206_v0 = vld [vmem:[#allocation2_spill] sm:$0xff] }
  0xaf   :  { %1572 = vmatprep.subr.mxu1 %v1571_v59  ;;  %1674 = vmatprep.subr.mxu0 %v4712_v17  ;;  %v7208_v59 = vld [vmem:[#allocation4_spill] sm:$0xff] }
  0xb0   :  { %1578 = vmatpush1.msra.mxu1 %v1577_v52  ;;  %1677 = vmatpush1.msra.mxu0 %v4703_v3  ;;  %v7203_v52 = vld [vmem:[#allocation33_spill] sm:$0xff] }
  0xb1   :  { %1584 = vmatprep.subr.mxu1 %v1583_v55  ;;  %1680 = vmatprep.subr.mxu0 %v4733_v48  ;;  %v7211_v55 = vld [vmem:[#allocation19_spill] sm:$0xff] }
  0xb2   :  { %1590 = vmatpush1.msra.mxu1 %v1589_v31  ;;  %1683 = vmatpush1.msra.mxu0 %v4738_v21  ;;  %v7212_v31 = vld [vmem:[#allocation23_spill] sm:$0xff] }
  0xb3   :  { %1626 = vmatprep.subr.mxu1 %v1625_v23  ;;  %1686 = vmatprep.subr.mxu0 %v4769_v63  ;;  %v7213_v23 = vld [vmem:[#allocation21_spill] sm:$0xff] }
  0xb4   :  { %1632 = vmatpush2.msra.mxu1 %v1631_v11  ;;  %1634 = vmatprep.mubr.f32.mxu1 %v7142_v9  ;;  %v7214_v11 = vld [vmem:[#allocation24_spill] sm:$0xff]  ;;  %v7220_v9 = vld [vmem:[#allocation35_spill] sm:$0xff] }
  0xb5   :  { %1689 = vmatpush1.msra.mxu0 %v4756_v25  ;;  %1636 = vmatmul.mubr.f32.vlgmr.msra.gmra.mxu1 %v7143_v2  ;;  %v7219_v2 = vld [vmem:[#allocation29_spill] sm:$0xff] }
  0xb6   :  { %1692 = vmatprep.subr.mxu0 %v4792_v4  ;;  %1840 = vmatprep.subr.mxu1 %v4656_v15 }
  0xb7   :  { %1695 = vmatpush1.msra.mxu0 %v4780_v19  ;;  %1842 = vmatpush1.msra.mxu1 %v4645_v6 }
  0xb8   :  { %1698 = vmatprep.subr.mxu0 %v4821_v60  ;;  %1844 = vmatprep.subr.mxu1 %v4667_v57 }
  0xb9   :  { %1701 = vmatpush1.msra.mxu0 %v4800_v41  ;;  %1846 = vmatpush1.msra.mxu1 %v4669_v45 }
  0xba   :  { %1704 = vmatprep.subr.mxu0 %v4873_v28  ;;  %1848 = vmatprep.subr.mxu1 %v4683_v49 }
  0xbb   :  { %1707 = vmatpush1.msra.mxu0 %v7203_v52  ;;  %1850 = vmatpush1.msra.mxu1 %v7204_v10 }
  0xbc   :  { %1710 = vmatprep.subr.mxu0 %v4883_v37  ;;  %1852 = vmatprep.subr.mxu1 %v7205_v22 }
  0xbd   :  { %1713 = vmatpush1.msra.mxu0 %v7206_v0  ;;  %1854 = vmatpush1.msra.mxu1 %v7207_v46 }
  0xbe   :  { %1716 = vmatprep.subr.mxu0 %v7208_v59  ;;  %1856 = vmatprep.subr.mxu1 %v7209_v33 }
  0xbf   :  { %1719 = vmatpush1.msra.mxu0 %v7210_v20  ;;  %1858 = vmatpush1.msra.mxu1 %v7211_v55 }
  0xc0   :  { %1722 = vmatprep.subr.mxu0 %v4976_v54  ;;  %1860 = vmatprep.subr.mxu1 %v7212_v31 }
  0xc1   :  { %1725 = vmatpush1.msra.mxu0 %v4954_v32  ;;  %1862 = vmatpush1.msra.mxu1 %v7213_v23 }
  0xc2   :  { %1728 = vmatprep.subr.mxu0 %v5008_v8  ;;  %1864 = vmatprep.subr.mxu1 %v7214_v11  ;;  %v7221_v11 = vld [vmem:[#allocation66_spill] sm:$0xff] }
  0xc3   :  { %1355 = vmatprep.mubr.f32.mxu0 %v7215_v13  ;;  %1731 = vmatpush1.msra.mxu0 %v5000_v44  ;;  %v7222_v13 = vld [vmem:[#allocation31_spill] sm:$0xff] }
  0xc4   :  { %1866 = vmatpush1.msra.mxu1 %v7216_v51  ;;  %1361 = vmatmul.mubr.f32.gmra.mxu0 %v7217_v34  ;;  %v7223_v51 = vld [vmem:[#allocation34_spill] sm:$0xff] }
  0xc5   :  { %1734 = vmatprep.subr.mxu0 %v5037_v61  ;;  %1868 = vmatprep.subr.mxu1 %v7218_v27  ;;  %v7224_v34 = vld [vmem:[#allocation46_spill] sm:$0xff]  ;;  %v7225_v27 = vld [vmem:[#allocation3_spill] sm:$0xff] }
  0xc6   :  { %1737 = vmatpush1.msra.mxu0 %v5003_v14  ;;  %1870 = vmatpush1.msra.mxu1 %v7219_v2  ;;  %v7226_v14 = vld [vmem:[#allocation47_spill] sm:$0xff] }
  0xc7   :  { %1740 = vmatprep.subr.mxu0 %v5059_v58  ;;  %1872 = vmatprep.subr.mxu1 %v7220_v9  ;;  %v7227_v58 = vld [vmem:[#allocation22_spill] sm:$0xff] }
  0xc8   :  { %1371 = vmatprep.mubr.f32.mxu0 %v7221_v11  ;;  %1743 = vmatpush1.msra.mxu0 %v5043_v30  ;;  %v7228_v11 = vld [vmem:[#allocation5_spill] sm:$0xff]  ;;  %v7229_v30 = vld [vmem:[#allocation11_spill] sm:$0xff] }
  0xc9   :  { %1874 = vmatpush1.msra.mxu1 %v7222_v13  ;;  %1377 = vmatmul.mubr.f32.gmra.mxu0 %v7223_v51  ;;  %v7230_v51 = vld [vmem:[#allocation6_spill] sm:$0xff] }
  0xca   :  { %1642 = vmatprep.mubr.f32.mxu1 %v7224_v34  ;;  %1746 = vmatprep.subr.mxu0 %v5082_v29  ;;  %v7231_v34 = vld [vmem:[#allocation12_spill] sm:$0xff]  ;;  %v7232_v29 = vld [vmem:[#allocation50_spill] sm:$0xff] }
  0xcb   :  { %1876 = vmatprep.subr.mxu1 %v7225_v27  ;;  %1644 = vmatmul.mubr.f32.gmra.mxu1 %v7226_v14  ;;  %v7233_v14 = vld [vmem:[#allocation7_spill] sm:$0xff] }
  0xcc   :  { %1749 = vmatpush1.msra.mxu0 %v5068_v39  ;;  %1878 = vmatpush1.msra.mxu1 %v7227_v58  ;;  %v7234_v39 = vld [vmem:[#allocation51_spill] sm:$0xff] }
  0xcd   :  { %1752 = vmatprep.subr.mxu0 %v5110_v56  ;;  %1880 = vmatprep.subr.mxu1 %v7228_v11 }
  0xce   :  { %1387 = vmatprep.mubr.f32.mxu0 %v7229_v30  ;;  %1755 = vmatpush1.msra.mxu0 %v5097_v12  ;;  %v7235_v30 = vld [vmem:[#allocation39_spill] sm:$0xff] }
  0xcf   :  { %1882 = vmatpush1.msra.mxu1 %v7230_v51  ;;  %1393 = vmatmul.mubr.f32.gmra.mxu0 %v7231_v34  ;;  %v7236_v34 = vld [vmem:[#allocation56_spill] sm:$0xff] }
  0xd0   :  { %1650 = vmatprep.mubr.f32.mxu1 %v7232_v29  ;;  %1758 = vmatprep.subr.mxu0 %v5124_v62  ;;  %v7237_v29 = vld [vmem:[#allocation40_spill] sm:$0xff] }
  0xd1   :  { %1884 = vmatprep.subr.mxu1 %v7233_v14  ;;  %1652 = vmatmul.mubr.f32.gmra.mxu1 %v7234_v39  ;;  %v7238_v39 = vand.u32 4294901760, %v4692_v38  ;;  %v7245_v38 = vand.u32 4294901760, %v4733_v48  ;;  %v7251_v48 = vld [vmem:[#allocation55_spill] sm:$0xff] }
  0xd2   :  { %1761 = vmatpush1.msra.mxu0 %v5128_v5  ;;  %1886 = vmatpush1.msra.mxu1 %v4946_v53  ;;  %v7239_v53 = vld [vmem:[#allocation57_spill] sm:$0xff] }
  0xd3   :  { %1794 = vmatprep.subr.mxu0 %v5140_v26  ;;  %1888 = vmatprep.subr.mxu1 %v5005_v50  ;;  %v7240_v50 = vand.u32 4294901760, %v4678_v36  ;;  %v7246_v36 = vand.u32 4294901760, %v4738_v21  ;;  %v7253_v21 = vand.u32 4294901760, %v4792_v4  ;;  %v7265_v4 = vand.u32 4294901760, %v7206_v0 }
  0xd4   :  { %1797 = vmatpush2.msra.mxu0 %v5144_v16  ;;  %1800 = vmatprep.mubr.f32.mxu0 %v7235_v30  ;;  %v7241_v30 = vand.u32 4294901760, %v4712_v17  ;;  %v7247_v17 = vand.u32 4294901760, %v4769_v63  ;;  %v7254_v63 = vand.u32 4294901760, %v4780_v19  ;;  %v7260_v19 = vld [vmem:[#allocation53_spill] sm:$0xff]  ;;  %v7272_v0 = vand.u32 4294901760, %v5008_v8  ;;  %v7278_v8 = vld [vmem:[#allocation27_spill] sm:$0xff] }
  0xd5   :  { %1890 = vmatpush1.msra.mxu1 %v4993_v40  ;;  %1658 = vmatprep.mubr.f32.mxu1 %v7236_v34  ;;  %v7242_v34 = vld [vmem:[#allocation48_spill] sm:$0xff] }
  0xd6   :  { %1803 = vmatmul.mubr.f32.vlgmr.msra.gmra.mxu0 %v7237_v29  ;;  %1892 = vmatprep.subr.mxu1 %v5033_v43  ;;  %v7243_v29 = vand.u32 4294901760, %v4703_v3  ;;  %v7249_v3 = vld [vmem:[#allocation41_spill] sm:$0xff] }
  0xd7   :  { %1989 = vmatprep.subr.mxu0 %v7238_v39  ;;  %1660 = vmatmul.mubr.f32.gmra.mxu1 %v7239_v53  ;;  %v7244_v39 = vld [vmem:[#allocation49_spill] sm:$0xff] }
  0xd8   :  { %1894 = vmatpush1.msra.mxu1 %v5023_v47  ;;  %1993 = vmatpush1.msra.mxu0 %v7240_v50  ;;  %v7248_v50 = vld [vmem:[#allocation54_spill] sm:$0xff] }
  0xd9   :  { %1896 = vmatprep.subr.mxu1 %v5050_v1  ;;  %1997 = vmatprep.subr.mxu0 %v7241_v30  ;;  %v7250_v30 = vand.u32 4294901760, %v4756_v25  ;;  %v7256_v25 = vld [vmem:[#allocation60_spill] sm:$0xff] }
  0xda   :  { %1810 = vmatprep.mubr.f32.mxu0 %v7242_v34  ;;  %1898 = vmatpush1.msra.mxu1 %v5053_v35 }
  0xdb   :  { %2001 = vmatpush1.msra.mxu0 %v7243_v29  ;;  %1900 = vmatprep.subr.mxu1 %v5088_v24  ;;  %v7252_v29 = vld [vmem:[#allocation42_spill] sm:$0xff] }
  0xdc   :  { %1813 = vmatmul.mubr.f32.gmra.mxu0 %v7244_v39  ;;  %2005 = vmatprep.subr.mxu0 %v7245_v38  ;;  %v7255_v38 = vand.u32 4294901760, %v4821_v60  ;;  %v7263_v60 = vand.u32 4294901760, %v4883_v37  ;;  %v7269_v37 = vand.u32 4294901760, %v4976_v54  ;;  %v116_v54 = vld [vmem:[%s6700_s1 + $0x2f0] sm:$0xff] }
  0xdd   :  { %1902 = vmatpush1.msra.mxu1 %v5099_v18  ;;  %2009 = vmatpush1.msra.mxu0 %v7246_v36  ;;  %v7257_v36 = vld [vmem:[#allocation52_spill] sm:$0xff] }
  0xde   :  { %1934 = vmatprep.subr.mxu1 %v5106_v7  ;;  %2013 = vmatprep.subr.mxu0 %v7247_v17  ;;  %v7258_v17 = vand.u32 4294901760, %v4800_v41  ;;  %v7268_v41 = vand.u32 4294901760, %v7210_v20 }
  0xdf   :  { %1820 = vmatprep.mubr.f32.mxu0 %v7248_v50  ;;  %1936 = vmatpush2.msra.mxu1 %v5116_v42 }
  0xe0   :  { %1940 = vmatprep.mubr.f32.mxu1 %v7249_v3  ;;  %2017 = vmatpush1.msra.mxu0 %v7250_v30  ;;  %v7279_v30 = vld [vmem:[#allocation28_spill] sm:$0xff] }
  0xe1   :  { %1823 = vmatmul.mubr.f32.gmra.mxu0 %v7251_v48  ;;  %1944 = vmatmul.mubr.f32.vlgmr.msra.gmra.mxu1 %v7252_v29 }
  0xe2   :  { %2021 = vmatprep.subr.mxu0 %v7253_v21  ;;  %2186 = vmatprep.subr.mxu1 %v4656_v15  ;;  %v7259_v15 = vld [vmem:[#allocation62_spill] sm:$0xff]  ;;  %v7280_v21 = vand.u32 4294901760, %v7279_v30  ;;  %v7298_v30 = vld [vmem:[#allocation37_spill] sm:$0xff] }
  0xe3   :  { %2025 = vmatpush1.msra.mxu0 %v7254_v63  ;;  %2188 = vmatpush1.msra.mxu1 %v4645_v6  ;;  %v7261_v6 = vand.u32 4294901760, %v4873_v28  ;;  %v7266_v28 = vand.u32 4294901760, %v7208_v59  ;;  %v7274_v59 = vld [vmem:[#allocation24_spill] sm:$0xff] }
  0xe4   :  { %2029 = vmatprep.subr.mxu0 %v7255_v38  ;;  %2190 = vmatprep.subr.mxu1 %v4667_v57  ;;  %v7262_v57 = vand.u32 4294901760, %v7203_v52  ;;  %v7270_v52 = vld [vmem:[#allocation64_spill] sm:$0xff]  ;;  %v7283_v38 = vld [vmem:[#allocation30_spill] sm:$0xff] }
  0xe5   :  { %1830 = vmatprep.mubr.f32.mxu0 %v7256_v25  ;;  %1952 = vmatprep.mubr.f32.mxu1 %v7257_v36 }
  0xe6   :  { %2033 = vmatpush1.msra.mxu0 %v7258_v17  ;;  %2192 = vmatpush1.msra.mxu1 %v4669_v45  ;;  %v7264_v45 = vld [vmem:[#allocation58_spill] sm:$0xff]  ;;  %v7284_v17 = vand.u32 4294901760, %v7283_v38 }
  0xe7   :  { %1833 = vmatmul.mubr.f32.gmra.mxu0 %v7259_v15  ;;  %1956 = vmatmul.mubr.f32.gmra.mxu1 %v7260_v19  ;;  %v7318_v15 = vld [vmem:[#allocation51_spill] sm:$0xff] }
  0xe8   :  { %2037 = vmatprep.subr.mxu0 %v7261_v6  ;;  %2194 = vmatprep.subr.mxu1 %v4683_v49  ;;  %v7267_v49 = vld [vmem:[#allocation59_spill] sm:$0xff] }
  0xe9   :  { %2041 = vmatpush1.msra.mxu0 %v7262_v57  ;;  %2196 = vmatpush1.msra.mxu1 %v7204_v10  ;;  %v7271_v10 = vand.u32 4294901760, %v4954_v32  ;;  %v7275_v32 = vand.u32 4294901760, %v5000_v44  ;;  %v7281_v44 = vld [vmem:[#allocation9_spill] sm:$0xff] }
  0xea   :  { %2045 = vmatprep.subr.mxu0 %v7263_v60  ;;  %2198 = vmatprep.subr.mxu1 %v7205_v22  ;;  %v117_v22 = vld [vmem:[%s6700_s1 + $0x2f8] sm:$0xff]  ;;  %v7282_v63 = vand.u32 4294901760, %v7281_v44 }
  0xeb   :  { %1964 = vmatprep.mubr.f32.mxu1 %v7264_v45  ;;  %2049 = vmatpush1.msra.mxu0 %v7265_v4  ;;  %v5346_v20 = vand.u32 4294901760, %v117_v22  ;;  %v7287_v4 = vld [vmem:[#allocation32_spill] sm:$0xff] }
  0xec   :  { %2200 = vmatpush1.msra.mxu1 %v7207_v46  ;;  %2053 = vmatprep.subr.mxu0 %v7266_v28  ;;  %v7273_v46 = vld [vmem:[#allocation65_spill] sm:$0xff]  ;;  %v7288_v28 = vand.u32 4294901760, %v7287_v4 }
  0xed   :  { %1968 = vmatmul.mubr.f32.gmra.mxu1 %v7267_v49  ;;  %2202 = vmatprep.subr.mxu1 %v7209_v33  ;;  %v7276_v33 = vld [vmem:[#allocation25_spill] sm:$0xff]  ;;  %v5371_v57 = vsub.f32 %v117_v22, %v5346_v20  ;;  %v7314_v49 = vld [vmem:[#allocation50_spill] sm:$0xff] }
  0xee   :  { %2057 = vmatpush1.msra.mxu0 %v7268_v41  ;;  %2204 = vmatpush1.msra.mxu1 %v7211_v55  ;;  %v7277_v55 = vand.u32 4294901760, %v5037_v61  ;;  %v110_v61 = vld [vmem:[%s6700_s1 + $0x2c0] sm:$0xff] }
  0xef   :  { %2061 = vmatprep.subr.mxu0 %v7269_v37  ;;  %2206 = vmatprep.subr.mxu1 %v7212_v31  ;;  %v5351_v31 = vand.u32 4294901760, %v116_v54  ;;  %v5382_v41 = vand.u32 4294901760, %v110_v61  ;;  %v7289_v37 = vand.u32 4294901760, %v5110_v56  ;;  %v6923_v22 = vand.u32 4294901760, %v5371_v57 }
  0xf0   :  { %1976 = vmatprep.mubr.f32.mxu1 %v7270_v52  ;;  %2065 = vmatpush1.msra.mxu0 %v7271_v10  ;;  %v7290_v10 = vand.u32 4294901760, %v5097_v12  ;;  %v98_v12 = vld [vmem:[%s6700_s1 + $0x260] sm:$0xff]  ;;  %v5604_v29 = vpop.f32.mrf.mxu0 }
  0xf1   :  { %2208 = vmatpush1.msra.mxu1 %v7213_v23  ;;  %2069 = vmatprep.subr.mxu0 %v7272_v0  ;;  %v111_v23 = vld [vmem:[%s6700_s1 + $0x2c8] sm:$0xff]  ;;  %7323 = vst [vmem:[#allocation35_spill] sm:$0xff] %v5604_v29  ;;  %v7329_v29 = vld [vmem:[#allocation56_spill] sm:$0xff] }
  0xf2   :  { %1980 = vmatmul.mubr.f32.gmra.mxu1 %v7273_v46  ;;  %2210 = vmatprep.subr.mxu1 %v7274_v59  ;;  %v5368_v6 = vand.u32 4294901760, %v111_v23  ;;  %v7293_v59 = vld [vmem:[#allocation26_spill] sm:$0xff]  ;;  %v5653_v39 = vpop.f32.mrf.mxu0 }
  0xf3   :  { %2073 = vmatpush1.msra.mxu0 %v7275_v32  ;;  %2212 = vmatpush1.msra.mxu1 %v7276_v33  ;;  %v5416_v32 = vsub.f32 %v110_v61, %v5382_v41  ;;  %v7294_v33 = vand.u32 4294901760, %v5140_v26  ;;  %v5439_v26 = vsub.f32 %v5371_v57, %v6923_v22  ;;  %v7300_v61 = vld [vmem:[#allocation38_spill] sm:$0xff]  ;;  %7331 = vst [vmem:[#allocation5_spill] sm:$0xff] %v5653_v39 }
  0xf4   :  { %2077 = vmatprep.subr.mxu0 %v7277_v55  ;;  %2214 = vmatprep.subr.mxu1 %v7278_v8  ;;  %v5401_v56 = vsub.f32 %v111_v23, %v5368_v6  ;;  %v7295_v55 = vld [vmem:[#allocation8_spill] sm:$0xff]  ;;  %v7297_v23 = vand.u32 4294901760, %v5144_v16 }
  0xf5   :  { %2081 = vmatpush1.msra.mxu0 %v7280_v21  ;;  %2216 = vmatpush1.msra.mxu1 %v7219_v2  ;;  %v7285_v2 = vld [vmem:[#allocation10_spill] sm:$0xff]  ;;  %v5434_v21 = vand.u32 4294901760, %v98_v12  ;;  %v6921_v4 = vand.u32 4294901760, %v5416_v32 }
  0xf6   :  { %2085 = vmatprep.subr.mxu0 %v7282_v63  ;;  %2218 = vmatprep.subr.mxu1 %v7220_v9  ;;  %v7286_v60 = vand.u32 4294901760, %v7285_v2  ;;  %v5377_v9 = vsub.f32 %v116_v54, %v5351_v31  ;;  %v7292_v54 = vand.u32 4294901760, %v5128_v5  ;;  %v92_v5 = vld [vmem:[%s6700_s1 + $0x230] sm:$0xff]  ;;  %v6920_v44 = vand.u32 4294901760, %v5401_v56  ;;  %v86_v63 = vld [vmem:[%s6700_s1 + $0x200] sm:$0xff] }
  0xf7   :  { %2089 = vmatpush1.msra.mxu0 %v7284_v17  ;;  %2220 = vmatpush1.msra.mxu1 %v7222_v13  ;;  %v105_v13 = vld [vmem:[%s6700_s1 + $0x298] sm:$0xff]  ;;  %7299 = vst [vmem:[#allocation13_spill] sm:$0xff] %v5434_v21 }
  0xf8   :  { %2093 = vmatprep.subr.mxu0 %v7286_v60  ;;  %2222 = vmatprep.subr.mxu1 %v7225_v27  ;;  %v104_v27 = vld [vmem:[%s6700_s1 + $0x290] sm:$0xff]  ;;  %v5406_v0 = vand.u32 4294901760, %v105_v13  ;;  %v87_v60 = vld [vmem:[%s6700_s1 + $0x208] sm:$0xff] }
  0xf9   :  { %2097 = vmatpush1.msra.mxu0 %v7288_v28  ;;  %2224 = vmatpush1.msra.mxu1 %v7227_v58  ;;  %v99_v58 = vld [vmem:[%s6700_s1 + $0x268] sm:$0xff]  ;;  %v5470_v28 = vand.u32 4294901760, %v86_v63 }
  0xfa   :  { %2101 = vmatprep.subr.mxu0 %v7289_v37  ;;  %2226 = vmatprep.subr.mxu1 %v7228_v11  ;;  %v7291_v11 = vand.u32 4294901760, %v5124_v62  ;;  %v5418_v62 = vand.u32 4294901760, %v104_v27  ;;  %v5426_v8 = vand.u32 4294901760, %v99_v58  ;;  %v5455_v17 = vsub.f32 %v105_v13, %v5406_v0 }
  0xfb   :  { %2105 = vmatpush1.msra.mxu0 %v7290_v10  ;;  %2228 = vmatpush1.msra.mxu1 %v7230_v51  ;;  %v6922_v51 = vand.u32 4294901760, %v5377_v9  ;;  %7303 = vst [vmem:[#allocation33_spill] sm:$0xff] %v5470_v28  ;;  %v5481_v37 = vsub.f32 %v98_v12, %v5434_v21  ;;  %v80_v10 = vld [vmem:[%s6700_s1 + $0x1d0] sm:$0xff]  ;;  %v5498_v12 = vand.u32 4294901760, %v87_v60 }
  0xfc   :  { %2109 = vmatprep.subr.mxu0 %v7291_v11  ;;  %2230 = vmatprep.subr.mxu1 %v7233_v14  ;;  %v93_v14 = vld [vmem:[%s6700_s1 + $0x238] sm:$0xff]  ;;  %7296 = vst [vmem:[#allocation36_spill] sm:$0xff] %v5426_v8  ;;  %v5460_v2 = vsub.f32 %v104_v27, %v5418_v62  ;;  %v5476_v13 = vsub.f32 %v99_v58, %v5426_v8  ;;  %v7304_v58 = vld [vmem:[#allocation46_spill] sm:$0xff] }
  0xfd   :  { %2113 = vmatpush1.msra.mxu0 %v7292_v54  ;;  %2232 = vmatpush1.msra.mxu1 %v7293_v59  ;;  %v5447_v16 = vand.u32 4294901760, %v93_v14  ;;  %v5452_v38 = vsub.f32 %v5377_v9, %v6922_v51  ;;  %v5487_v27 = vsub.f32 %v5401_v56, %v6920_v44  ;;  %7305 = vst [vmem:[#allocation15_spill] sm:$0xff] %v5498_v12  ;;  %v75_v59 = vld [vmem:[%s6700_s1 + $0x1a8] sm:$0xff] }
  0xfe   :  { %2147 = vmatprep.subr.mxu0 %v7294_v33  ;;  %2234 = vmatprep.subr.mxu1 %v7295_v55  ;;  %v69_v33 = vld [vmem:[%s6700_s1 + $0x178] sm:$0xff]  ;;  %v7307_v44 = vld [vmem:[#allocation47_spill] sm:$0xff]  ;;  %v5558_v54 = vsub.f32 %v87_v60, %v5498_v12 }
  0xff   :  { %2151 = vmatpush2.msra.mxu0 %v7297_v23  ;;  %2153 = vmatprep.mubr.f32.mxu0 %v7298_v30  ;;  %7301 = vst [vmem:[#allocation14_spill] sm:$0xff] %v5447_v16  ;;  %v2489_v11 = vand.u32 4294901760, %v5452_v38  ;;  %v5508_v55 = vsub.f32 %v93_v14, %v5447_v16  ;;  %v5518_v23 = vsub.f32 %v5416_v32, %v6921_v4  ;;  %v68_v14 = vld [vmem:[%s6700_s1 + $0x170] sm:$0xff]  ;;  %v2495_v22 = vand.u32 4294901760, %v5487_v27  ;;  %v63_v27 = vld [vmem:[%s6700_s1 + $0x148] sm:$0xff] }
 0x100   :  { %2236 = vmatpush1.msra.mxu1 %v4993_v40  ;;  %2155 = vmatmul.mubr.f32.vlgmr.msra.gmra.mxu0 %v7300_v61  ;;  %v5462_v40 = vand.u32 4294901760, %v92_v5  ;;  %v5539_v38 = vand.u32 4294901760, %v75_v59  ;;  %v5542_v46 = vand.u32 4294901760, %v69_v33  ;;  %v5552_v52 = vand.u32 4294901760, %v68_v14 }
 0x101   :  { %2238 = vmatprep.subr.mxu1 %v5033_v43  ;;  %2317 = vmatprep.subr.mxu0 %v5346_v20  ;;  %v81_v43 = vld [vmem:[%s6700_s1 + $0x1d8] sm:$0xff]  ;;  %v7324_v48 = vand.u32 4294901760, %v5508_v55 }
 0x102   :  { %7302 = vst [vmem:[#allocation45_spill] sm:$0xff] %v5462_v40  ;;  %2240 = vmatpush1.msra.mxu1 %v5023_v47  ;;  %2319 = vmatpush1.msra.mxu0 %v5351_v31  ;;  %v2483_v47 = vand.u32 4294901760, %v5439_v26  ;;  %v5520_v26 = vand.u32 4294901760, %v81_v43  ;;  %7310 = vst [vmem:[#allocation4_spill] sm:$0xff] %v5539_v38  ;;  %v5602_v25 = vsub.f32 %v69_v33, %v5542_v46 }
 0x103   :  { %2242 = vmatprep.subr.mxu1 %v5050_v1  ;;  %2321 = vmatprep.subr.mxu0 %v5368_v6  ;;  %v74_v1 = vld [vmem:[%s6700_s1 + $0x1a0] sm:$0xff]  ;;  %7311 = vst [vmem:[#allocation18_spill] sm:$0xff] %v5542_v46  ;;  %7313 = vst [vmem:[#allocation20_spill] sm:$0xff] %v5552_v52  ;;  %v5614_v3 = vsub.f32 %v68_v14, %v5552_v52 }
 0x104   :  { %2161 = vmatprep.mubr.f32.mxu0 %v7304_v58  ;;  %2244 = vmatpush1.msra.mxu1 %v5053_v35  ;;  %v5513_v35 = vsub.f32 %v92_v5, %v5462_v40  ;;  %7306 = vst [vmem:[#allocation16_spill] sm:$0xff] %v5520_v26  ;;  %v5531_v5 = vand.u32 4294901760, %v80_v10  ;;  %v5534_v51 = vand.u32 4294901760, %v74_v1  ;;  %v5570_v19 = vsub.f32 %v81_v43, %v5520_v26  ;;  %v62_v43 = vld [vmem:[%s6700_s1 + $0x140] sm:$0xff] }
 0x105   :  { %2323 = vmatpush1.msra.mxu0 %v5382_v41  ;;  %2246 = vmatprep.subr.mxu1 %v5088_v24  ;;  %v5529_v24 = vsub.f32 %v86_v63, %v5470_v28  ;;  %v7312_v63 = vand.u32 4294901760, %v5455_v17  ;;  %7322 = vst [vmem:[#allocation29_spill] sm:$0xff] %v5602_v25  ;;  %7325 = vst [vmem:[#allocation31_spill] sm:$0xff] %v5614_v3  ;;  %v50_v14 = vld [vmem:[%s6700_s1 + $0xe0] sm:$0xff] }
 0x106   :  { %2163 = vmatmul.mubr.f32.gmra.mxu0 %v7307_v44  ;;  %2325 = vmatprep.subr.mxu0 %v5406_v0  ;;  %7308 = vst [vmem:[#allocation2_spill] sm:$0xff] %v5531_v5  ;;  %7309 = vst [vmem:[#allocation17_spill] sm:$0xff] %v5534_v51  ;;  %v5575_v60 = vsub.f32 %v80_v10, %v5531_v5  ;;  %v7319_v10 = vand.u32 4294901760, %v5481_v37  ;;  %v7326_v50 = vand.u32 4294901760, %v5513_v35 }
 0x107   :  { %2248 = vmatpush1.msra.mxu1 %v5099_v18  ;;  %2327 = vmatpush1.msra.mxu0 %v5418_v62  ;;  %v5549_v4 = vsub.f32 %v5455_v17, %v7312_v63  ;;  %v7315_v63 = vand.u32 4294901760, %v5460_v2 }
 0x108   :  { %2280 = vmatprep.subr.mxu1 %v5106_v7  ;;  %2329 = vmatprep.subr.mxu0 %v5426_v8  ;;  %v2501_v7 = vand.u32 4294901760, %v5518_v23  ;;  %v5594_v36 = vsub.f32 %v5481_v37, %v7319_v10  ;;  %v5611_v10 = vsub.f32 %v5508_v55, %v7324_v48  ;;  %v57_v48 = vld [vmem:[%s6700_s1 + $0x118] sm:$0xff] }
 0x109   :  { %2169 = vmatprep.mubr.f32.mxu0 %v7314_v49  ;;  %2282 = vmatpush2.msra.mxu1 %v5116_v42  ;;  %v5566_v45 = vsub.f32 %v5460_v2, %v7315_v63  ;;  %v7316_v42 = vand.u32 4294901760, %v5476_v13  ;;  %v5583_v63 = vsub.f32 %v74_v1, %v5534_v51  ;;  %v5599_v1 = vsub.f32 %v75_v59, %v5539_v38 }
 0x10a   :  { %2284 = vmatprep.mubr.f32.mxu1 %v7298_v30  ;;  %2331 = vmatpush1.msra.mxu0 %v5434_v21  ;;  %v2507_v18 = vand.u32 4294901760, %v5549_v4  ;;  %v5624_v4 = vand.u32 4294901760, %v62_v43  ;;  %v2531_v34 = vand.u32 4294901760, %v5611_v10 }
 0x10b   :  { %v5580_v23 = vsub.f32 %v5476_v13, %v7316_v42  ;;  %7317 = vst [vmem:[#allocation19_spill] sm:$0xff] %v5583_v63  ;;  %2171 = vmatmul.mubr.f32.gmra.mxu0 %v7318_v15  ;;  %2286 = vmatmul.mubr.f32.vlgmr.msra.gmra.mxu1 %v7300_v61  ;;  %v5596_v42 = vand.u32 4294901760, %v63_v27  ;;  %7321 = vst [vmem:[#allocation21_spill] sm:$0xff] %v5599_v1  ;;  %v2513_v33 = vand.u32 4294901760, %v5566_v45  ;;  %v7328_v45 = vand.u32 4294901760, %v5529_v24 }
 0x10c   :  { %2333 = vmatprep.subr.mxu0 %v5447_v16  ;;  %2484 = vmatprep.subr.mxu1 %v2483_v47  ;;  %v5622_v47 = vsub.f32 %v5513_v35, %v7326_v50  ;;  %7327 = vst [vmem:[#allocation3_spill] sm:$0xff] %v5624_v4  ;;  %v56_v50 = vld [vmem:[%s6700_s1 + $0x110] sm:$0xff]  ;;  %v5672_v10 = vsub.f32 %v62_v43, %v5624_v4  ;;  %v7337_v43 = vand.u32 4294901760, %v5575_v60  ;;  %v7338_v16 = vand.u32 4294901760, %v5583_v63 }
 0x10d   :  { %7320 = vst [vmem:[#allocation23_spill] sm:$0xff] %v5596_v42  ;;  %2335 = vmatpush1.msra.mxu0 %v5462_v40  ;;  %2490 = vmatpush1.msra.mxu1 %v2489_v11  ;;  %v2519_v11 = vand.u32 4294901760, %v5580_v23  ;;  %v5635_v59 = vsub.f32 %v5529_v24, %v7328_v45  ;;  %v51_v23 = vld [vmem:[%s6700_s1 + $0xe8] sm:$0xff]  ;;  %v5662_v40 = vand.u32 4294901760, %v57_v48  ;;  %v5679_v39 = vand.u32 4294901760, %v56_v50 }
 0x10e   :  { %2337 = vmatprep.subr.mxu0 %v5498_v12  ;;  %2496 = vmatprep.subr.mxu1 %v2495_v22  ;;  %v2525_v22 = vand.u32 4294901760, %v5594_v36  ;;  %v5651_v12 = vsub.f32 %v63_v27, %v5596_v42  ;;  %v7332_v36 = vand.u32 4294901760, %v5558_v54  ;;  %7333 = vst [vmem:[#allocation6_spill] sm:$0xff] %v5672_v10  ;;  %v45_v27 = vld [vmem:[%s6700_s1 + $0xb8] sm:$0xff]  ;;  %v5698_v21 = vsub.f32 %v5583_v63, %v7338_v16  ;;  %v39_v16 = vld [vmem:[%s6700_s1 + $0x88] sm:$0xff] }
 0x10f   :  { %2177 = vmatprep.mubr.f32.mxu0 %v7329_v29  ;;  %2292 = vmatprep.mubr.f32.mxu1 %v7304_v58  ;;  %7335 = vst [vmem:[#allocation7_spill] sm:$0xff] %v5679_v39 }
 0x110   :  { %7330 = vst [vmem:[#allocation22_spill] sm:$0xff] %v5651_v12  ;;  %2339 = vmatpush1.msra.mxu0 %v5470_v28  ;;  %2502 = vmatpush1.msra.mxu1 %v2501_v7  ;;  %v5660_v58 = vsub.f32 %v5558_v54, %v7332_v36  ;;  %v2537_v7 = vand.u32 4294901760, %v5622_v47  ;;  %v7334_v36 = vand.u32 4294901760, %v5570_v19  ;;  %v5684_v28 = vpop.f32.mrf.mxu0 }
 0x111   :  { %2179 = vmatmul.mubr.f32.gmra.mxu0 %v7239_v53  ;;  %2294 = vmatmul.mubr.f32.gmra.mxu1 %v7307_v44  ;;  %7336 = vst [vmem:[#allocation24_spill] sm:$0xff] %v5684_v28  ;;  %v5691_v44 = vsub.f32 %v5575_v60, %v7337_v43  ;;  %v44_v28 = vld [vmem:[%s6700_s1 + $0xb0] sm:$0xff]  ;;  %v5709_v43 = vand.u32 4294901760, %v50_v14 }
 0x112   :  { %v5677_v45 = vsub.f32 %v5570_v19, %v7334_v36  ;;  %2341 = vmatprep.subr.mxu0 %v5520_v26  ;;  %2508 = vmatprep.subr.mxu1 %v2507_v18  ;;  %v5693_v36 = vand.u32 4294901760, %v51_v23  ;;  %v7339_v18 = vand.u32 4294901760, %v5599_v1  ;;  %v7341_v26 = vand.u32 4294901760, %v5602_v25 }
 0x113   :  { %2343 = vmatpush1.msra.mxu0 %v5531_v5  ;;  %2514 = vmatpush1.msra.mxu1 %v2513_v33  ;;  %7340 = vst [vmem:[#allocation25_spill] sm:$0xff] %v5709_v43  ;;  %v5720_v5 = vpop.f32.mrf.mxu1  ;;  %v2543_v33 = vand.u32 4294901760, %v5660_v58  ;;  %v5740_v58 = vand.u32 4294901760, %v44_v28 }
 0x114   :  { %v5707_v47 = vsub.f32 %v5599_v1, %v7339_v18  ;;  %v5714_v8 = vsub.f32 %v5602_v25, %v7341_v26  ;;  %7342 = vst [vmem:[#allocation27_spill] sm:$0xff] %v5720_v5  ;;  %2345 = vmatprep.subr.mxu0 %v5539_v38  ;;  %2520 = vmatprep.subr.mxu1 %v2519_v11  ;;  %v5724_v18 = vand.u32 4294901760, %v45_v27  ;;  %v7344_v1 = vand.u32 4294901760, %v5614_v3  ;;  %v38_v5 = vld [vmem:[%s6700_s1 + $0x80] sm:$0xff]  ;;  %v5746_v38 = vpop.f32.mrf.mxu0 }
 0x115   :  { %v5732_v25 = vsub.f32 %v57_v48, %v5662_v40  ;;  %2300 = vmatprep.mubr.f32.mxu1 %v7314_v49  ;;  %2347 = vmatpush1.msra.mxu0 %v5534_v51  ;;  %v2555_v63 = vand.u32 4294901760, %v5677_v45  ;;  %v5738_v11 = vsub.f32 %v56_v50, %v5679_v39  ;;  %7347 = vst [vmem:[#allocation10_spill] sm:$0xff] %v5746_v38  ;;  %v2561_v48 = vand.u32 4294901760, %v5691_v44  ;;  %v33_v50 = vld [vmem:[%s6700_s1 + $0x58] sm:$0xff] }
 0x116   :  { %7343 = vst [vmem:[#allocation28_spill] sm:$0xff] %v5724_v18  ;;  %v5729_v26 = vsub.f32 %v5614_v3, %v7344_v1  ;;  %2526 = vmatpush1.msra.mxu1 %v2525_v22  ;;  %2349 = vmatprep.subr.mxu0 %v5542_v46  ;;  %v2573_v45 = vand.u32 4294901760, %v5698_v21  ;;  %v5751_v49 = vand.u32 4294901760, %v39_v16  ;;  %v5757_v51 = vsub.f32 %v51_v23, %v5693_v36  ;;  %v32_v23 = vld [vmem:[%s6700_s1 + $0x50] sm:$0xff]  ;;  %v5773_v46 = vpop.f32.mrf.mxu1  ;;  %v5807_v3 = vpop.f32.mrf.mxu0 }
 0x117   :  { %7345 = vst [vmem:[#allocation9_spill] sm:$0xff] %v5732_v25  ;;  %7346 = vst [vmem:[#allocation30_spill] sm:$0xff] %v5738_v11  ;;  %2302 = vmatmul.mubr.f32.gmra.mxu1 %v7318_v15  ;;  %2532 = vmatprep.subr.mxu1 %v2531_v34  ;;  %v2567_v22 = vand.u32 4294901760, %v5707_v47  ;;  %v5762_v1 = vsub.f32 %v50_v14, %v5709_v43  ;;  %v2579_v44 = vand.u32 4294901760, %v5714_v8  ;;  %v7350_v21 = vand.u32 4294901760, %v5651_v12 }
 0x118   :  { %7348 = vst [vmem:[#allocation32_spill] sm:$0xff] %v5757_v51  ;;  %7351 = vst [vmem:[#allocation8_spill] sm:$0xff] %v5773_v46  ;;  %v123_v34 = vld [vmem:[%s6700_s1 + $0x328] sm:$0xf]  ;;  %2351 = vmatpush1.msra.mxu0 %v5552_v52  ;;  %2538 = vmatpush1.msra.mxu1 %v2537_v7  ;;  %v2585_v8 = vand.u32 4294901760, %v5729_v26  ;;  %v5780_v14 = vand.u32 4294901760, %v38_v5  ;;  %v5787_v15 = vsub.f32 %v45_v27, %v5724_v18 }
 0x119   :  { %7349 = vst [vmem:[#allocation26_spill] sm:$0xff] %v5762_v1  ;;  %v5768_v38 = vsub.f32 %v5651_v12, %v7350_v21  ;;  %v27_v21 = vld [vmem:[%s6700_s1 + $0x28] sm:$0xff]  ;;  %v122_v46 = vld [vmem:[%s6700_s1 + $0x320] sm:$0xf]  ;;  %2353 = vmatprep.subr.mxu0 %v5596_v42  ;;  %2544 = vmatprep.subr.mxu1 %v2543_v33  ;;  %v5794_v7 = vsub.f32 %v44_v28, %v5740_v58  ;;  %v7353_v26 = vand.u32 4294901760, %v5672_v10  ;;  %v5801_v52 = vand.u32 4294901760, %v33_v50  ;;  %v5809_v42 = vpop.f32.mrf.mxu1 }
 0x11a   :  { %7352 = vst [vmem:[#allocation67_spill] sm:$0xff] %v5787_v15  ;;  %v26_v12 = vld [vmem:[%s6700_s1 + $0x20] sm:$0xff]  ;;  %7354 = vst [vmem:[#allocation68_spill] sm:$0xff] %v5807_v3  ;;  %2308 = vmatprep.mubr.f32.mxu1 %v7329_v29  ;;  %2355 = vmatpush1.msra.mxu0 %v5624_v4  ;;  %v5813_v28 = vand.u32 4294901760, %v32_v23  ;;  %v5818_v27 = vsub.f32 %v39_v16, %v5751_v49  ;;  %v151_v4 = vsel %vm137_vm0, %v122_v46, 0  ;;  %v7357_v16 = vand.u32 4294901760, %v5732_v25 }
 0x11b   :  { %v5799_v47 = vsub.f32 %v5672_v10, %v7353_v26  ;;  %7355 = vst [vmem:[#allocation69_spill] sm:$0xff] %v5809_v42  ;;  %v154_v26 = vsel %vm137_vm0, %v123_v34, 0  ;;  %v7356_v10 = vand.u32 4294901760, %v5635_v59  ;;  %2357 = vmatprep.subr.mxu0 %v5662_v40  ;;  %v2591_v3 = vand.u32 4294901760, %v5768_v38  ;;  %2310 = vmatmul.mubr.f32.gmra.mxu1 %v7239_v53  ;;  %v5848_v53 = vpop.f32.mrf.mxu0  ;;  %s3780_s1 = smov 127  }
 0x11c   :  { %v5824_v42 = vand.u32 4294901760, %v27_v21  ;;  %v5830_v34 = vsub.f32 %v38_v5, %v5780_v14  ;;  %v2602_v59 = vsub.f32 %v5732_v25, %v7357_v16  ;;  %2359 = vmatpush1.msra.mxu0 %v5679_v39  ;;  %v7358_v29 = vand.u32 4294901760, %v5738_v11  ;;  %7359 = vst [vmem:[#allocation70_spill] sm:$0xff] %v5848_v53  ;;  %v5850_v16 = vpop.f32.mrf.mxu1  ;;  %2714 = vmatprep.mubr.f32.mxu1 %v7298_v30  ;;  %v7397_v30 = vld [vmem:[#allocation15_spill] sm:$0xff] }
 0x11d   :  { %2550 = vmatpush1.msra.mxu1 %v7356_v10  ;;  %v5835_v10 = vand.u32 4294901760, %v26_v12  ;;  %v5842_v33 = vand.u32 4294901760, %v154_v26  ;;  %7360 = vst [vmem:[#allocation71_spill] sm:$0xff] %v5850_v16  ;;  %2361 = vmatprep.subr.mxu0 %v5693_v36  ;;  %v7362_v38 = vand.u32 4294901760, %v5757_v51  ;;  %v5859_v39 = vand.u32 4294901760, %v151_v4 }
 0x11e   :  { %2556 = vmatprep.subr.mxu1 %v2555_v63  ;;  %v2608_v46 = vsub.f32 %v5738_v11, %v7358_v29  ;;  %v5846_v63 = vsub.f32 %v33_v50, %v5801_v52  ;;  %2363 = vmatpush1.msra.mxu0 %v5709_v43  ;;  %v2597_v50 = vand.u32 4294901760, %v5799_v47  ;;  %v7363_v53 = vand.u32 4294901760, %v5762_v1 }
 0x11f   :  { %2562 = vmatpush1.msra.mxu1 %v2561_v48  ;;  %v5854_v48 = vsub.f32 %v32_v23, %v5813_v28  ;;  %v2614_v29 = vsub.f32 %v5757_v51, %v7362_v38  ;;  %v5868_v23 = vsub.f32 %v27_v21, %v5824_v42  ;;  %2365 = vmatprep.subr.mxu0 %v5724_v18  ;;  %v2603_v38 = vand.u32 4294901760, %v2602_v59  ;;  %v5888_v18 = vpop.f32.mrf.mxu1 }
 0x120   :  { %2568 = vmatprep.subr.mxu1 %v2567_v22  ;;  %v2620_v22 = vsub.f32 %v5762_v1, %v7363_v53  ;;  %v5872_v16 = vsub.f32 %v26_v12, %v5835_v10  ;;  %v7364_v5 = vand.u32 4294901760, %v5787_v15  ;;  %2367 = vmatpush1.msra.mxu0 %v5740_v58  ;;  %v2609_v53 = vand.u32 4294901760, %v2608_v46  ;;  %v5886_v12 = vpop.f32.mrf.mxu0  ;;  %7367 = vst [vmem:[#allocation74_spill] sm:$0xff] %v5888_v18 }
 0x121   :  { %7361 = vst [vmem:[#allocation72_spill] sm:$0xff] %v5854_v48  ;;  %2574 = vmatpush1.msra.mxu1 %v2573_v45  ;;  %v7365_v21 = vand.u32 4294901760, %v5794_v7  ;;  %v5884_v59 = vsub.f32 %v154_v26, %v5842_v33  ;;  %7366 = vst [vmem:[#allocation73_spill] sm:$0xff] %v5886_v12  ;;  %2369 = vmatprep.subr.mxu0 %v5751_v49  ;;  %v7368_v46 = vand.u32 4294901760, %v5818_v27 }
 0x122   :  { %2580 = vmatprep.subr.mxu1 %v2579_v44  ;;  %v2626_v45 = vsub.f32 %v5787_v15, %v7364_v5  ;;  %v2615_v5 = vand.u32 4294901760, %v2614_v29  ;;  %2371 = vmatpush1.msra.mxu0 %v5780_v14  ;;  %v2621_v26 = vand.u32 4294901760, %v2620_v22  ;;  %v7369_v29 = vand.u32 4294901760, %v5830_v34  ;;  %v5910_v47 = vpop.f32.mrf.mxu0 }
 0x123   :  { %2586 = vmatpush1.msra.mxu1 %v2585_v8  ;;  %v2632_v43 = vsub.f32 %v5794_v7, %v7365_v21  ;;  %v5892_v8 = vsub.f32 %v151_v4, %v5859_v39  ;;  %v2638_v21 = vsub.f32 %v5818_v27, %v7368_v46  ;;  %2373 = vmatprep.subr.mxu0 %v5801_v52  ;;  %v7370_v44 = vand.u32 4294901760, %v5846_v63 }
 0x124   :  { %2592 = vmatprep.subr.mxu1 %v2591_v3  ;;  %v2627_v3 = vand.u32 4294901760, %v2626_v45  ;;  %v2644_v4 = vsub.f32 %v5830_v34, %v7369_v29  ;;  %2375 = vmatpush1.msra.mxu0 %v5813_v28  ;;  %7371 = vst [vmem:[#allocation75_spill] sm:$0xff] %v5910_v47  ;;  %v7373_v29 = vand.u32 4294901760, %v5854_v48  ;;  %v5931_v47 = vpop.f32.mrf.mxu0 }
 0x125   :  { %2598 = vmatpush1.msra.mxu1 %v2597_v50  ;;  %v2633_v46 = vand.u32 4294901760, %v2632_v43  ;;  %v2650_v50 = vsub.f32 %v5846_v63, %v7370_v44  ;;  %2377 = vmatprep.subr.mxu0 %v5824_v42  ;;  %v2639_v45 = vand.u32 4294901760, %v2638_v21  ;;  %v7376_v43 = vand.u32 4294901760, %v5884_v59 }
 0x126   :  { %2604 = vmatprep.subr.mxu1 %v2603_v38  ;;  %v5912_v38 = vpop.f32.mrf.mxu1  ;;  %v2656_v12 = vsub.f32 %v5854_v48, %v7373_v29  ;;  %2379 = vmatpush1.msra.mxu0 %v5835_v10  ;;  %v2645_v22 = vand.u32 4294901760, %v2644_v4  ;;  %v7379_v4 = vand.u32 4294901760, %v5892_v8 }
 0x127   :  { %2610 = vmatpush1.msra.mxu1 %v2609_v53  ;;  %7372 = vst [vmem:[#allocation76_spill] sm:$0xff] %v5912_v38  ;;  %v7374_v53 = vand.u32 4294901760, %v5868_v23  ;;  %2411 = vmatprep.subr.mxu0 %v5842_v33  ;;  %v2651_v29 = vand.u32 4294901760, %v2650_v50  ;;  %v7394_v38 = vld [vmem:[#allocation45_spill] sm:$0xff] }
 0x128   :  { %2616 = vmatprep.subr.mxu1 %v2615_v5  ;;  %v7375_v5 = vand.u32 4294901760, %v5872_v16  ;;  %2413 = vmatpush2.msra.mxu0 %v5859_v39  ;;  %v5933_v18 = vpop.f32.mrf.mxu1 }
 0x129   :  { %2622 = vmatpush1.msra.mxu1 %v2621_v26  ;;  %v2662_v44 = vsub.f32 %v5868_v23, %v7374_v53  ;;  %v2704_v26 = vsub.f32 %v5884_v59, %v7376_v43  ;;  %7377 = vst [vmem:[#allocation77_spill] sm:$0xff] %v5933_v18  ;;  %v7378_v53 = vld [vmem:[#allocation43_spill] sm:$0xff]  ;;  %2748 = vmatprep.subr.mxu0 %v5371_v57 }
 0x12a   :  { %2628 = vmatprep.subr.mxu1 %v2627_v3  ;;  %v2668_v21 = vsub.f32 %v5872_v16, %v7375_v5  ;;  %2419 = vmatprep.mubr.f32.mxu0 %v7378_v53  ;;  %v2657_v3 = vand.u32 4294901760, %v2656_v12  ;;  %v2710_v5 = vsub.f32 %v5892_v8, %v7379_v4  ;;  %v5943_v53 = vpop.f32.mrf.mxu0  ;;  %v5945_v12 = vpop.f32.mrf.mxu1  ;;  %v7387_v4 = vld [vmem:[#allocation36_spill] sm:$0xff] }
 0x12b   :  { %2634 = vmatpush1.msra.mxu1 %v2633_v46  ;;  %v7380_v46 = vld [vmem:[#allocation44_spill] sm:$0xff]  ;;  %v2663_v50 = vand.u32 4294901760, %v2662_v44  ;;  %v2705_v18 = vand.u32 4294901760, %v2704_v26  ;;  %7381 = vst [vmem:[#allocation43_spill] sm:$0xff] %v5945_v12  ;;  %v7393_v12 = vld [vmem:[#allocation31_spill] sm:$0xff] }
 0x12c   :  { %2640 = vmatprep.subr.mxu1 %v2639_v45  ;;  %2425 = vmatmul.mubr.f32.vlgmr.msra.gmra.mxu0 %v7380_v46  ;;  %v2669_v43 = vand.u32 4294901760, %v2668_v21  ;;  %v2711_v45 = vand.u32 4294901760, %v2710_v5  ;;  %v5949_v44 = vpop.f32.mrf.mxu1  ;;  %v7388_v5 = vld [vmem:[#allocation19_spill] sm:$0xff]  ;;  %v7389_v46 = vld [vmem:[#allocation13_spill] sm:$0xff] }
 0x12d   :  { %2646 = vmatpush1.msra.mxu1 %v2645_v22  ;;  %2751 = vmatpush1.msra.mxu0 %v5377_v9  ;;  %v5953_v22 = vpop.f32.mrf.mxu0 }
 0x12e   :  { %2652 = vmatprep.subr.mxu1 %v2651_v29  ;;  %2754 = vmatprep.subr.mxu0 %v5401_v56  ;;  %7382 = vst [vmem:[#allocation44_spill] sm:$0xff] %v5953_v22  ;;  %v5958_v21 = vpop.f32.mrf.mxu1  ;;  %v7399_v22 = vld [vmem:[#allocation33_spill] sm:$0xff] }
 0x12f   :  { %2658 = vmatpush1.msra.mxu1 %v2657_v3  ;;  %2757 = vmatpush1.msra.mxu0 %v5416_v32  ;;  %v7386_v3 = vld [vmem:[#allocation21_spill] sm:$0xff] }
 0x130   :  { %2664 = vmatprep.subr.mxu1 %v2663_v50  ;;  %2760 = vmatprep.subr.mxu0 %v5455_v17  ;;  %v5970_v29 = vpop.f32.mrf.mxu1 }
 0x131   :  { %2670 = vmatpush1.msra.mxu1 %v2669_v43  ;;  %2763 = vmatpush1.msra.mxu0 %v5460_v2  ;;  %7384 = vst [vmem:[#allocation79_spill] sm:$0xff] %v5970_v29  ;;  %v7391_v43 = vld [vmem:[#allocation29_spill] sm:$0xff]  ;;  %v7398_v29 = vld [vmem:[#allocation6_spill] sm:$0xff] }
 0x132   :  { %2706 = vmatprep.subr.mxu1 %v2705_v18  ;;  %2766 = vmatprep.subr.mxu0 %v5476_v13  ;;  %v5964_v18 = vpop.f32.mrf.mxu0  ;;  %v5982_v50 = vpop.f32.mrf.mxu1 }
 0x133   :  { %2712 = vmatpush2.msra.mxu1 %v2711_v45  ;;  %2769 = vmatpush1.msra.mxu0 %v5481_v37  ;;  %7383 = vst [vmem:[#allocation78_spill] sm:$0xff] %v5964_v18  ;;  %7390 = vst [vmem:[#allocation21_spill] sm:$0xff] %v5982_v50  ;;  %v7392_v45 = vld [vmem:[#allocation14_spill] sm:$0xff]  ;;  %v7401_v50 = vld [vmem:[#allocation16_spill] sm:$0xff] }
 0x134   :  { %2716 = vmatmul.mubr.f32.vlgmr.msra.gmra.mxu1 %v7300_v61  ;;  %2772 = vmatprep.subr.mxu0 %v5508_v55  ;;  %v5976_v26 = vpop.f32.mrf.mxu0  ;;  %v5994_v18 = vpop.f32.mrf.mxu1 }
 0x135   :  { %2920 = vmatprep.subr.mxu1 %v5346_v20  ;;  %2775 = vmatpush1.msra.mxu0 %v5513_v35  ;;  %7385 = vst [vmem:[#allocation80_spill] sm:$0xff] %v5976_v26  ;;  %v7396_v26 = vld [vmem:[#allocation22_spill] sm:$0xff]  ;;  %7400 = vst [vmem:[#allocation19_spill] sm:$0xff] %v5994_v18  ;;  %v7408_v18 = vld [vmem:[#allocation17_spill] sm:$0xff] }
 0x136   :  { %2922 = vmatpush1.msra.mxu1 %v5351_v31  ;;  %2778 = vmatprep.subr.mxu0 %v5558_v54  ;;  %v5988_v61 = vpop.f32.mrf.mxu0 }
 0x137   :  { %2924 = vmatprep.subr.mxu1 %v5368_v6  ;;  %2781 = vmatpush1.msra.mxu0 %v5529_v24  ;;  %7395 = vst [vmem:[#allocation36_spill] sm:$0xff] %v5988_v61  ;;  %v7404_v61 = vld [vmem:[#allocation2_spill] sm:$0xff] }
 0x138   :  { %2926 = vmatpush1.msra.mxu1 %v5382_v41  ;;  %2784 = vmatprep.subr.mxu0 %v5570_v19 }
 0x139   :  { %2928 = vmatprep.subr.mxu1 %v5406_v0  ;;  %2787 = vmatpush1.msra.mxu0 %v5575_v60 }
 0x13a   :  { %2930 = vmatpush1.msra.mxu1 %v5418_v62  ;;  %2790 = vmatprep.subr.mxu0 %v7386_v3 }
 0x13b   :  { %2932 = vmatprep.subr.mxu1 %v7387_v4  ;;  %2793 = vmatpush1.msra.mxu0 %v7388_v5 }
 0x13c   :  { %2934 = vmatpush1.msra.mxu1 %v7389_v46  ;;  %2796 = vmatprep.subr.mxu0 %v7391_v43 }
 0x13d   :  { %2936 = vmatprep.subr.mxu1 %v7392_v45  ;;  %2799 = vmatpush1.msra.mxu0 %v7393_v12  ;;  %v7402_v45 = vld [vmem:[#allocation61_spill] sm:$0xff] }
 0x13e   :  { %2938 = vmatpush1.msra.mxu1 %v7394_v38  ;;  %2802 = vmatprep.subr.mxu0 %v7396_v26  ;;  %v6000_v38 = vpop.f32.mrf.mxu0  ;;  %v7405_v26 = vld [vmem:[#allocation63_spill] sm:$0xff] }
 0x13f   :  { %2940 = vmatprep.subr.mxu1 %v7397_v30  ;;  %2805 = vmatpush1.msra.mxu0 %v7398_v29  ;;  %7403 = vst [vmem:[#allocation13_spill] sm:$0xff] %v6000_v38  ;;  %v7406_v29 = vld [vmem:[#allocation4_spill] sm:$0xff]  ;;  %v7411_v38 = vld [vmem:[#allocation66_spill] sm:$0xff] }
 0x140   :  { %2942 = vmatpush1.msra.mxu1 %v7399_v22  ;;  %2808 = vmatprep.subr.mxu0 %v5732_v25  ;;  %v6006_v22 = vpop.f32.mrf.mxu1 }
 0x141   :  { %2944 = vmatprep.subr.mxu1 %v7401_v50  ;;  %2435 = vmatprep.mubr.f32.mxu0 %v7402_v45  ;;  %7407 = vst [vmem:[#allocation29_spill] sm:$0xff] %v6006_v22  ;;  %v7409_v45 = vld [vmem:[#allocation18_spill] sm:$0xff]  ;;  %v7417_v50 = vld [vmem:[#allocation5_spill] sm:$0xff] }
 0x142   :  { %2811 = vmatpush1.msra.mxu0 %v5738_v11  ;;  %2946 = vmatpush1.msra.mxu1 %v7404_v61  ;;  %v6012_v11 = vpop.f32.mrf.mxu0  ;;  %v7416_v61 = vld [vmem:[#allocation27_spill] sm:$0xff] }
 0x143   :  { %2441 = vmatmul.mubr.f32.gmra.mxu0 %v7405_v26  ;;  %2814 = vmatprep.subr.mxu0 %v5757_v51  ;;  %7410 = vst [vmem:[#allocation31_spill] sm:$0xff] %v6012_v11  ;;  %v7412_v26 = vld [vmem:[#allocation20_spill] sm:$0xff]  ;;  %v7413_v51 = vld [vmem:[#allocation34_spill] sm:$0xff]  ;;  %v7421_v11 = vld [vmem:[#allocation47_spill] sm:$0xff] }
 0x144   :  { %2948 = vmatprep.subr.mxu1 %v7406_v29  ;;  %2817 = vmatpush1.msra.mxu0 %v5762_v1  ;;  %v6018_v29 = vpop.f32.mrf.mxu1  ;;  %v1076_v22 = vpop.f32.mrf.mxu0  ;;  %v7415_v1 = vld [vmem:[#allocation35_spill] sm:$0xff] }
 0x145   :  { %2950 = vmatpush1.msra.mxu1 %v7408_v18  ;;  %2820 = vmatprep.subr.mxu0 %v5787_v15  ;;  %7414 = vst [vmem:[#allocation15_spill] sm:$0xff] %v6018_v29  ;;  %v558_v18 = vadd.f32 %v7416_v61, %v7415_v1  ;;  %v7418_v15 = vld [vmem:[#allocation8_spill] sm:$0xff]  ;;  %v7422_v29 = vld [vmem:[#allocation3_spill] sm:$0xff] }
 0x146   :  { %2952 = vmatprep.subr.mxu1 %v7409_v45  ;;  %2451 = vmatprep.mubr.f32.mxu0 %v7411_v38  ;;  %v560_v25 = vadd.f32 %v7418_v15, %v7417_v50  ;;  %v7419_v45 = vld [vmem:[#allocation46_spill] sm:$0xff]  ;;  %v7420_v38 = vld [vmem:[#allocation23_spill] sm:$0xff]  ;;  %v6034_v15 = vpop.f32.mrf.mxu1  ;;  %v1078_v61 = vpop.f32.mrf.mxu0 }
 0x147   :  { %2823 = vmatpush1.msra.mxu0 %v5794_v7  ;;  %2954 = vmatpush1.msra.mxu1 %v7412_v26  ;;  %v725_v26 = vadd.f32 %v5931_v47, %v558_v18  ;;  %7423 = vst [vmem:[#allocation61_spill] sm:$0xff] %v6034_v15  ;;  %v7424_v1 = vld [vmem:[#allocation11_spill] sm:$0xff] }
 0x148   :  { %2457 = vmatmul.mubr.f32.gmra.mxu0 %v7413_v51  ;;  %2722 = vmatprep.mubr.f32.mxu1 %v7419_v45  ;;  %v727_v51 = vadd.f32 %v5943_v53, %v560_v25  ;;  %v7425_v25 = vld [vmem:[#allocation7_spill] sm:$0xff]  ;;  %v7426_v53 = vld [vmem:[#allocation12_spill] sm:$0xff] }
 0x149   :  { %2826 = vmatprep.subr.mxu0 %v5818_v27  ;;  %2956 = vmatprep.subr.mxu1 %v7420_v38  ;;  %v866_v50 = vadd.f32 %v5949_v44, %v725_v26  ;;  %v7429_v44 = vld [vmem:[#allocation25_spill] sm:$0xff] }
 0x14a   :  { %2724 = vmatmul.mubr.f32.gmra.mxu1 %v7421_v11  ;;  %2829 = vmatpush1.msra.mxu0 %v5830_v34  ;;  %v868_v47 = vadd.f32 %v5958_v21, %v727_v51  ;;  %v7427_v11 = vld [vmem:[#allocation50_spill] sm:$0xff]  ;;  %v7430_v51 = vld [vmem:[#allocation28_spill] sm:$0xff] }
 0x14b   :  { %2958 = vmatpush1.msra.mxu1 %v7422_v29  ;;  %2832 = vmatprep.subr.mxu0 %v5846_v63  ;;  %v1077_v45 = vadd.f32 %v1076_v22, %v866_v50  ;;  %v7431_v22 = vld [vmem:[#allocation39_spill] sm:$0xff]  ;;  %v7432_v50 = vld [vmem:[#allocation56_spill] sm:$0xff] }
 0x14c   :  { %2960 = vmatprep.subr.mxu1 %v5662_v40  ;;  %2467 = vmatprep.mubr.f32.mxu0 %v7424_v1  ;;  %v1079_v15 = vadd.f32 %v1078_v61, %v868_v47  ;;  %v7428_v1 = vld [vmem:[#allocation51_spill] sm:$0xff]  ;;  %v7433_v47 = vld [vmem:[#allocation40_spill] sm:$0xff] }
 0x14d   :  { %2835 = vmatpush1.msra.mxu0 %v5854_v48  ;;  %2962 = vmatpush1.msra.mxu1 %v7425_v25  ;;  %v1207_v18 = vpop.f32.mrf.mxu1 }
 0x14e   :  { %2473 = vmatmul.mubr.f32.gmra.mxu0 %v7426_v53  ;;  %2730 = vmatprep.mubr.f32.mxu1 %v7427_v11  ;;  %v6048_v21 = vadd.f32 %v1207_v18, %v1077_v45  ;;  %v7435_v45 = vld [vmem:[#allocation57_spill] sm:$0xff]  ;;  %v7437_v53 = vand.u32 4294901760, %v5401_v56  ;;  %v7438_v18 = vld [vmem:[#allocation48_spill] sm:$0xff]  ;;  %v7443_v56 = vand.u32 4294901760, %v5476_v13  ;;  %v7450_v13 = vand.u32 4294901760, %v5513_v35 }
 0x14f   :  { %2838 = vmatprep.subr.mxu0 %v5868_v23  ;;  %2964 = vmatprep.subr.mxu1 %v5693_v36  ;;  %v1209_v48 = vpop.f32.mrf.mxu1  ;;  %v7461_v35 = vand.u32 4294901760, %v7388_v5  ;;  %v7469_v5 = vld [vmem:[#allocation64_spill] sm:$0xff] }
 0x150   :  { %2732 = vmatmul.mubr.f32.gmra.mxu1 %v7428_v1  ;;  %2841 = vmatpush1.msra.mxu0 %v5872_v16  ;;  %v6050_v26 = vadd.f32 %v1209_v48, %v1079_v15  ;;  %v7434_v48 = vand.u32 4294901760, %v5371_v57  ;;  %v7436_v15 = vand.u32 4294901760, %v5377_v9  ;;  %v7440_v57 = vld [vmem:[#allocation49_spill] sm:$0xff]  ;;  %v7442_v9 = vand.u32 4294901760, %v5460_v2 }
 0x151   :  { %2966 = vmatpush1.msra.mxu1 %v7429_v44  ;;  %2874 = vmatprep.subr.mxu0 %v5884_v59  ;;  %v7449_v2 = vand.u32 4294901760, %v5508_v55  ;;  %v7456_v55 = vld [vmem:[#allocation53_spill] sm:$0xff] }
 0x152   :  { %2968 = vmatprep.subr.mxu1 %v7430_v51  ;;  %2877 = vmatpush2.msra.mxu0 %v5892_v8 }
 0x153   :  { %2880 = vmatprep.mubr.f32.mxu0 %v7431_v22  ;;  %2970 = vmatpush1.msra.mxu1 %v5740_v58  ;;  %v7439_v22 = vand.u32 4294901760, %v5416_v32  ;;  %v7445_v32 = vld [vmem:[#allocation41_spill] sm:$0xff] }
 0x154   :  { %2738 = vmatprep.mubr.f32.mxu1 %v7432_v50  ;;  %2883 = vmatmul.mubr.f32.vlgmr.msra.gmra.mxu0 %v7433_v47  ;;  %v7441_v47 = vand.u32 4294901760, %v5455_v17  ;;  %v7447_v17 = vld [vmem:[#allocation55_spill] sm:$0xff] }
 0x155   :  { %2972 = vmatprep.subr.mxu1 %v5751_v49  ;;  %3069 = vmatprep.subr.mxu0 %v7434_v48  ;;  %v7444_v48 = vld [vmem:[#allocation54_spill] sm:$0xff] }
 0x156   :  { %2740 = vmatmul.mubr.f32.gmra.mxu1 %v7435_v45  ;;  %3073 = vmatpush1.msra.mxu0 %v7436_v15  ;;  %v7446_v15 = vand.u32 4294901760, %v5481_v37  ;;  %v7452_v37 = vld [vmem:[#allocation60_spill] sm:$0xff] }
 0x157   :  { %2974 = vmatpush1.msra.mxu1 %v5780_v14  ;;  %3077 = vmatprep.subr.mxu0 %v7437_v53  ;;  %v7448_v53 = vld [vmem:[#allocation42_spill] sm:$0xff] }
 0x158   :  { %2976 = vmatprep.subr.mxu1 %v5801_v52  ;;  %2890 = vmatprep.mubr.f32.mxu0 %v7438_v18  ;;  %v7451_v18 = vand.u32 4294901760, %v5558_v54  ;;  %v7459_v54 = vand.u32 4294901760, %v7386_v3  ;;  %v7467_v3 = vld [vmem:[#allocation22_spill] sm:$0xff] }
 0x159   :  { %2978 = vmatpush1.msra.mxu1 %v5813_v28  ;;  %3081 = vmatpush1.msra.mxu0 %v7439_v22  ;;  %v7453_v22 = vld [vmem:[#allocation52_spill] sm:$0xff] }
 0x15a   :  { %2980 = vmatprep.subr.mxu1 %v5824_v42  ;;  %2893 = vmatmul.mubr.f32.gmra.mxu0 %v7440_v57  ;;  %v7454_v57 = vand.u32 4294901760, %v5529_v24  ;;  %v7464_v24 = vld [vmem:[#allocation14_spill] sm:$0xff] }
 0x15b   :  { %3085 = vmatprep.subr.mxu0 %v7441_v47  ;;  %2982 = vmatpush1.msra.mxu1 %v5835_v10 }
 0x15c   :  { %3089 = vmatpush1.msra.mxu0 %v7442_v9  ;;  %3014 = vmatprep.subr.mxu1 %v5842_v33  ;;  %v7473_v9 = vld [vmem:[#allocation9_spill] sm:$0xff] }
 0x15d   :  { %3093 = vmatprep.subr.mxu0 %v7443_v56  ;;  %2900 = vmatprep.mubr.f32.mxu0 %v7444_v48  ;;  %v7474_v56 = vand.u32 4294901760, %v7473_v9  ;;  %v7475_v48 = vld [vmem:[#allocation65_spill] sm:$0xff] }
 0x15e   :  { %3016 = vmatpush2.msra.mxu1 %v5859_v39  ;;  %3020 = vmatprep.mubr.f32.mxu1 %v7445_v32  ;;  %v7477_v32 = vld [vmem:[#allocation30_spill] sm:$0xff] }
 0x15f   :  { %3097 = vmatpush1.msra.mxu0 %v7446_v15  ;;  %3024 = vmatmul.mubr.f32.vlgmr.msra.gmra.mxu1 %v7448_v53  ;;  %v7478_v15 = vand.u32 4294901760, %v7477_v32  ;;  %v7480_v53 = vld [vmem:[#allocation32_spill] sm:$0xff] }
 0x160   :  { %2903 = vmatmul.mubr.f32.gmra.mxu0 %v7447_v17  ;;  %3101 = vmatprep.subr.mxu0 %v7449_v2  ;;  %v7479_v17 = vld [vmem:[#allocation2_spill] sm:$0xff]  ;;  %v7481_v2 = vand.u32 4294901760, %v7480_v53 }
 0x161   :  { %3266 = vmatprep.subr.mxu1 %v5346_v20  ;;  %3105 = vmatpush1.msra.mxu0 %v7450_v13  ;;  %v7455_v20 = vld [vmem:[#allocation62_spill] sm:$0xff]  ;;  %v7482_v13 = vld [vmem:[#allocation4_spill] sm:$0xff] }
 0x162   :  { %3268 = vmatpush1.msra.mxu1 %v5351_v31  ;;  %3109 = vmatprep.subr.mxu0 %v7451_v18  ;;  %v7457_v31 = vand.u32 4294901760, %v5570_v19  ;;  %v7462_v19 = vand.u32 4294901760, %v7391_v43  ;;  %v7472_v43 = vld [vmem:[#allocation33_spill] sm:$0xff]  ;;  %v7483_v18 = vld [vmem:[#allocation26_spill] sm:$0xff] }
 0x163   :  { %3270 = vmatprep.subr.mxu1 %v5368_v6  ;;  %2910 = vmatprep.mubr.f32.mxu0 %v7452_v37  ;;  %v7458_v6 = vand.u32 4294901760, %v5575_v60  ;;  %v7466_v60 = vld [vmem:[#allocation45_spill] sm:$0xff]  ;;  %v7484_v37 = vand.u32 4294901760, %v7483_v18 }
 0x164   :  { %3032 = vmatprep.mubr.f32.mxu1 %v7453_v22  ;;  %3113 = vmatpush1.msra.mxu0 %v7454_v57  ;;  %v7485_v22 = vld [vmem:[#allocation17_spill] sm:$0xff]  ;;  %v7486_v57 = vld [vmem:[#allocation67_spill] sm:$0xff] }
 0x165   :  { %3272 = vmatpush1.msra.mxu1 %v5382_v41  ;;  %2913 = vmatmul.mubr.f32.gmra.mxu0 %v7455_v20  ;;  %v7460_v41 = vld [vmem:[#allocation58_spill] sm:$0xff]  ;;  %v7487_v20 = vand.u32 4294901760, %v7486_v57  ;;  %v7516_v57 = vld [vmem:[#allocation36_spill] sm:$0xff] }
 0x166   :  { %3036 = vmatmul.mubr.f32.gmra.mxu1 %v7456_v55  ;;  %3117 = vmatprep.subr.mxu0 %v7457_v31  ;;  %v7488_v55 = vld [vmem:[#allocation18_spill] sm:$0xff] }
 0x167   :  { %3274 = vmatprep.subr.mxu1 %v5406_v0  ;;  %3121 = vmatpush1.msra.mxu0 %v7458_v6  ;;  %v7463_v0 = vld [vmem:[#allocation59_spill] sm:$0xff]  ;;  %v7489_v31 = vld [vmem:[#allocation10_spill] sm:$0xff] }
 0x168   :  { %3276 = vmatpush1.msra.mxu1 %v5418_v62  ;;  %3125 = vmatprep.subr.mxu0 %v7459_v54  ;;  %v7465_v62 = vand.u32 4294901760, %v7393_v12  ;;  %v7476_v12 = vld [vmem:[#allocation16_spill] sm:$0xff]  ;;  %v7490_v6 = vld [vmem:[#allocation71_spill] sm:$0xff] }
 0x169   :  { %3278 = vmatprep.subr.mxu1 %v7387_v4  ;;  %3044 = vmatprep.mubr.f32.mxu1 %v7460_v41  ;;  %v7468_v4 = vand.u32 4294901760, %v7467_v3  ;;  %v568_v54 = vadd.f32 %v7490_v6, %v7489_v31  ;;  %v7491_v41 = vand.u32 4294901760, %v5794_v7  ;;  %v7495_v3 = vand.u32 4294901760, %v5830_v34  ;;  %v7497_v7 = vld [vmem:[#allocation24_spill] sm:$0xff]  ;;  %v7518_v31 = vld [vmem:[#allocation29_spill] sm:$0xff] }
 0x16a   :  { %3129 = vmatpush1.msra.mxu0 %v7461_v35  ;;  %3280 = vmatpush1.msra.mxu1 %v7389_v46  ;;  %v7470_v46 = vld [vmem:[#allocation6_spill] sm:$0xff]  ;;  %v7492_v35 = vld [vmem:[#allocation20_spill] sm:$0xff]  ;;  %v7502_v34 = vand.u32 4294901760, %v5868_v23  ;;  %v7506_v23 = vld [vmem:[#allocation79_spill] sm:$0xff] }
 0x16b   :  { %3133 = vmatprep.subr.mxu0 %v7462_v19  ;;  %3048 = vmatmul.mubr.f32.gmra.mxu1 %v7463_v0  ;;  %v7471_v47 = vand.u32 4294901760, %v7470_v46  ;;  %v7493_v0 = vand.u32 4294901760, %v5818_v27  ;;  %v7499_v27 = vld [vmem:[#allocation21_spill] sm:$0xff] }
 0x16c   :  { %3282 = vmatprep.subr.mxu1 %v7464_v24  ;;  %3137 = vmatpush1.msra.mxu0 %v7465_v62  ;;  %v1215_v24 = vpop.f32.mrf.mxu1  ;;  %v7494_v62 = vld [vmem:[#allocation78_spill] sm:$0xff] }
 0x16d   :  { %3284 = vmatpush1.msra.mxu1 %v7466_v60  ;;  %3141 = vmatprep.subr.mxu0 %v7468_v4  ;;  %v737_v60 = vadd.f32 %v7494_v62, %v568_v54  ;;  %v7496_v4 = vand.u32 4294901760, %v5846_v63  ;;  %v3448_v62 = vrot.slane %v6050_v26, 6 }
 0x16e   :  { %3286 = vmatprep.subr.mxu1 %v7397_v30  ;;  %3056 = vmatprep.mubr.f32.mxu1 %v7469_v5  ;;  %v1084_v30 = vpop.f32.mrf.mxu0  ;;  %v7498_v5 = vld [vmem:[#allocation69_spill] sm:$0xff]  ;;  %v1217_v63 = vpop.f32.mrf.mxu1 }
 0x16f   :  { %3145 = vmatpush1.msra.mxu0 %v7471_v47  ;;  %3288 = vmatpush1.msra.mxu1 %v7472_v43  ;;  %v566_v46 = vadd.f32 %v7498_v5, %v7497_v7  ;;  %v880_v47 = vadd.f32 %v7499_v27, %v737_v60  ;;  %v7500_v43 = vld [vmem:[#allocation72_spill] sm:$0xff] }
 0x170   :  { %3149 = vmatprep.subr.mxu0 %v7474_v56  ;;  %3060 = vmatmul.mubr.f32.gmra.mxu1 %v7475_v48  ;;  %v1086_v19 = vpop.f32.mrf.mxu0  ;;  %v7504_v48 = vand.u32 4294901760, %v5872_v16  ;;  %v7509_v16 = vld [vmem:[#allocation38_spill] sm:$0xff]  ;;  %v1223_v18 = vpop.f32.mrf.mxu1 }
 0x171   :  { %3290 = vmatprep.subr.mxu1 %v7476_v12  ;;  %3153 = vmatpush1.msra.mxu0 %v7478_v15  ;;  %v1087_v56 = vadd.f32 %v1086_v19, %v880_v47  ;;  %v3405_v12 = vrot.slane %v6048_v21, 3 }
 0x172   :  { %3292 = vmatpush1.msra.mxu1 %v7479_v17  ;;  %3157 = vmatprep.subr.mxu0 %v7481_v2  ;;  %v6172_v9 = vpop.f32.mrf.mxu0  ;;  %v7508_v17 = vld [vmem:[#allocation37_spill] sm:$0xff]  ;;  %v7512_v2 = vld [vmem:[#allocation70_spill] sm:$0xff]  ;;  %v1225_v54 = vpop.f32.mrf.mxu1 }
 0x173   :  { %3294 = vmatprep.subr.mxu1 %v7482_v13  ;;  %3161 = vmatpush1.msra.mxu0 %v7484_v37  ;;  %v6189_v53 = vadd.f32 %v1217_v63, %v1087_v56  ;;  %v7515_v37 = vld [vmem:[#allocation74_spill] sm:$0xff]  ;;  %v7521_v56 = vld [vmem:[#allocation43_spill] sm:$0xff] }
 0x174   :  { %3296 = vmatpush1.msra.mxu1 %v7485_v22  ;;  %3165 = vmatprep.subr.mxu0 %v7487_v20  ;;  %v1094_v15 = vpop.f32.mrf.mxu0  ;;  %v1231_v7 = vpop.f32.mrf.mxu1 }
 0x175   :  { %3298 = vmatprep.subr.mxu1 %v7488_v55  ;;  %3169 = vmatpush1.msra.mxu0 %v7491_v41 }
 0x176   :  { %3300 = vmatpush1.msra.mxu1 %v7492_v35  ;;  %3173 = vmatprep.subr.mxu0 %v7493_v0  ;;  %v7519_v35 = vld [vmem:[#allocation19_spill] sm:$0xff] }
 0x177   :  { %3302 = vmatprep.subr.mxu1 %v7420_v38  ;;  %3177 = vmatpush1.msra.mxu0 %v7495_v3  ;;  %v7501_v38 = vand.u32 4294901760, %v7500_v43 }
 0x178   :  { %3304 = vmatpush1.msra.mxu1 %v7422_v29  ;;  %3181 = vmatprep.subr.mxu0 %v7496_v4  ;;  %v7503_v29 = vld [vmem:[#allocation44_spill] sm:$0xff] }
 0x179   :  { %3306 = vmatprep.subr.mxu1 %v5662_v40  ;;  %3185 = vmatpush1.msra.mxu0 %v7501_v38  ;;  %v735_v40 = vadd.f32 %v7503_v29, %v566_v46  ;;  %v3445_v46 = vrot.slane %v6048_v21, 6 }
 0x17a   :  { %3308 = vmatpush1.msra.mxu1 %v7425_v25  ;;  %3189 = vmatprep.subr.mxu0 %v7502_v34  ;;  %v7505_v25 = vand.u32 4294901760, %v5884_v59  ;;  %v7510_v59 = vld [vmem:[#allocation46_spill] sm:$0xff] }
 0x17b   :  { %3310 = vmatprep.subr.mxu1 %v5693_v36  ;;  %3193 = vmatpush1.msra.mxu0 %v7504_v48  ;;  %v878_v32 = vadd.f32 %v7506_v23, %v735_v40  ;;  %v7507_v36 = vand.u32 4294901760, %v5892_v8  ;;  %v6197_v8 = vpop.f32.mrf.mxu0  ;;  %v7520_v40 = vld [vmem:[#allocation75_spill] sm:$0xff]  ;;  %v7523_v23 = vld [vmem:[#allocation77_spill] sm:$0xff] }
 0x17c   :  { %3312 = vmatpush1.msra.mxu1 %v7429_v44  ;;  %3227 = vmatprep.subr.mxu0 %v7505_v25  ;;  %v584_v48 = vadd.f32 %v7521_v56, %v7520_v40  ;;  %v7522_v25 = vld [vmem:[#allocation73_spill] sm:$0xff] }
 0x17d   :  { %3314 = vmatprep.subr.mxu1 %v7430_v51  ;;  %3231 = vmatpush2.msra.mxu0 %v7507_v36  ;;  %v1085_v44 = vadd.f32 %v1084_v30, %v878_v32  ;;  %v3489_v30 = vrot.slane %v6189_v53, 1  ;;  %v582_v32 = vadd.f32 %v7523_v23, %v7522_v25 }
 0x17e   :  { %3233 = vmatprep.mubr.f32.mxu0 %v7508_v17  ;;  %3316 = vmatpush1.msra.mxu1 %v5740_v58  ;;  %v3406_v58 = vrot.slane %v6050_v26, 3 }
 0x17f   :  { %3235 = vmatmul.mubr.f32.vlgmr.msra.gmra.mxu0 %v7509_v16  ;;  %3318 = vmatprep.subr.mxu1 %v5751_v49  ;;  %v6199_v51 = vadd.f32 %v1215_v24, %v1085_v44  ;;  %v7511_v49 = vld [vmem:[#allocation47_spill] sm:$0xff] }
 0x180   :  { %3417 = vrot.lane.b32.xlu0 %v3405_v12, %s3780_s1  ;;  %3320 = vmatpush1.msra.mxu1 %v5780_v14  ;;  %v7513_v14 = vld [vmem:[#allocation76_spill] sm:$0xff] }
 0x181   :  { %3241 = vmatprep.mubr.f32.mxu0 %v7510_v59  ;;  %3322 = vmatprep.subr.mxu1 %v5801_v52  ;;  %v576_v13 = vadd.f32 %v7513_v14, %v7512_v2  ;;  %v7514_v52 = vld [vmem:[#allocation68_spill] sm:$0xff]  ;;  %v3519_v24 = vrot.slane %v6199_v51, 4  ;;  %v3446_v60 = vrot.slane %v6199_v51, 6 }
 0x182   :  { %3364 = vmatprep.mubr.f32.mxu1 %v7508_v17  ;;  %3324 = vmatpush1.msra.mxu1 %v5813_v28  ;;  %v574_v22 = vadd.f32 %v7515_v37, %v7514_v52  ;;  %v6216_v28 = vpop.f32.mrf.mxu0 }
 0x183   :  { %3243 = vmatmul.mubr.f32.gmra.mxu0 %v7511_v49  ;;  %3326 = vmatprep.subr.mxu1 %v5824_v42  ;;  %v747_v20 = vadd.f32 %v7516_v57, %v576_v13  ;;  %v3488_v42 = vrot.slane %v6199_v51, 1  ;;  %v3447_v38 = vsel %vm3444_vm2, %v3445_v46, %v3446_v60  ;;  %v3557_v13 = vrot.slane %v6199_v51, 7 }
 0x184   :  { %3419 = vrot.lane.b32.xlu0 %v3406_v58, %s3780_s1  ;;  %3328 = vmatpush1.msra.mxu1 %v5835_v10  ;;  %v7517_v10 = vld [vmem:[#allocation80_spill] sm:$0xff]  ;;  %v6228_v41 = vpop.f32.mrf.mxu0 }
 0x185   :  { %3249 = vmatprep.mubr.f32.mxu0 %v7427_v11  ;;  %3360 = vmatprep.subr.mxu1 %v5842_v33  ;;  %v745_v55 = vadd.f32 %v7517_v10, %v574_v22  ;;  %v892_v6 = vadd.f32 %v7518_v31, %v747_v20  ;;  %v3520_v33 = vrot.slane %v6189_v53, 4 }
 0x186   :  { %3502 = vrot.lane.b32.xlu1 %v3489_v30, %s3781_s11  ;;  %3362 = vmatpush2.msra.mxu1 %v5859_v39  ;;  %v3449_v39 = vrot.slane %v6189_v53, 6  ;;  %v6242_v5 = vpop.f32.mrf.mxu0  ;;  %v7526_v30 = vld [vmem:[#allocation61_spill] sm:$0xff] }
 0x187   :  { %3251 = vmatmul.mubr.f32.gmra.mxu0 %v7428_v1  ;;  %3366 = vmatmul.mubr.f32.vlgmr.msra.gmra.mxu1 %v7509_v16  ;;  %v890_v19 = vadd.f32 %v7519_v35, %v745_v55  ;;  %v1095_v0 = vadd.f32 %v1094_v15, %v892_v6 }
 0x188   :  { %3500 = vrot.lane.b32.xlu0 %v3488_v42, %s3781_s11  ;;  %3257 = vmatprep.mubr.f32.mxu0 %v7432_v50  ;;  %v3450_v27 = vsel %vm3444_vm2, %v3448_v62, %v3449_v39  ;;  %v6248_v43 = vpop.f32.mrf.mxu0 }
 0x189   :  { %3372 = vmatprep.mubr.f32.mxu1 %v7510_v59  ;;  %v1093_v3 = vadd.f32 %v6172_v9, %v890_v19  ;;  %v1226_v4 = vadd.f32 %v1225_v54, %v1095_v0  ;;  %v1233_v9 = vpop.f32.mrf.mxu1  ;;  %v3560_v59 = vrot.slane %v6189_v53, 7 }
 0x18a   :  { %3533 = vrot.lane.b32.xlu1 %v3520_v33, %s3782_s12  ;;  %v6255_v29 = vpop.f32.mrf.mxu0 }
 0x18b   :  { %3259 = vmatmul.mubr.f32.gmra.mxu0 %v7435_v45  ;;  %3374 = vmatmul.mubr.f32.gmra.mxu1 %v7511_v49  ;;  %v1224_v47 = vadd.f32 %v1223_v18, %v1093_v3  ;;  %v3601_v34 = vrot.slane %v1226_v4, 2  ;;  %v1637_v63 = vpop.f32.mrf.mxu1  ;;  %v3561_v12 = vrot.slane %v1226_v4, 7  ;;  %v7527_v18 = vld [vmem:[#allocation15_spill] sm:$0xff] }
 0x18c   :  { %3531 = vrot.lane.b32.xlu0 %v3519_v24, %s3782_s12  ;;  %3380 = vmatprep.mubr.f32.mxu1 %v7427_v11  ;;  %v6265_v16 = vpop.f32.mrf.mxu0 }
 0x18d   :  { %v3600_v11 = vrot.slane %v1224_v47, 2  ;;  %v3631_v36 = vrot.slane %v1224_v47, 5  ;;  %v1639_v17 = vpop.f32.mrf.mxu1  ;;  %v3558_v44 = vrot.slane %v1224_v47, 7  ;;  %v3562_v14 = vsel %vm3556_vm3, %v3560_v59, %v3561_v12 }
 0x18e   :  { %3471 = vrot.lane.b32.xlu1 %v3450_v27, %s3783_s13  ;;  %v6276_v53 = vpop.f32.mrf.mxu0 }
 0x18f   :  { %3382 = vmatmul.mubr.f32.gmra.mxu1 %v7428_v1  ;;  %v3632_v1 = vrot.slane %v1226_v4, 5  ;;  %v1645_v2 = vpop.f32.mrf.mxu1  ;;  %v3559_v22 = vsel %vm3556_vm3, %v3557_v13, %v3558_v44 }
 0x190   :  { %3469 = vrot.lane.b32.xlu0 %v3447_v38, %s3783_s13  ;;  %3388 = vmatprep.mubr.f32.mxu1 %v7432_v50  ;;  %v7524_v50 = vld [vmem:[#allocation31_spill] sm:$0xff]  ;;  %v6282_v51 = vpop.f32.mrf.mxu0  ;;  %v1638_v38 = vadd.f32 %v1637_v63, %v6228_v41  ;;  %v1646_v12 = vadd.f32 %v1645_v2, %v6248_v43 }
 0x191   :  { %v757_v15 = vadd.f32 %v7524_v50, %v584_v48  ;;  %v1647_v42 = vpop.f32.mrf.mxu1 }
 0x192   :  { %3614 = vrot.lane.b32.xlu1 %v3601_v34, %s3784_s14  ;;  %v6285_v55 = vpop.f32.mrf.mxu0  ;;  %v1640_v34 = vadd.f32 %v1639_v17, %v6242_v5 }
 0x193   :  { %3390 = vmatmul.mubr.f32.gmra.mxu1 %v7435_v45  ;;  %v7525_v45 = vld [vmem:[#allocation13_spill] sm:$0xff]  ;;  %v904_v49 = vadd.f32 %v7526_v30, %v757_v15  ;;  %v1648_v15 = vadd.f32 %v1647_v42, %v6255_v29 }
 0x194   :  { %3612 = vrot.lane.b32.xlu0 %v3600_v11, %s3784_s14  ;;  %v755_v58 = vadd.f32 %v7525_v45, %v582_v32 }
 0x195   :  { %v1103_v37 = vadd.f32 %v6216_v28, %v904_v49  ;;  %v1653_v28 = vpop.f32.mrf.mxu1 }
 0x196   :  { %3645 = vrot.lane.b32.xlu1 %v3632_v1, %s3785_s0  ;;  %v902_v52 = vadd.f32 %v7527_v18, %v755_v58  ;;  %v1804_v6 = vpop.f32.mrf.mxu0 }
 0x197   :  { %v1234_v20 = vadd.f32 %v1233_v9, %v1103_v37  ;;  %v1655_v31 = vpop.f32.mrf.mxu1  ;;  %v1805_v11 = vadd.f32 %v1804_v6, %v1638_v38 }
 0x198   :  { %3643 = vrot.lane.b32.xlu0 %v3631_v36, %s3785_s0  ;;  %v1101_v57 = vadd.f32 %v6197_v8, %v902_v52  ;;  %v1806_v8 = vpop.f32.mrf.mxu0  ;;  %v1654_v52 = vadd.f32 %v1653_v28, %v6265_v16 }
 0x199   :  { %v6287_v54 = vpop.f32.mrf.mxu1  ;;  %v1807_v56 = vadd.f32 %v1806_v8, %v1640_v34 }
 0x19a   :  { %3583 = vrot.lane.b32.xlu1 %v3562_v14, %s3786_s15  ;;  %v1232_v10 = vadd.f32 %v1231_v7, %v1101_v57 }
 0x19b   :  { %v6289_v33 = vpop.f32.mrf.mxu1 }
 0x19c   :  { %3581 = vrot.lane.b32.xlu0 %v3559_v22, %s3786_s15  ;;  %v1814_v39 = vpop.f32.mrf.mxu0 }
 0x19d   :  { %v1815_v36 = vadd.f32 %v1814_v39, %v1646_v12 }
 0x19e   :  { %3664 = vrot.lane.b32.xlu1 %v1234_v20, %s3787_s16  ;;  %v1816_v19 = vpop.f32.mrf.mxu0  ;;  %v1656_v20 = vadd.f32 %v1655_v31, %v6276_v53 }
 0x19f   :  { %v1817_v5 = vadd.f32 %v1816_v19, %v1648_v15 }
 0x1a0   :  { %3662 = vrot.lane.b32.xlu0 %v1232_v10, %s3787_s16 }
 0x1a1   :  { %v1945_v35 = vpop.f32.mrf.mxu1  ;;  %v1824_v24 = vpop.f32.mrf.mxu0 }
 0x1a2   :  { %v1946_v48 = vadd.f32 %v1945_v35, %v1805_v11  ;;  %v1825_v42 = vadd.f32 %v1824_v24, %v1654_v52 }
 0x1a3   :  { %v1947_v0 = vpop.f32.mrf.mxu1  ;;  %v1826_v60 = vpop.f32.mrf.mxu0 }
 0x1a4   :  { %v1948_v25 = vadd.f32 %v1947_v0, %v1807_v56  ;;  %v1827_v8 = vadd.f32 %v1826_v60, %v1656_v20 }
 0x1a7   :  { %v1957_v62 = vpop.f32.mrf.mxu1  ;;  %v6291_v4 = vpop.f32.mrf.mxu0 }
 0x1a8   :  { %v1958_v17 = vadd.f32 %v1957_v62, %v1815_v36 }
 0x1a9   :  { %v1959_v3 = vpop.f32.mrf.mxu1  ;;  %v6293_v46 = vpop.f32.mrf.mxu0 }
 0x1aa   :  { %v1960_v30 = vadd.f32 %v1959_v3, %v1817_v5 }
 0x1ad   :  { %v1969_v7 = vpop.f32.mrf.mxu1 }
 0x1ae   :  { %v1970_v39 = vadd.f32 %v1969_v7, %v1825_v42 }
 0x1af   :  { %v1971_v27 = vpop.f32.mrf.mxu1 }
 0x1b0   :  { %v1972_v16 = vadd.f32 %v1971_v27, %v1827_v8 }
 0x1b2   :  { %v6296_v9 = vpop.f32.mrf.mxu1 }
 0x1b4   :  { %v6299_v1 = vpop.f32.mrf.mxu1 }
 0x1c0   :  { %v2156_v47 = vpop.f32.mrf.mxu0 }
 0x1c1   :  { %v2157_v23 = vadd.f32 %v2156_v47, %v1946_v48 }
 0x1c2   :  { %v2158_v40 = vpop.f32.mrf.mxu0 }
 0x1c3   :  { %v2159_v41 = vadd.f32 %v2158_v40, %v1948_v25  ;;  %v1662_v40 = vadd.f32 %v6287_v54, %v6282_v51  ;;  %v1664_v25 = vadd.f32 %v6289_v33, %v6285_v55 }
 0x1c6   :  { %v2164_v32 = vpop.f32.mrf.mxu0 }
 0x1c7   :  { %v2165_v43 = vadd.f32 %v2164_v32, %v1958_v17 }
 0x1c8   :  { %v2166_v58 = vpop.f32.mrf.mxu0 }
 0x1c9   :  { %v2167_v2 = vadd.f32 %v2166_v58, %v1960_v30 }
 0x1cb   :  { %v2287_v50 = vpop.f32.mrf.mxu1  ;;  %v2172_v57 = vpop.f32.mrf.mxu0 }
 0x1cc   :  { %v6303_v63 = vadd.f32 %v2287_v50, %v2157_v23  ;;  %v2173_v28 = vadd.f32 %v2172_v57, %v1970_v39  ;;  %v1835_v23 = vadd.f32 %v6291_v4, %v1662_v40 }
 0x1cd   :  { %v2289_v44 = vpop.f32.mrf.mxu1  ;;  %v2174_v19 = vpop.f32.mrf.mxu0 }
 0x1ce   :  { %7528 = vst [vmem:[#allocation63_spill] sm:$0xff] %v6303_v63  ;;  %v6305_v59 = vadd.f32 %v2289_v44, %v2159_v41  ;;  %v3407_v45 = vrot.slane %v6303_v63, 3  ;;  %v3451_v3 = vrot.slane %v6303_v63, 6  ;;  %v2175_v24 = vadd.f32 %v2174_v19, %v1972_v16 }
 0x1cf   :  { %v1837_v41 = vadd.f32 %v6293_v46, %v1664_v25  ;;  %v1982_v51 = vadd.f32 %v6296_v9, %v1835_v23 }
 0x1d0   :  { %7529 = vst [vmem:[#allocation66_spill] sm:$0xff] %v6305_v59  ;;  %3421 = vrot.lane.b32.xlu1 %v3407_v45, %s3780_s1  ;;  %v3408_v13 = vrot.slane %v6305_v59, 3  ;;  %v3454_v60 = vrot.slane %v6305_v59, 6 }
 0x1d1   :  { %v2295_v29 = vpop.f32.mrf.mxu1  ;;  %v2180_v48 = vpop.f32.mrf.mxu0  ;;  %v1984_v55 = vadd.f32 %v6299_v1, %v1837_v41 }
 0x1d2   :  { %v2296_v14 = vadd.f32 %v2295_v29, %v2165_v43  ;;  %v2181_v33 = vadd.f32 %v2180_v48, %v1982_v51 }
 0x1d3   :  { %v2297_v18 = vpop.f32.mrf.mxu1  ;;  %v2182_v54 = vpop.f32.mrf.mxu0 }
 0x1d4   :  { %v2298_v37 = vadd.f32 %v2297_v18, %v2167_v2  ;;  %v3490_v22 = vrot.slane %v2296_v14, 1  ;;  %3423 = vrot.lane.b32.xlu1 %v3408_v13, %s3780_s1  ;;  %v3521_v35 = vrot.slane %v2296_v14, 4  ;;  %v3452_v0 = vrot.slane %v2296_v14, 6 }
 0x1d5   :  { %v3563_v36 = vrot.slane %v2296_v14, 7  ;;  %v2183_v45 = vadd.f32 %v2182_v54, %v1984_v55 }
 0x1d6   :  { %3504 = vrot.lane.b32.xlu0 %v3490_v22, %s3781_s11  ;;  %v3491_v10 = vrot.slane %v2298_v37, 1  ;;  %v3522_v62 = vrot.slane %v2298_v37, 4  ;;  %v3455_v31 = vrot.slane %v2298_v37, 6  ;;  %v3453_v7 = vsel %vm3444_vm2, %v3451_v3, %v3452_v0 }
 0x1d7   :  { %v2303_v6 = vpop.f32.mrf.mxu1  ;;  %v3566_v5 = vrot.slane %v2298_v37, 7 }
 0x1d8   :  { %3506 = vrot.lane.b32.xlu1 %v3491_v10, %s3781_s11  ;;  %v2304_v47 = vadd.f32 %v2303_v6, %v2173_v28  ;;  %v3456_v27 = vsel %vm3444_vm2, %v3454_v60, %v3455_v31 }
 0x1d9   :  { %v2305_v53 = vpop.f32.mrf.mxu1 }
 0x1da   :  { %3535 = vrot.lane.b32.xlu0 %v3521_v35, %s3782_s12  ;;  %v2306_v38 = vadd.f32 %v2305_v53, %v2175_v24  ;;  %v3602_v34 = vrot.slane %v2304_v47, 2  ;;  %v3633_v56 = vrot.slane %v2304_v47, 5  ;;  %v3564_v12 = vrot.slane %v2304_v47, 7 }
 0x1db   :  { %v2311_v15 = vpop.f32.mrf.mxu1 }
 0x1dc   :  { %3537 = vrot.lane.b32.xlu1 %v3522_v62, %s3782_s12  ;;  %v3603_v11 = vrot.slane %v2306_v38, 2  ;;  %v3634_v32 = vrot.slane %v2306_v38, 5  ;;  %v3567_v50 = vrot.slane %v2306_v38, 7  ;;  %v3565_v44 = vsel %vm3556_vm3, %v3563_v36, %v3564_v12 }
 0x1dd   :  { %v2313_v4 = vpop.f32.mrf.mxu1  ;;  %v2312_v58 = vadd.f32 %v2311_v15, %v2181_v33 }
 0x1de   :  { %3473 = vrot.lane.b32.xlu0 %v3453_v7, %s3783_s13  ;;  %v3568_v17 = vsel %vm3556_vm3, %v3566_v5, %v3567_v50  ;;  %v2314_v46 = vadd.f32 %v2313_v4, %v2183_v45 }
 0x1e0   :  { %3475 = vrot.lane.b32.xlu1 %v3456_v27, %s3783_s13 }
 0x1e2   :  { %3616 = vrot.lane.b32.xlu0 %v3602_v34, %s3784_s14 }
 0x1e4   :  { %3618 = vrot.lane.b32.xlu1 %v3603_v11, %s3784_s14 }
 0x1e6   :  { %3647 = vrot.lane.b32.xlu0 %v3633_v56, %s3785_s0 }
 0x1e8   :  { %3649 = vrot.lane.b32.xlu1 %v3634_v32, %s3785_s0 }
 0x1ea   :  { %3585 = vrot.lane.b32.xlu0 %v3565_v44, %s3786_s15 }
 0x1ec   :  { %3587 = vrot.lane.b32.xlu1 %v3568_v17, %s3786_s15  ;;  %v2426_v9 = vpop.f32.mrf.mxu0 }
 0x1ee   :  { %3666 = vrot.lane.b32.xlu0 %v2312_v58, %s3787_s16  ;;  %v2428_v30 = vpop.f32.mrf.mxu0 }
 0x1f0   :  { %3668 = vrot.lane.b32.xlu1 %v2314_v46, %s3787_s16 }
 0x1f2   :  { %v6345_v13 = vpop.permute.xlu0 %3417 }
 0x1f4   :  { %v2717_v1 = vpop.f32.mrf.mxu1 }
 0x1f5   :  { %v2718_v41 = vadd.f32 %v2717_v1, %v2426_v9  ;;  %v3429_v1 = vlaneseq }
 0x1f6   :  { %v2719_v14 = vpop.f32.mrf.mxu1  ;;  %v6351_v57 = vpop.permute.xlu0 %3419 }
 0x1f7   :  { %v2720_v44 = vadd.f32 %v2719_v14, %v2428_v30 }
 0x1f8   :  { %v6353_v20 = vpop.permute.xlu1 %3502 }
 0x1fa   :  { %v6359_v6 = vpop.permute.xlu0 %3500 }
 0x1fc   :  { %v6363_v39 = vpop.permute.xlu1 %3533 }
 0x1fe   :  { %v6367_v16 = vpop.permute.xlu0 %3531 }
 0x200   :  { %v6369_v28 = vpop.permute.xlu1 %3471 }
 0x202   :  { %v6373_v31 = vpop.permute.xlu0 %3469 }
 0x203   :  { %v2442_v43 = vpop.f32.mrf.mxu0 }
 0x204   :  { %v6375_v24 = vpop.permute.xlu1 %3614 }
 0x205   :  { %v2444_v29 = vpop.f32.mrf.mxu0 }
 0x206   :  { %v6379_v38 = vpop.permute.xlu0 %3612 }
 0x208   :  { %v6343_v2 = vpop.f32.mrf.mxu0  ;;  %v6381_v34 = vpop.permute.xlu1 %3645 }
 0x20a   :  { %v2725_v18 = vpop.f32.mrf.mxu1  ;;  %v6347_v52 = vpop.f32.mrf.mxu0 }
 0x20b   :  { %v6385_v56 = vpop.permute.xlu0 %3643  ;;  %v2726_v4 = vadd.f32 %v2725_v18, %v2442_v43 }
 0x20c   :  { %v2727_v37 = vpop.f32.mrf.mxu1  ;;  %v6387_v48 = vpop.permute.xlu1 %3583 }
 0x20d   :  { %v2728_v49 = vadd.f32 %v2727_v37, %v2444_v29 }
 0x20e   :  { %v6349_v22 = vpop.f32.mrf.mxu0 }
 0x20f   :  { %v6395_v32 = vpop.permute.xlu0 %3581 }
 0x210   :  { %v6355_v42 = vpop.f32.mrf.mxu1  ;;  %v6357_v10 = vpop.f32.mrf.mxu0 }
 0x211   :  { %v6399_v15 = vpop.permute.xlu1 %3664 }
 0x212   :  { %v6361_v8 = vpop.f32.mrf.mxu1 }
 0x213   :  { %v6405_v33 = vpop.permute.xlu0 %3662 }
 0x214   :  { %v2884_v35 = vpop.f32.mrf.mxu0 }
 0x215   :  { %v2885_v5 = vadd.f32 %v2884_v35, %v2718_v41 }
 0x216   :  { %v6365_v19 = vpop.f32.mrf.mxu1  ;;  %v2886_v0 = vpop.f32.mrf.mxu0 }
 0x217   :  { %v2887_v17 = vadd.f32 %v2886_v0, %v2720_v44 }
 0x218   :  { %v6371_v62 = vpop.f32.mrf.mxu1 }
 0x21a   :  { %v2894_v3 = vpop.f32.mrf.mxu0 }
 0x21b   :  { %v2895_v61 = vadd.f32 %v2894_v3, %v2726_v4  ;;  %v6420_v3 = vand.u32 127, %v3429_v1 }
 0x21c   :  { %v2896_v47 = vpop.f32.mrf.mxu0 }
 0x21d   :  { %v2897_v30 = vadd.f32 %v2896_v47, %v2728_v49  ;;  %vm3543_vm4 = vcmp.lt.s32.totalorder %v6420_v3, 109  ;;  %vm3512_vm5 = vcmp.lt.s32.totalorder %v6420_v3, 110  ;;  %vm3481_vm6 = vcmp.lt.s32.totalorder %v6420_v3, 126 }
 0x21e   :  { %vm3593_vm7 = vcmp.lt.s32.totalorder %v6420_v3, 108  ;;  %vm3431_vm8 = vcmp.lt.s32.totalorder %v6420_v3, 127  ;;  %vm3624_vm9 = vcmp.lt.s32.totalorder %v6420_v3, 92  ;;  %vm3674_vm10 = vcmp.lt.s32.totalorder %v6420_v3, 90 }
 0x21f   :  { %v3025_v53 = vpop.f32.mrf.mxu1  ;;  %vm3655_vm11 = vcmp.lt.s32.totalorder %v6420_v3, 91 }
 0x220   :  { %v6377_v7 = vpop.f32.mrf.mxu0  ;;  %v3026_v45 = vadd.f32 %v3025_v53, %v2885_v5 }
 0x221   :  { %v3027_v60 = vpop.f32.mrf.mxu1 }
 0x222   :  { %v6383_v11 = vpop.f32.mrf.mxu0  ;;  %v3028_v59 = vadd.f32 %v3027_v60, %v2887_v17 }
 0x225   :  { %v6389_v12 = vpop.f32.mrf.mxu0 }
 0x226   :  { %v3037_v27 = vpop.f32.mrf.mxu1 }
 0x227   :  { %v6393_v23 = vpop.f32.mrf.mxu0  ;;  %v3038_v14 = vadd.f32 %v3037_v27, %v2895_v61 }
 0x228   :  { %v3039_v40 = vpop.f32.mrf.mxu1  ;;  %7530 = vst [vmem:[#allocation34_spill] sm:$0xff] %v6393_v23 }
 0x229   :  { %v3040_v0 = vadd.f32 %v3039_v40, %v2897_v30  ;;  %v3396_v40 = vld [vmem:[%s6702_s2] sm:$0x77]  ;;  %v7532_v30 = vcombine.low %v6048_v21, %v6050_v26 }
 0x22b   :  { %v6391_v25 = vpop.f32.mrf.mxu1 }
 0x22d   :  { %v6397_v50 = vpop.f32.mrf.mxu1 }
 0x230   :  { %v6401_v51 = vpop.f32.mrf.mxu1 }
 0x231   :  { %7531 = vst [vmem:[#allocation35_spill] sm:$0xff] %v6401_v51 }
 0x232   :  { %v6407_v58 = vpop.f32.mrf.mxu1 }
 0x23f   :  { %v3236_v36 = vpop.f32.mrf.mxu0 }
 0x240   :  { %v3237_v63 = vadd.f32 %v3236_v36, %v3026_v45  ;;  %v2734_v36 = vadd.f32 %v6355_v42, %v6343_v2  ;;  %v2736_v45 = vadd.f32 %v6361_v8, %v6347_v52 }
 0x241   :  { %v3238_v54 = vpop.f32.mrf.mxu0 }
 0x242   :  { %v6403_v55 = vpop.permute.xlu1 %3421  ;;  %v3239_v35 = vadd.f32 %v3238_v54, %v3028_v59  ;;  %v2905_v2 = vadd.f32 %v6377_v7, %v2734_v36  ;;  %v2907_v7 = vadd.f32 %v6383_v11, %v2736_v45  ;;  %v3548_v36 = vsel %vm3543_vm4, %v6367_v16, %v6363_v39 }
 0x243   :  { %v3244_v46 = vpop.f32.mrf.mxu0  ;;  %v3629_v45 = vsel %vm3624_vm9, %v6379_v38, %v6375_v24 }
 0x244   :  { %v3245_v53 = vadd.f32 %v3244_v46, %v3038_v14  ;;  %v6459_v14 = vadd.f32 %v7532_v30, %v3396_v40  ;;  %v3052_v11 = vadd.f32 %v6397_v50, %v2907_v7  ;;  %v3486_v30 = vsel %vm3481_vm6, %v6373_v31, %v6369_v28 }
 0x245   :  { %v3246_v43 = vpop.f32.mrf.mxu0 }
 0x246   :  { %v6409_v9 = vpop.permute.xlu1 %3423  ;;  %v3247_v49 = vadd.f32 %v3246_v43, %v3040_v0 }
 0x247   :  { %v3367_v51 = vpop.f32.mrf.mxu1  ;;  %v3252_v4 = vpop.f32.mrf.mxu0 }
 0x248   :  { %v6411_v41 = vadd.f32 %v3367_v51, %v3237_v63  ;;  %v6413_v23 = vpop.permute.xlu0 %3504 }
 0x249   :  { %v3369_v18 = vpop.f32.mrf.mxu1  ;;  %v3254_v21 = vpop.f32.mrf.mxu0 }
 0x24a   :  { %v6415_v44 = vadd.f32 %v3369_v18, %v3239_v35  ;;  %v3409_v29 = vrot.slane %v6411_v41, 3  ;;  %v6418_v37 = vpop.permute.xlu1 %3506  ;;  %v3050_v35 = vadd.f32 %v6391_v25, %v2905_v2 }
 0x24b   :  { %v3375_v60 = vpop.f32.mrf.mxu1  ;;  %v3515_v46 = vsel %vm3512_vm5, %v6413_v23, %v6418_v37 }
 0x24c   :  { %v3683_v61 = vcombine.low %v6411_v41, %v6415_v44  ;;  %v6424_v63 = vadd.f32 %v3375_v60, %v3245_v53  ;;  %3425 = vrot.lane.b32.xlu0 %v3409_v29, %s3780_s1  ;;  %v3410_v59 = vrot.slane %v6415_v44, 3  ;;  %v6428_v47 = vpop.permute.xlu0 %3535  ;;  %v3253_v25 = vadd.f32 %v3252_v4, %v3050_v35 }
 0x24d   :  { %v3377_v27 = vpop.f32.mrf.mxu1  ;;  %v3434_v29 = vsel %vm3431_vm8, %v6403_v55, %v6409_v9  ;;  %v3460_v2 = vrot.slane %v6415_v44, 6 }
 0x24e   :  { %v6436_v51 = vadd.f32 %v3377_v27, %v3247_v49  ;;  %3427 = vrot.lane.b32.xlu1 %v3410_v59, %s3780_s1  ;;  %v3492_v54 = vrot.slane %v6424_v63, 1  ;;  %v6440_v5 = vpop.permute.xlu1 %3537  ;;  %v3523_v43 = vrot.slane %v6424_v63, 4  ;;  %v3458_v26 = vrot.slane %v6424_v63, 6 }
 0x24f   :  { %v3546_v17 = vsel %vm3543_vm4, %v6428_v47, %v6440_v5  ;;  %v3383_v52 = vpop.f32.mrf.mxu1  ;;  %v3598_v49 = vsel %vm3593_vm7, %v6395_v32, %v6387_v48  ;;  %v3457_v59 = vrot.slane %v6411_v41, 6 }
 0x250   :  { %3508 = vrot.lane.b32.xlu0 %v3492_v54, %s3781_s11  ;;  %v3493_v42 = vrot.slane %v6436_v51, 1  ;;  %v3474_v1 = vpop.permute.xlu0 %3473  ;;  %v6462_v8 = vadd.f32 %v3546_v17, %v3515_v46  ;;  %v3524_v53 = vrot.slane %v6436_v51, 4  ;;  %v3461_v50 = vrot.slane %v6436_v51, 6 }
 0x251   :  { %v3385_v27 = vpop.f32.mrf.mxu1  ;;  %v3255_v54 = vadd.f32 %v3254_v21, %v3052_v11  ;;  %v6497_v4 = vadd.f32 %v3383_v52, %v3253_v25  ;;  %v3485_v46 = vsel %vm3481_vm6, %v6369_v28, %v3474_v1  ;;  %v3702_v52 = vadd.f32 %v3629_v45, %v3598_v49 }
 0x252   :  { %3510 = vrot.lane.b32.xlu1 %v3493_v42, %s3781_s11  ;;  %v6469_v18 = vpop.permute.xlu1 %3475  ;;  %v3459_v42 = vsel %vm3444_vm2, %v3457_v59, %v3458_v26  ;;  %v3435_v28 = vsel %vm3431_vm8, %v6351_v57, %v6403_v55  ;;  %v3462_v21 = vsel %vm3444_vm2, %v3460_v2, %v3461_v50  ;;  %v3436_v26 = vsel %vm3431_vm8, %v6345_v13, %v6351_v57 }
 0x253   :  { %v3484_v0 = vsel %vm3481_vm6, %v3474_v1, %v6469_v18  ;;  %v6516_v7 = vadd.f32 %v3385_v27, %v3255_v54  ;;  %v3679_v1 = vsel %vm3674_vm10, %v6405_v33, %v6399_v15  ;;  %v3604_v11 = vrot.slane %v6497_v4, 2 }
 0x254   :  { %3539 = vrot.lane.b32.xlu0 %v3523_v43, %s3782_s12  ;;  %v3617_v60 = vpop.permute.xlu0 %3616  ;;  %v6490_v40 = vadd.f32 %v3484_v0, %v3434_v29  ;;  %v3517_v43 = vsel %vm3512_vm5, %v6359_v6, %v6353_v20  ;;  %v3691_v25 = vadd.f32 %v3485_v46, %v3435_v28  ;;  %v3690_v29 = vadd.f32 %v3486_v30, %v3436_v26  ;;  %v7534_v30 = vld [vmem:[#allocation35_spill] sm:$0xff]  ;;  %v3391_v26 = vpop.f32.mrf.mxu1 }
 0x255   :  { %v3696_v0 = vadd.f32 %v3548_v36, %v3517_v43  ;;  %v3660_v55 = vsel %vm3655_vm11, %v6385_v56, %v6381_v34  ;;  %v2742_v49 = vadd.f32 %v6365_v19, %v6349_v22  ;;  %v3547_v57 = vsel %vm3543_vm4, %v6363_v39, %v6428_v47 }
 0x256   :  { %3541 = vrot.lane.b32.xlu1 %v3524_v53, %s3782_s12  ;;  %v6500_v17 = vpop.permute.xlu1 %3618  ;;  %v3708_v27 = vadd.f32 %v3679_v1, %v3660_v55  ;;  %v2744_v50 = vadd.f32 %v6371_v62, %v6357_v10  ;;  %v3605_v36 = vrot.slane %v6516_v7, 2  ;;  %v3516_v22 = vsel %vm3512_vm5, %v6353_v20, %v6413_v23  ;;  %v3260_v20 = vpop.f32.mrf.mxu0 }
 0x257   :  { %v3729_v59 = vadd.f32 %v3702_v52, %v3696_v0  ;;  %v2915_v45 = vadd.f32 %v6389_v12, %v2742_v49  ;;  %v3628_v39 = vsel %vm3624_vm9, %v6375_v24, %v3617_v60  ;;  %v3635_v19 = vrot.slane %v6497_v4, 5 }
 0x258   :  { %3477 = vrot.lane.b32.xlu0 %v3459_v42, %s3783_s13  ;;  %v6519_v35 = vpop.permute.xlu0 %3647  ;;  %v3697_v62 = vadd.f32 %v3547_v57, %v3516_v22  ;;  %v3720_v47 = vcombine.low %v3690_v29, %v3691_v25  ;;  %v7533_v42 = vld [vmem:[#allocation34_spill] sm:$0xff]  ;;  %v3570_v23 = vrot.slane %v6497_v4, 7  ;;  %v3627_v24 = vsel %vm3624_vm9, %v3617_v60, %v6500_v17 }
 0x259   :  { %v2917_v46 = vadd.f32 %v7533_v42, %v2744_v50  ;;  %v3062_v52 = vadd.f32 %v7534_v30, %v2915_v45  ;;  %v3636_v43 = vrot.slane %v6516_v7, 5  ;;  %v3573_v4 = vrot.slane %v6516_v7, 7 }
 0x25a   :  { %3479 = vrot.lane.b32.xlu1 %v3462_v21, %s3783_s13  ;;  %v6540_v53 = vpop.permute.xlu1 %3649  ;;  %v3569_v0 = vrot.slane %v6424_v63, 7  ;;  %v3659_v60 = vsel %vm3655_vm11, %v6381_v34, %v6519_v35  ;;  %v3726_v25 = vadd.f32 %v3720_v47, %v6459_v14  ;;  %v3262_v63 = vpop.f32.mrf.mxu0  ;;  %v3572_v57 = vrot.slane %v6436_v51, 7 }
 0x25b   :  { %v3064_v34 = vadd.f32 %v6407_v58, %v2917_v46  ;;  %v3261_v50 = vadd.f32 %v3260_v20, %v3062_v52 }
 0x25c   :  { %3620 = vrot.lane.b32.xlu0 %v3604_v11, %s3784_s14  ;;  %v3586_v54 = vpop.permute.xlu0 %3585  ;;  %v3571_v49 = vsel %vm3556_vm3, %v3569_v0, %v3570_v23  ;;  %v3574_v14 = vsel %vm3556_vm3, %v3572_v57, %v3573_v4 }
 0x25d   :  { %v3597_v10 = vsel %vm3593_vm7, %v6387_v48, %v3586_v54  ;;  %v3392_v45 = vadd.f32 %v3391_v26, %v3261_v50 }
 0x25e   :  { %3622 = vrot.lane.b32.xlu1 %v3605_v36, %s3784_s14  ;;  %v3703_v12 = vadd.f32 %v3628_v39, %v3597_v10  ;;  %v6569_v2 = vpop.permute.xlu1 %3587 }
 0x25f   :  { %v3596_v48 = vsel %vm3593_vm7, %v3586_v54, %v6569_v2  ;;  %v3393_v54 = vpop.f32.mrf.mxu1 }
 0x260   :  { %3651 = vrot.lane.b32.xlu0 %v3635_v19, %s3785_s0  ;;  %v3730_v1 = vadd.f32 %v3703_v12, %v3697_v62  ;;  %v6582_v28 = vpop.permute.xlu0 %3666  ;;  %v3704_v21 = vadd.f32 %v3627_v24, %v3596_v48  ;;  %v3397_v12 = vld [vmem:[%s6702_s2 + $0x8] sm:$0x77]  ;;  %v7536_v48 = vld [vmem:[#allocation66_spill] sm:$0xff] }
 0x261   :  { %v3678_v11 = vsel %vm3674_vm10, %v6399_v15, %v6582_v28  ;;  %v7535_v24 = vld [vmem:[#allocation63_spill] sm:$0xff] }
 0x262   :  { %3653 = vrot.lane.b32.xlu1 %v3636_v43, %s3785_s0  ;;  %v3741_v29 = vcombine.low %v3729_v59, %v3730_v1  ;;  %v3709_v55 = vadd.f32 %v3678_v11, %v3659_v60  ;;  %v6597_v7 = vadd.f32 %v3704_v21, %v6462_v8  ;;  %v3263_v59 = vadd.f32 %v3262_v63, %v3064_v34  ;;  %v3669_v58 = vpop.permute.xlu1 %3668 }
 0x263   :  { %v7537_v30 = vcombine.low %v7535_v24, %v7536_v48 }
 0x264   :  { %3589 = vrot.lane.b32.xlu0 %v3571_v49, %s3786_s15  ;;  %v3747_v15 = vadd.f32 %v3741_v29, %v3726_v25  ;;  %v3756_v36 = vcombine.low %v3708_v27, %v3709_v55  ;;  %v3394_v22 = vadd.f32 %v3393_v54, %v3263_v59  ;;  %v3677_v49 = vsel %vm3674_vm10, %v6582_v28, %v3669_v58 }
 0x265   :  { %v3688_v52 = vadd.f32 %v7537_v30, %v3397_v12 }
 0x266   :  { %3591 = vrot.lane.b32.xlu1 %v3574_v14, %s3786_s15  ;;  %v3762_v8 = vadd.f32 %v3756_v36, %v3747_v15 }
 0x268   :  { %3670 = vrot.lane.b32.xlu0 %v3392_v45, %s3787_s16  ;;  %3765 = vst [vmem:[%s6703_s3] sm:$0x77] %v3762_v8 }
 0x26a   :  { %3672 = vrot.lane.b32.xlu1 %v3394_v22, %s3787_s16 }
 0x2be   :  { %v3426_v51 = vpop.permute.xlu0 %3425 }
 0x2bf   :  { %v3433_v42 = vsel %vm3431_vm8, %v6409_v9, %v3426_v51 }
 0x2c0   :  { %v3428_v27 = vpop.permute.xlu1 %3427 }
 0x2c1   :  { %v3432_v0 = vsel %vm3431_vm8, %v3426_v51, %v3428_v27 }
 0x2c2   :  { %v3509_v39 = vpop.permute.xlu0 %3508 }
 0x2c3   :  { %v3514_v41 = vsel %vm3512_vm5, %v6418_v37, %v3509_v39 }
 0x2c4   :  { %v3511_v10 = vpop.permute.xlu1 %3510 }
 0x2c5   :  { %v3513_v44 = vsel %vm3512_vm5, %v3509_v39, %v3511_v10  ;;  %v3518_v37 = vsel %vm3512_vm5, %v3511_v10, %v6359_v6 }
 0x2c6   :  { %v3540_v19 = vpop.permute.xlu0 %3539 }
 0x2c7   :  { %v3545_v55 = vsel %vm3543_vm4, %v6440_v5, %v3540_v19 }
 0x2c8   :  { %v3542_v62 = vpop.permute.xlu1 %3541  ;;  %v3699_v34 = vadd.f32 %v3545_v55, %v3514_v41 }
 0x2c9   :  { %v3544_v63 = vsel %vm3543_vm4, %v3540_v19, %v3542_v62  ;;  %v3549_v5 = vsel %vm3543_vm4, %v3542_v62, %v6367_v16 }
 0x2ca   :  { %v3478_v47 = vpop.permute.xlu0 %3477  ;;  %v3700_v50 = vadd.f32 %v3544_v63, %v3513_v44  ;;  %v3701_v14 = vadd.f32 %v3549_v5, %v3518_v37 }
 0x2cb   :  { %v3483_v46 = vsel %vm3481_vm6, %v6469_v18, %v3478_v47  ;;  %v3398_v18 = vld [vmem:[%s6702_s2 + $0x10] sm:$0x77] }
 0x2cc   :  { %v3693_v20 = vadd.f32 %v3483_v46, %v3433_v42  ;;  %v3480_v23 = vpop.permute.xlu1 %3479 }
 0x2cd   :  { %v3482_v4 = vsel %vm3481_vm6, %v3478_v47, %v3480_v23  ;;  %v3487_v9 = vsel %vm3481_vm6, %v3480_v23, %v6373_v31  ;;  %v3689_v31 = vadd.f32 %v3683_v61, %v3398_v18 }
 0x2ce   :  { %v3721_v43 = vcombine.low %v6490_v40, %v3693_v20  ;;  %v3621_v1 = vpop.permute.xlu0 %3620  ;;  %v3437_v40 = vsel %vm3431_vm8, %v3428_v27, %v6345_v13  ;;  %v3694_v11 = vadd.f32 %v3482_v4, %v3432_v0  ;;  %v3658_v13 = vsel %vm3655_vm11, %v6519_v35, %v6540_v53 }
 0x2cf   :  { %v3695_v25 = vadd.f32 %v3487_v9, %v3437_v40  ;;  %v3626_v35 = vsel %vm3624_vm9, %v6500_v17, %v3621_v1  ;;  %v3710_v22 = vadd.f32 %v3677_v49, %v3658_v13 }
 0x2d0   :  { %v3727_v21 = vadd.f32 %v3721_v43, %v3688_v52  ;;  %v3623_v26 = vpop.permute.xlu1 %3622 }
 0x2d1   :  { %v3722_v57 = vcombine.low %v3694_v11, %v3695_v25  ;;  %v3625_v16 = vsel %vm3624_vm9, %v3621_v1, %v3623_v26  ;;  %v3630_v54 = vsel %vm3624_vm9, %v3623_v26, %v6379_v38 }
 0x2d2   :  { %v3652_v60 = vpop.permute.xlu0 %3651 }
 0x2d3   :  { %v3728_v51 = vadd.f32 %v3722_v57, %v3689_v31  ;;  %v3657_v27 = vsel %vm3655_vm11, %v6540_v53, %v3652_v60 }
 0x2d4   :  { %v3654_v29 = vpop.permute.xlu1 %3653 }
 0x2d5   :  { %v3656_v47 = vsel %vm3655_vm11, %v3652_v60, %v3654_v29  ;;  %v3661_v12 = vsel %vm3655_vm11, %v3654_v29, %v6385_v56 }
 0x2d6   :  { %v3590_v61 = vpop.permute.xlu0 %3589 }
 0x2d7   :  { %v3595_v28 = vsel %vm3593_vm7, %v6569_v2, %v3590_v61 }
 0x2d8   :  { %v3705_v15 = vadd.f32 %v3626_v35, %v3595_v28  ;;  %v3592_v36 = vpop.permute.xlu1 %3591 }
 0x2d9   :  { %v3594_v17 = vsel %vm3593_vm7, %v3590_v61, %v3592_v36  ;;  %v3599_v2 = vsel %vm3593_vm7, %v3592_v36, %v6395_v32 }
 0x2da   :  { %v3732_v6 = vadd.f32 %v3705_v15, %v3699_v34  ;;  %v3706_v59 = vadd.f32 %v3625_v16, %v3594_v17  ;;  %v3707_v45 = vadd.f32 %v3630_v54, %v3599_v2  ;;  %v3671_v8 = vpop.permute.xlu0 %3670 }
 0x2db   :  { %v3676_v38 = vsel %vm3674_vm10, %v3669_v58, %v3671_v8 }
 0x2dc   :  { %v3742_v39 = vcombine.low %v6597_v7, %v3732_v6  ;;  %v3733_v10 = vadd.f32 %v3706_v59, %v3700_v50  ;;  %v3734_v19 = vadd.f32 %v3707_v45, %v3701_v14  ;;  %v3711_v62 = vadd.f32 %v3676_v38, %v3657_v27  ;;  %v3673_v32 = vpop.permute.xlu1 %3672 }
 0x2dd   :  { %v3675_v42 = vsel %vm3674_vm10, %v3671_v8, %v3673_v32  ;;  %v3680_v53 = vsel %vm3674_vm10, %v3673_v32, %v6405_v33 }
 0x2de   :  { %v3743_v58 = vcombine.low %v3733_v10, %v3734_v19  ;;  %v3748_v7 = vadd.f32 %v3742_v39, %v3727_v21  ;;  %v3757_v46 = vcombine.low %v3710_v22, %v3711_v62  ;;  %v3712_v20 = vadd.f32 %v3675_v42, %v3656_v47 }
 0x2df   :  { %v3713_v23 = vadd.f32 %v3680_v53, %v3661_v12 }
 0x2e0   :  { %v3763_v24 = vadd.f32 %v3757_v46, %v3748_v7  ;;  %v3749_v48 = vadd.f32 %v3743_v58, %v3728_v51 }
 0x2e1   :  { %v3758_v30 = vcombine.low %v3712_v20, %v3713_v23 }
 0x2e2   :  { %3766 = vst [vmem:[%s6703_s3 + $0x8] sm:$0x77] %v3763_v24 }
 0x2e3   :  { %v3764_v56 = vadd.f32 %v3758_v30, %v3749_v48 }
 0x2e5   :  { %3767 = vst [vmem:[%s6703_s3 + $0x10] sm:$0x77] %v3764_v56 }

</bundles_post_ra>
